<compile_context>
chip_gen: v7x
topology: tpu7x:2x2x1
jax: 0.10.0
libtpu: 0.0.40
codegen_flags: <defaults>
</compile_context>

<pallas_src>
import functools

import jax
import jax.numpy as jnp
from jax import lax
from jax.experimental import pallas as pl
from jax.experimental.pallas import tpu as pltpu


def bottleneck_kernel(x_ref, w1_ref, b1_ref, w2_ref, b2_ref, w3_ref, b3_ref,
                      o_ref, pad_ref, *, H, W):
    HW, Cin = x_ref.shape[1], x_ref.shape[2]
    Pp = w1_ref.shape[1]

    x_bf = x_ref[0]                                            # (HW, Cin) bf16

    # ---- conv1 (1x1, BN1 scale pre-folded) + bias + ReLU --------------------
    y1 = jnp.dot(x_bf, w1_ref[...], preferred_element_type=jnp.float32)
    y1 = jnp.maximum(y1 + b1_ref[...], 0.0)                    # (HW, Pp) f32
    y1_bf = y1.astype(jnp.bfloat16)                            # bf16 immediately

    # ---- conv2 (3x3, stride 1, pad 1) from a zero-haloed bf16 VMEM scratch --
    # Re-zero only the halo ring each step (megacore-safe, interior store
    # never touches it), then write bf16(y1) into the interior once.
    zrow = jnp.zeros((1, W + 2, Pp), jnp.bfloat16)
    zcol = jnp.zeros((H, 1, Pp), jnp.bfloat16)
    pad_ref[pl.ds(0, 1), :, :] = zrow
    pad_ref[pl.ds(H + 1, 1), :, :] = zrow
    pad_ref[pl.ds(1, H), pl.ds(0, 1), :] = zcol
    pad_ref[pl.ds(1, H), pl.ds(W + 1, 1), :] = zcol
    pad_ref[pl.ds(1, H), pl.ds(1, W), :] = y1_bf.reshape(H, W, Pp)

    # 9 accumulating MXU matmuls over shifted windows of the padded scratch.
    acc = jnp.zeros((HW, Pp), jnp.float32)
    for kh in range(3):
        for kw in range(3):
            win = pad_ref[pl.ds(kh, H), pl.ds(kw, W), :]       # (H, W, Pp) bf16
            acc = acc + jnp.dot(win.reshape(HW, Pp), w2_ref[kh * 3 + kw],
                                preferred_element_type=jnp.float32)
    y2 = jnp.maximum(acc + b2_ref[...], 0.0)                   # (HW, Pp) f32
    y2_bf = y2.astype(jnp.bfloat16)

    # ---- conv3 (1x1, BN3 scale pre-folded) + bias + residual + ReLU ---------
    y3 = jnp.dot(y2_bf, w3_ref[...], preferred_element_type=jnp.float32)
    out = jnp.maximum(y3 + b3_ref[...] + x_bf.astype(jnp.float32), 0.0)
    o_ref[...] = out.reshape(1, HW, Cin).astype(o_ref.dtype)


def bottleneck_pallas(x_nhwc, w1, b1, w2, b2, w3, b3):
    """x_nhwc: (N,H,W,Cin).  w1:(Cin,Pp), w2:(9,Pp,Pp), w3:(Pp,Cin) bf16 with
    BN scale folded and planes zero-padded to Pp.  b1/b2:(1,Pp), b3:(1,Cin) f32."""
    N, H, W, Cin = x_nhwc.shape
    Pp = w1.shape[1]
    assert w3.shape[1] == Cin, "identity path requires in_planes == 4*planes"
    HW = H * W
    # bf16 at the HBM boundary: halves the input DMA; conv1 needs bf16 anyway.
    x3 = x_nhwc.reshape(N, HW, Cin).astype(jnp.bfloat16)

    full = lambda a: pl.BlockSpec(a.shape, lambda n: (0,) * a.ndim)
    kern = functools.partial(bottleneck_kernel, H=H, W=W)

    # Explicit VMEM budget: double-buffered x/out blocks + resident weights +
    # padded conv2 scratch + f32 value temporaries, 2x margin, 16..32 MiB clamp
    # (valid on v5e / v6e / v7x scoped limits).
    est = (2 * HW * Cin * (2 + 4)
           + 2 * ((Cin * Pp + 9 * Pp * Pp + Pp * Cin) * 2 + (2 * Pp + Cin) * 4)
           + (H + 2) * (W + 2) * Pp * 2
           + 6 * HW * Pp * 4)
    vmem_limit = int(min(32 * 2**20, max(16 * 2**20, 2 * est)))

    out = pl.pallas_call(
        kern,
        out_shape=jax.ShapeDtypeStruct((N, HW, Cin), jnp.float32),
        grid=(N,),
        in_specs=[
            pl.BlockSpec((1, HW, Cin), lambda n: (n, 0, 0)),    # x (lane-dense)
            full(w1), full(b1),                                 # conv1 / bn1
            full(w2), full(b2),                                 # conv2 / bn2
            full(w3), full(b3),                                 # conv3 / bn3
        ],
        out_specs=pl.BlockSpec((1, HW, Cin), lambda n: (n, 0, 0)),
        scratch_shapes=[pltpu.VMEM((H + 2, W + 2, Pp), jnp.bfloat16)],
        compiler_params=pltpu.CompilerParams(
            dimension_semantics=("parallel",),
            vmem_limit_bytes=vmem_limit),
    )(x3, w1, b1, w2, b2, w3, b3)
    return out.reshape(N, H, W, Cin)


# ------------------------- pure-JAX reference --------------------------------
def bottleneck_ref(x, w1f, b1, w2f, b2, w3f, b3):
    """Mirrors the kernel numerics: BN scale folded into HWIO bf16 weights,
    bf16 conv inputs (incl. the bf16-rounded identity), f32 accumulation."""
    dn = ("NHWC", "HWIO", "NHWC")
    bf, f32 = jnp.bfloat16, jnp.float32
    xb = x.astype(bf)
    y = lax.conv_general_dilated(xb, w1f, (1, 1), "VALID",
                                 dimension_numbers=dn, preferred_element_type=f32)
    y = jnp.maximum(y + b1, 0.0)
    y = lax.conv_general_dilated(y.astype(bf), w2f, (1, 1), [(1, 1), (1, 1)],
                                 dimension_numbers=dn, preferred_element_type=f32)
    y = jnp.maximum(y + b2, 0.0)
    y = lax.conv_general_dilated(y.astype(bf), w3f, (1, 1), "VALID",
                                 dimension_numbers=dn, preferred_element_type=f32)
    return jnp.maximum(y + b3 + xb.astype(f32), 0.0)


def fold_bn(key, c, eps=1e-5):
    k1, k2, k3, k4 = jax.random.split(key, 4)
    gamma = 1.0 + 0.1 * jax.random.normal(k1, (c,), jnp.float32)
    beta = 0.1 * jax.random.normal(k2, (c,), jnp.float32)
    mean = 0.1 * jax.random.normal(k3, (c,), jnp.float32)
    var = jnp.abs(jax.random.normal(k4, (c,), jnp.float32)) + 1.0
    scale = gamma / jnp.sqrt(var + eps)
    bias = beta - mean * scale
    return scale, bias


def _pad_axis(a, axis, size):
    pad = [(0, 0)] * a.ndim
    pad[axis] = (0, size - a.shape[axis])
    return jnp.pad(a, pad)


if __name__ == "__main__":
    # Small shapes: batch=2, planes=32, in_planes = expansion*planes = 128
    # (lane-dense channels), spatial 16x16, stride=1, downsample=None.
    N, H, W = 2, 16, 16
    planes = 32
    expansion = 4
    in_planes = expansion * planes        # 128
    out_planes = expansion * planes       # 128
    Pp = ((planes + 127) // 128) * 128    # planes lane-padded to 128

    key = jax.random.PRNGKey(0)
    kx, kw1, kw2, kw3, kb1, kb2, kb3 = jax.random.split(key, 7)

    x = jax.random.normal(kx, (N, H, W, in_planes), jnp.float32)        # NHWC

    # Conv weights in HWIO (1x1, 3x3, 1x1), bias=False (matches nn.Conv2d).
    w1_hwio = 0.2 * jax.random.normal(kw1, (1, 1, in_planes, planes), jnp.float32)
    w2_hwio = 0.2 * jax.random.normal(kw2, (3, 3, planes, planes), jnp.float32)
    w3_hwio = 0.2 * jax.random.normal(kw3, (1, 1, planes, out_planes), jnp.float32)

    s1, b1 = fold_bn(kb1, planes)
    s2, b2 = fold_bn(kb2, planes)
    s3, b3 = fold_bn(kb3, out_planes)

    # Fold BN scale into the conv weights (per output channel); bf16 for MXU.
    w1f_hwio = (w1_hwio * s1).astype(jnp.bfloat16)
    w2f_hwio = (w2_hwio * s2).astype(jnp.bfloat16)
    w3f_hwio = (w3_hwio * s3).astype(jnp.bfloat16)

    # Kernel-friendly forms, planes zero-padded to Pp so all conv2
    # intermediates are full 128-lane vregs (padded channels stay exactly 0):
    #   w1: (Cin, Pp)   w2: (9, Pp, Pp) tap-major (kh, kw)   w3: (Pp, Cin)
    w1m = _pad_axis(w1f_hwio.reshape(in_planes, planes), 1, Pp)
    w2m = _pad_axis(_pad_axis(w2f_hwio.reshape(9, planes, planes), 1, Pp), 2, Pp)
    w3m = _pad_axis(w3f_hwio.reshape(planes, out_planes), 0, Pp)
    b1m = _pad_axis(b1.reshape(1, -1).astype(jnp.float32), 1, Pp)
    b2m = _pad_axis(b2.reshape(1, -1).astype(jnp.float32), 1, Pp)
    b3m = b3.reshape(1, -1).astype(jnp.float32)

    out = bottleneck_pallas(x, w1m, b1m, w2m, b2m, w3m, b3m)
    out = jax.block_until_ready(out)

    ref = bottleneck_ref(x, w1f_hwio, b1, w2f_hwio, b2, w3f_hwio, b3)
    ref = jax.block_until_ready(ref)

    assert out.shape == (N, H, W, in_planes)
    max_err = float(jnp.max(jnp.abs(out - ref)))
    # bf16 MXU inputs on both sides -> tolerance validates bf16-vs-bf16 math.
    assert jnp.allclose(out, ref, atol=5e-2, rtol=5e-2), max_err

    print("KERNEL_OK")
</pallas_src>

<mosaic_0001>
module attributes {stable_mosaic.version = 11 : i64} {
  func.func @bottleneck_kernel(%arg0: i32, %arg1: memref<1x256x128xbf16, #tpu.memory_space<vmem>>, %arg2: memref<128x128xbf16, #tpu.memory_space<vmem>>, %arg3: memref<1x128xf32, #tpu.memory_space<vmem>>, %arg4: memref<9x128x128xbf16, #tpu.memory_space<vmem>>, %arg5: memref<1x128xf32, #tpu.memory_space<vmem>>, %arg6: memref<128x128xbf16, #tpu.memory_space<vmem>>, %arg7: memref<1x128xf32, #tpu.memory_space<vmem>>, %arg8: memref<1x256x128xf32, #tpu.memory_space<vmem>>, %arg9: memref<18x18x128xbf16, #tpu.memory_space<vmem>>) attributes {dimension_semantics = [#tpu.dimension_semantics<parallel>], iteration_bounds = array<i64: 2>, scalar_prefetch = 0 : i64, scratch_operands = 1 : i64, tpu.core_type = #tpu.core_type<tc>, window_params = [{transform_indices = @transform_0, window_bounds = array<i64: 1, 256, 128>}, {pipeline_mode = #tpu.pipeline_mode<synchronous>, transform_indices = @transform_1, window_bounds = array<i64: 128, 128>}, {pipeline_mode = #tpu.pipeline_mode<synchronous>, transform_indices = @transform_2, window_bounds = array<i64: 1, 128>}, {pipeline_mode = #tpu.pipeline_mode<synchronous>, transform_indices = @transform_3, window_bounds = array<i64: 9, 128, 128>}, {pipeline_mode = #tpu.pipeline_mode<synchronous>, transform_indices = @transform_4, window_bounds = array<i64: 1, 128>}, {pipeline_mode = #tpu.pipeline_mode<synchronous>, transform_indices = @transform_5, window_bounds = array<i64: 128, 128>}, {pipeline_mode = #tpu.pipeline_mode<synchronous>, transform_indices = @transform_6, window_bounds = array<i64: 1, 128>}, {transform_indices = @transform_7, window_bounds = array<i64: 1, 256, 128>}]} {
    %c0 = arith.constant 0 : index
    %c0_0 = arith.constant 0 : index
    %c0_1 = arith.constant 0 : index
    %0 = vector.load %arg1[%c0, %c0_0, %c0_1] : memref<1x256x128xbf16, #tpu.memory_space<vmem>>, vector<1x256x128xbf16>
    %1 = vector.shape_cast %0 : vector<1x256x128xbf16> to vector<256x128xbf16>
    %c0_2 = arith.constant 0 : index
    %c0_3 = arith.constant 0 : index
    %2 = vector.load %arg2[%c0_2, %c0_3] : memref<128x128xbf16, #tpu.memory_space<vmem>>, vector<128x128xbf16>
    %cst = arith.constant dense<0.000000e+00> : vector<256x128xf32>
    %3 = tpu.matmul %1, %2, %cst {dimension_numbers = #tpu.dot_dimension_numbers<[1], [0], [0], [1], [0, 0, 1, 1], [], []>} : vector<256x128xbf16>, vector<128x128xbf16>, vector<256x128xf32> -> vector<256x128xf32>
    %c0_4 = arith.constant 0 : index
    %c0_5 = arith.constant 0 : index
    %4 = vector.load %arg3[%c0_4, %c0_5] : memref<1x128xf32, #tpu.memory_space<vmem>>, vector<1x128xf32>
    %5 = vector.broadcast %4 : vector<1x128xf32> to vector<256x128xf32>
    %6 = arith.addf %3, %5 : vector<256x128xf32>
    %cst_6 = arith.constant 0.000000e+00 : f32
    %7 = vector.broadcast %cst_6 : f32 to vector<256x128xf32>
    %8 = arith.maximumf %6, %7 : vector<256x128xf32>
    %9 = arith.truncf %8 : vector<256x128xf32> to vector<256x128xbf16>
    %cst_7 = arith.constant 0.000000e+00 : bf16
    %10 = vector.broadcast %cst_7 : bf16 to vector<1x18x128xbf16>
    %cst_8 = arith.constant 0.000000e+00 : bf16
    %11 = vector.broadcast %cst_8 : bf16 to vector<16x1x128xbf16>
    %c0_9 = arith.constant 0 : index
    %c0_10 = arith.constant 0 : index
    %c0_11 = arith.constant 0 : index
    %12 = vector.load %arg9[%c0_9, %c0_10, %c0_11] : memref<18x18x128xbf16, #tpu.memory_space<vmem>>, vector<1x18x128xbf16>
    tpu.vector_store %arg9[%c0_9, %c0_10, %c0_11], %10 {strides = array<i32>} : memref<18x18x128xbf16, #tpu.memory_space<vmem>>, vector<1x18x128xbf16>,
    %c17 = arith.constant 17 : index
    %c0_12 = arith.constant 0 : index
    %c0_13 = arith.constant 0 : index
    %13 = vector.load %arg9[%c17, %c0_12, %c0_13] : memref<18x18x128xbf16, #tpu.memory_space<vmem>>, vector<1x18x128xbf16>
    tpu.vector_store %arg9[%c17, %c0_12, %c0_13], %10 {strides = array<i32>} : memref<18x18x128xbf16, #tpu.memory_space<vmem>>, vector<1x18x128xbf16>,
    %c1 = arith.constant 1 : index
    %c0_14 = arith.constant 0 : index
    %c0_15 = arith.constant 0 : index
    %14 = vector.load %arg9[%c1, %c0_14, %c0_15] : memref<18x18x128xbf16, #tpu.memory_space<vmem>>, vector<16x1x128xbf16>
    tpu.vector_store %arg9[%c1, %c0_14, %c0_15], %11 {strides = array<i32>} : memref<18x18x128xbf16, #tpu.memory_space<vmem>>, vector<16x1x128xbf16>,
    %c1_16 = arith.constant 1 : index
    %c17_17 = arith.constant 17 : index
    %c0_18 = arith.constant 0 : index
    %15 = vector.load %arg9[%c1_16, %c17_17, %c0_18] : memref<18x18x128xbf16, #tpu.memory_space<vmem>>, vector<16x1x128xbf16>
    tpu.vector_store %arg9[%c1_16, %c17_17, %c0_18], %11 {strides = array<i32>} : memref<18x18x128xbf16, #tpu.memory_space<vmem>>, vector<16x1x128xbf16>,
    %16 = vector.shape_cast %9 : vector<256x128xbf16> to vector<16x16x128xbf16>
    %c1_19 = arith.constant 1 : index
    %c1_20 = arith.constant 1 : index
    %c0_21 = arith.constant 0 : index
    %17 = vector.load %arg9[%c1_19, %c1_20, %c0_21] : memref<18x18x128xbf16, #tpu.memory_space<vmem>>, vector<16x16x128xbf16>
    tpu.vector_store %arg9[%c1_19, %c1_20, %c0_21], %16 {strides = array<i32>} : memref<18x18x128xbf16, #tpu.memory_space<vmem>>, vector<16x16x128xbf16>,
    %cst_22 = arith.constant 0.000000e+00 : f32
    %18 = vector.broadcast %cst_22 : f32 to vector<256x128xf32>
    %c0_23 = arith.constant 0 : index
    %c0_24 = arith.constant 0 : index
    %c0_25 = arith.constant 0 : index
    %19 = vector.load %arg9[%c0_23, %c0_24, %c0_25] : memref<18x18x128xbf16, #tpu.memory_space<vmem>>, vector<16x16x128xbf16>
    %20 = vector.shape_cast %19 : vector<16x16x128xbf16> to vector<256x128xbf16>
    %c0_26 = arith.constant 0 : index
    %c0_27 = arith.constant 0 : index
    %c0_28 = arith.constant 0 : index
    %21 = vector.load %arg4[%c0_26, %c0_27, %c0_28] : memref<9x128x128xbf16, #tpu.memory_space<vmem>>, vector<1x128x128xbf16>
    %22 = vector.shape_cast %21 : vector<1x128x128xbf16> to vector<128x128xbf16>
    %cst_29 = arith.constant dense<0.000000e+00> : vector<256x128xf32>
    %23 = tpu.matmul %20, %22, %cst_29 {dimension_numbers = #tpu.dot_dimension_numbers<[1], [0], [0], [1], [0, 0, 1, 1], [], []>} : vector<256x128xbf16>, vector<128x128xbf16>, vector<256x128xf32> -> vector<256x128xf32>
    %24 = arith.addf %18, %23 : vector<256x128xf32>
    %c0_30 = arith.constant 0 : index
    %c1_31 = arith.constant 1 : index
    %c0_32 = arith.constant 0 : index
    %25 = vector.load %arg9[%c0_30, %c1_31, %c0_32] : memref<18x18x128xbf16, #tpu.memory_space<vmem>>, vector<16x16x128xbf16>
    %26 = vector.shape_cast %25 : vector<16x16x128xbf16> to vector<256x128xbf16>
    %c1_33 = arith.constant 1 : index
    %c0_34 = arith.constant 0 : index
    %c0_35 = arith.constant 0 : index
    %27 = vector.load %arg4[%c1_33, %c0_34, %c0_35] : memref<9x128x128xbf16, #tpu.memory_space<vmem>>, vector<1x128x128xbf16>
    %28 = vector.shape_cast %27 : vector<1x128x128xbf16> to vector<128x128xbf16>
    %cst_36 = arith.constant dense<0.000000e+00> : vector<256x128xf32>
    %29 = tpu.matmul %26, %28, %cst_36 {dimension_numbers = #tpu.dot_dimension_numbers<[1], [0], [0], [1], [0, 0, 1, 1], [], []>} : vector<256x128xbf16>, vector<128x128xbf16>, vector<256x128xf32> -> vector<256x128xf32>
    %30 = arith.addf %24, %29 : vector<256x128xf32>
    %c0_37 = arith.constant 0 : index
    %c2 = arith.constant 2 : index
    %c0_38 = arith.constant 0 : index
    %31 = vector.load %arg9[%c0_37, %c2, %c0_38] : memref<18x18x128xbf16, #tpu.memory_space<vmem>>, vector<16x16x128xbf16>
    %32 = vector.shape_cast %31 : vector<16x16x128xbf16> to vector<256x128xbf16>
    %c2_39 = arith.constant 2 : index
    %c0_40 = arith.constant 0 : index
    %c0_41 = arith.constant 0 : index
    %33 = vector.load %arg4[%c2_39, %c0_40, %c0_41] : memref<9x128x128xbf16, #tpu.memory_space<vmem>>, vector<1x128x128xbf16>
    %34 = vector.shape_cast %33 : vector<1x128x128xbf16> to vector<128x128xbf16>
    %cst_42 = arith.constant dense<0.000000e+00> : vector<256x128xf32>
    %35 = tpu.matmul %32, %34, %cst_42 {dimension_numbers = #tpu.dot_dimension_numbers<[1], [0], [0], [1], [0, 0, 1, 1], [], []>} : vector<256x128xbf16>, vector<128x128xbf16>, vector<256x128xf32> -> vector<256x128xf32>
    %36 = arith.addf %30, %35 : vector<256x128xf32>
    %c1_43 = arith.constant 1 : index
    %c0_44 = arith.constant 0 : index
    %c0_45 = arith.constant 0 : index
    %37 = vector.load %arg9[%c1_43, %c0_44, %c0_45] : memref<18x18x128xbf16, #tpu.memory_space<vmem>>, vector<16x16x128xbf16>
    %38 = vector.shape_cast %37 : vector<16x16x128xbf16> to vector<256x128xbf16>
    %c3 = arith.constant 3 : index
    %c0_46 = arith.constant 0 : index
    %c0_47 = arith.constant 0 : index
    %39 = vector.load %arg4[%c3, %c0_46, %c0_47] : memref<9x128x128xbf16, #tpu.memory_space<vmem>>, vector<1x128x128xbf16>
    %40 = vector.shape_cast %39 : vector<1x128x128xbf16> to vector<128x128xbf16>
    %cst_48 = arith.constant dense<0.000000e+00> : vector<256x128xf32>
    %41 = tpu.matmul %38, %40, %cst_48 {dimension_numbers = #tpu.dot_dimension_numbers<[1], [0], [0], [1], [0, 0, 1, 1], [], []>} : vector<256x128xbf16>, vector<128x128xbf16>, vector<256x128xf32> -> vector<256x128xf32>
    %42 = arith.addf %36, %41 : vector<256x128xf32>
    %c1_49 = arith.constant 1 : index
    %c1_50 = arith.constant 1 : index
    %c0_51 = arith.constant 0 : index
    %43 = vector.load %arg9[%c1_49, %c1_50, %c0_51] : memref<18x18x128xbf16, #tpu.memory_space<vmem>>, vector<16x16x128xbf16>
    %44 = vector.shape_cast %43 : vector<16x16x128xbf16> to vector<256x128xbf16>
    %c4 = arith.constant 4 : index
    %c0_52 = arith.constant 0 : index
    %c0_53 = arith.constant 0 : index
    %45 = vector.load %arg4[%c4, %c0_52, %c0_53] : memref<9x128x128xbf16, #tpu.memory_space<vmem>>, vector<1x128x128xbf16>
    %46 = vector.shape_cast %45 : vector<1x128x128xbf16> to vector<128x128xbf16>
    %cst_54 = arith.constant dense<0.000000e+00> : vector<256x128xf32>
    %47 = tpu.matmul %44, %46, %cst_54 {dimension_numbers = #tpu.dot_dimension_numbers<[1], [0], [0], [1], [0, 0, 1, 1], [], []>} : vector<256x128xbf16>, vector<128x128xbf16>, vector<256x128xf32> -> vector<256x128xf32>
    %48 = arith.addf %42, %47 : vector<256x128xf32>
    %c1_55 = arith.constant 1 : index
    %c2_56 = arith.constant 2 : index
    %c0_57 = arith.constant 0 : index
    %49 = vector.load %arg9[%c1_55, %c2_56, %c0_57] : memref<18x18x128xbf16, #tpu.memory_space<vmem>>, vector<16x16x128xbf16>
    %50 = vector.shape_cast %49 : vector<16x16x128xbf16> to vector<256x128xbf16>
    %c5 = arith.constant 5 : index
    %c0_58 = arith.constant 0 : index
    %c0_59 = arith.constant 0 : index
    %51 = vector.load %arg4[%c5, %c0_58, %c0_59] : memref<9x128x128xbf16, #tpu.memory_space<vmem>>, vector<1x128x128xbf16>
    %52 = vector.shape_cast %51 : vector<1x128x128xbf16> to vector<128x128xbf16>
    %cst_60 = arith.constant dense<0.000000e+00> : vector<256x128xf32>
    %53 = tpu.matmul %50, %52, %cst_60 {dimension_numbers = #tpu.dot_dimension_numbers<[1], [0], [0], [1], [0, 0, 1, 1], [], []>} : vector<256x128xbf16>, vector<128x128xbf16>, vector<256x128xf32> -> vector<256x128xf32>
    %54 = arith.addf %48, %53 : vector<256x128xf32>
    %c2_61 = arith.constant 2 : index
    %c0_62 = arith.constant 0 : index
    %c0_63 = arith.constant 0 : index
    %55 = vector.load %arg9[%c2_61, %c0_62, %c0_63] : memref<18x18x128xbf16, #tpu.memory_space<vmem>>, vector<16x16x128xbf16>
    %56 = vector.shape_cast %55 : vector<16x16x128xbf16> to vector<256x128xbf16>
    %c6 = arith.constant 6 : index
    %c0_64 = arith.constant 0 : index
    %c0_65 = arith.constant 0 : index
    %57 = vector.load %arg4[%c6, %c0_64, %c0_65] : memref<9x128x128xbf16, #tpu.memory_space<vmem>>, vector<1x128x128xbf16>
    %58 = vector.shape_cast %57 : vector<1x128x128xbf16> to vector<128x128xbf16>
    %cst_66 = arith.constant dense<0.000000e+00> : vector<256x128xf32>
    %59 = tpu.matmul %56, %58, %cst_66 {dimension_numbers = #tpu.dot_dimension_numbers<[1], [0], [0], [1], [0, 0, 1, 1], [], []>} : vector<256x128xbf16>, vector<128x128xbf16>, vector<256x128xf32> -> vector<256x128xf32>
    %60 = arith.addf %54, %59 : vector<256x128xf32>
    %c2_67 = arith.constant 2 : index
    %c1_68 = arith.constant 1 : index
    %c0_69 = arith.constant 0 : index
    %61 = vector.load %arg9[%c2_67, %c1_68, %c0_69] : memref<18x18x128xbf16, #tpu.memory_space<vmem>>, vector<16x16x128xbf16>
    %62 = vector.shape_cast %61 : vector<16x16x128xbf16> to vector<256x128xbf16>
    %c7 = arith.constant 7 : index
    %c0_70 = arith.constant 0 : index
    %c0_71 = arith.constant 0 : index
    %63 = vector.load %arg4[%c7, %c0_70, %c0_71] : memref<9x128x128xbf16, #tpu.memory_space<vmem>>, vector<1x128x128xbf16>
    %64 = vector.shape_cast %63 : vector<1x128x128xbf16> to vector<128x128xbf16>
    %cst_72 = arith.constant dense<0.000000e+00> : vector<256x128xf32>
    %65 = tpu.matmul %62, %64, %cst_72 {dimension_numbers = #tpu.dot_dimension_numbers<[1], [0], [0], [1], [0, 0, 1, 1], [], []>} : vector<256x128xbf16>, vector<128x128xbf16>, vector<256x128xf32> -> vector<256x128xf32>
    %66 = arith.addf %60, %65 : vector<256x128xf32>
    %c2_73 = arith.constant 2 : index
    %c2_74 = arith.constant 2 : index
    %c0_75 = arith.constant 0 : index
    %67 = vector.load %arg9[%c2_73, %c2_74, %c0_75] : memref<18x18x128xbf16, #tpu.memory_space<vmem>>, vector<16x16x128xbf16>
    %68 = vector.shape_cast %67 : vector<16x16x128xbf16> to vector<256x128xbf16>
    %c8 = arith.constant 8 : index
    %c0_76 = arith.constant 0 : index
    %c0_77 = arith.constant 0 : index
    %69 = vector.load %arg4[%c8, %c0_76, %c0_77] : memref<9x128x128xbf16, #tpu.memory_space<vmem>>, vector<1x128x128xbf16>
    %70 = vector.shape_cast %69 : vector<1x128x128xbf16> to vector<128x128xbf16>
    %cst_78 = arith.constant dense<0.000000e+00> : vector<256x128xf32>
    %71 = tpu.matmul %68, %70, %cst_78 {dimension_numbers = #tpu.dot_dimension_numbers<[1], [0], [0], [1], [0, 0, 1, 1], [], []>} : vector<256x128xbf16>, vector<128x128xbf16>, vector<256x128xf32> -> vector<256x128xf32>
    %72 = arith.addf %66, %71 : vector<256x128xf32>
    %c0_79 = arith.constant 0 : index
    %c0_80 = arith.constant 0 : index
    %73 = vector.load %arg5[%c0_79, %c0_80] : memref<1x128xf32, #tpu.memory_space<vmem>>, vector<1x128xf32>
    %74 = vector.broadcast %73 : vector<1x128xf32> to vector<256x128xf32>
    %75 = arith.addf %72, %74 : vector<256x128xf32>
    %cst_81 = arith.constant 0.000000e+00 : f32
    %76 = vector.broadcast %cst_81 : f32 to vector<256x128xf32>
    %77 = arith.maximumf %75, %76 : vector<256x128xf32>
    %78 = arith.truncf %77 : vector<256x128xf32> to vector<256x128xbf16>
    %c0_82 = arith.constant 0 : index
    %c0_83 = arith.constant 0 : index
    %79 = vector.load %arg6[%c0_82, %c0_83] : memref<128x128xbf16, #tpu.memory_space<vmem>>, vector<128x128xbf16>
    %cst_84 = arith.constant dense<0.000000e+00> : vector<256x128xf32>
    %80 = tpu.matmul %78, %79, %cst_84 {dimension_numbers = #tpu.dot_dimension_numbers<[1], [0], [0], [1], [0, 0, 1, 1], [], []>} : vector<256x128xbf16>, vector<128x128xbf16>, vector<256x128xf32> -> vector<256x128xf32>
    %c0_85 = arith.constant 0 : index
    %c0_86 = arith.constant 0 : index
    %81 = vector.load %arg7[%c0_85, %c0_86] : memref<1x128xf32, #tpu.memory_space<vmem>>, vector<1x128xf32>
    %82 = vector.broadcast %81 : vector<1x128xf32> to vector<256x128xf32>
    %83 = arith.addf %80, %82 : vector<256x128xf32>
    %84 = arith.extf %1 : vector<256x128xbf16> to vector<256x128xf32>
    %85 = arith.addf %83, %84 : vector<256x128xf32>
    %cst_87 = arith.constant 0.000000e+00 : f32
    %86 = vector.broadcast %cst_87 : f32 to vector<256x128xf32>
    %87 = arith.maximumf %85, %86 : vector<256x128xf32>
    %88 = vector.shape_cast %87 : vector<256x128xf32> to vector<1x256x128xf32>
    %c0_88 = arith.constant 0 : index
    %c0_89 = arith.constant 0 : index
    %c0_90 = arith.constant 0 : index
    %89 = vector.load %arg8[%c0_88, %c0_89, %c0_90] : memref<1x256x128xf32, #tpu.memory_space<vmem>>, vector<1x256x128xf32>
    tpu.vector_store %arg8[%c0_88, %c0_89, %c0_90], %88 {strides = array<i32>} : memref<1x256x128xf32, #tpu.memory_space<vmem>>, vector<1x256x128xf32>,
    return
  }
  func.func @transform_0(%arg0: i32) -> (i32, i32, i32) {
    %c0_i32 = arith.constant 0 : i32
    %c0_i32_0 = arith.constant 0 : i32
    %c0_i32_1 = arith.constant 0 : i32
    return %arg0, %c0_i32, %c0_i32_0 : i32, i32, i32
  }
  func.func @transform_1(%arg0: i32) -> (i32, i32) {
    %c0_i32 = arith.constant 0 : i32
    %c0_i32_0 = arith.constant 0 : i32
    %c0_i32_1 = arith.constant 0 : i32
    return %c0_i32, %c0_i32_0 : i32, i32
  }
  func.func @transform_2(%arg0: i32) -> (i32, i32) {
    %c0_i32 = arith.constant 0 : i32
    %c0_i32_0 = arith.constant 0 : i32
    %c0_i32_1 = arith.constant 0 : i32
    return %c0_i32, %c0_i32_0 : i32, i32
  }
  func.func @transform_3(%arg0: i32) -> (i32, i32, i32) {
    %c0_i32 = arith.constant 0 : i32
    %c0_i32_0 = arith.constant 0 : i32
    %c0_i32_1 = arith.constant 0 : i32
    %c0_i32_2 = arith.constant 0 : i32
    return %c0_i32, %c0_i32_0, %c0_i32_1 : i32, i32, i32
  }
  func.func @transform_4(%arg0: i32) -> (i32, i32) {
    %c0_i32 = arith.constant 0 : i32
    %c0_i32_0 = arith.constant 0 : i32
    %c0_i32_1 = arith.constant 0 : i32
    return %c0_i32, %c0_i32_0 : i32, i32
  }
  func.func @transform_5(%arg0: i32) -> (i32, i32) {
    %c0_i32 = arith.constant 0 : i32
    %c0_i32_0 = arith.constant 0 : i32
    %c0_i32_1 = arith.constant 0 : i32
    return %c0_i32, %c0_i32_0 : i32, i32
  }
  func.func @transform_6(%arg0: i32) -> (i32, i32) {
    %c0_i32 = arith.constant 0 : i32
    %c0_i32_0 = arith.constant 0 : i32
    %c0_i32_1 = arith.constant 0 : i32
    return %c0_i32, %c0_i32_0 : i32, i32
  }
  func.func @transform_7(%arg0: i32) -> (i32, i32, i32) {
    %c0_i32 = arith.constant 0 : i32
    %c0_i32_0 = arith.constant 0 : i32
    %c0_i32_1 = arith.constant 0 : i32
    return %arg0, %c0_i32, %c0_i32_0 : i32, i32, i32
  }
}

</mosaic_0001>

<bundles_post_ra>
// kernel: tpu_custom_call.1
= control target key start
LH: loop header
LB: loop body
LE: loop exit
PB: predicated region body
PF: predicated region fallthrough
CT: control target
= control target key end

     0   :  { %12 = vsyncpa [#allocation4], 0  ;;  %s10604_s0 = inlined_call_operand.hbm [shape: bf16[2,256,128], index: 0, kind: input, shape index: {}]   ;;  %s10605_s1 = inlined_call_operand.hbm [shape: bf16[128,128], index: 1, kind: input, shape index: {}]   ;;  %s10606_s2 = inlined_call_operand.vmem [shape: f32[1,128], index: 2, kind: input, shape index: {}]   ;;  %s10607_s3 = inlined_call_operand.hbm [shape: bf16[9,128,128], index: 3, kind: input, shape index: {}]   ;;  %s10608_s4 = inlined_call_operand.vmem [shape: f32[1,128], index: 4, kind: input, shape index: {}]   ;;  %s10609_s5 = inlined_call_operand.hbm [shape: bf16[128,128], index: 5, kind: input, shape index: {}]   ;;  %s10610_s6 = inlined_call_operand.vmem [shape: f32[1,128], index: 6, kind: input, shape index: {}]   ;;  %s10611_s7 = inlined_call_operand.hbm [shape: f32[2,256,128], index: 7, kind: output, shape index: {}]  }
   0x1   :  { %14 = vsyncpa [#allocation4 + $0x1], 0 }
   0x2   :  { %15 = vsyncpa [#allocation7], 0 }
   0x3   :  { %16 = vsyncpa [#allocation10], 0 }
   0x4   :  { %17 = vsyncpa [#allocation5], 0 }
   0x5   :  { %19 = vsyncpa [#allocation5 + $0x1], 0  ;;  %s8752_s24 = smov 0   ;;  %s8754_s25 = smov 0  }
   0x6   :  { %s8756_s26 = smov 0   ;;  %s8758_s27 = smov 0  }
   0x7 LB: > { %s8773_s28 = sadd.s32 4294967295, %s8700_s27   ;;  %s6746_s29 = sadd.s32 4294967294, %s8700_s27   ;;  %s8700_s27 = sphi %s8758_s27, %s10736_s27   ;;  %s8696_s26 = sphi %s8756_s26, %s10735_s26   ;;  %s8692_s25 = sphi %s8754_s25, %s10734_s25   ;;  %s8688_s24 = sphi %s8752_s24, %s10733_s24  }
   0x8   : > { %p45_p0 = scmp.ne.s32.totalorder %s8692_s25, %s8688_s24  ;;  %p10612_p1 = scmp.eq.s32.totalorder %s8773_s28, 0 }
   0x9   : > { %p201_p3 = scmp.eq.s32.totalorder %s6746_s29, 1  ;;  %p6747_p5 = scmp.ge.s32.totalorder %s8700_s27, 1 }
   0xa   : > { %p8782_p4 = por %p10612_p1, %p45_p0  ;;  %p208_p7 = scmp.lt.s32.totalorder %s8700_s27, 3 }
   0xb   : > { %p8787_p6 = por %p201_p3, %p45_p0  ;;  %s8702_s10 = smov [#allocation6]  }
   0xc   : > { %s10637_s30 = scalar_select %p8782_p4, 1, 0 }
   0xd   : > { %s10638_s8 = scalar_select %p8787_p6, 1, 0 }
   0xe   : > { %p8792_p8 = pnand %p6747_p5, %p208_p7  ;;  %s220_s11 = sshll.u32 %s8702_s10, 4  ;;  %s8796_s11 = int_to_ptr.vmem [resolvable:$true] %s220_s11 }
   0xf   : > { %10639 = sst [smem:[#allocation16_spill]] %s10638_s8  ;;  %s8703_s13 = smov [#allocation8]  }
  0x10   : > { %s10640_s9 = scalar_select %p8792_p8, 1, 0 }
  0x11   : > { %p8211_p9 = pneg %p8792_p8  ;;  %s236_s14 = sshll.u32 %s8703_s13, 4  ;;  %s8807_s14 = int_to_ptr.vmem [resolvable:$true] %s236_s14 }
  0x12   : > { %s8704_s15 = smov [#allocation9]   ;;  %s8512_s19 = scalar_lea.hbm %s10605_s1, 1024 }
  0x13   : > { %p8803_p11 = pnand %p8211_p9, %p10612_p1  ;;  %s8809_s16 = sshll.u32 %s8704_s15, 4  ;;  %s253_s16 = int_to_ptr.vmem [resolvable:$true] %s8809_s16 }
  0x14   : > { %p8513_p12 = scmp.ne.s32.totalorder %s10605_s1, %s8512_s19  ;;  %p8519_p5 = scmp.lt.u32.totalorder %s8512_s19, %s10605_s1 }
  0x15   : > { %p8819_p13 = pneg %p8803_p11 }
  0x17   : > { %p8515_p0 = pnand %p8819_p13, %p8513_p12 }
  0x19   : > { %p8516_p3 = pneg %p8515_p0 }
  0x1b   : > { %p8521_p7 = pnand %p8519_p5, %p8516_p3 }
  0x1d   : > { %8524 = shalt.err (!%p8521_p7)
}
  0x1e   : > { %s8525_s10 = scalar_lea.vmem %s8796_s11, 1024  ;;  %p8533_p2 = scmp.lt.s32.totalorder %s8796_s11, %s8796_s11 }
  0x1f   : > { %p8526_p9 = scmp.ne.s32.totalorder %s8796_s11, %s8525_s10  ;;  %p8534_p6 = scmp.lt.s32.totalorder %s8525_s10, %s8525_s10 }
  0x21   : > { %p8528_p10 = pnand %p8526_p9, %p8819_p13  ;;  %p8535_p12 = por %p8534_p6, %p8533_p2 }
  0x23   : > { %p8529_p1 = pneg %p8528_p10 }
  0x25   : > { %p8536_p0 = pnand %p8535_p12, %p8529_p1 }
  0x27   : > { %8539 = shalt.err (!%p8536_p0)
}
  0x28   : > { %s8705_s13 = smov 64   ;;  %s8706_s15 = smov 4  }
  0x29   : > { %8214 = dma.hbm_to_vmem [thread:$0]  (!%p8803_p11), %s10605_s1, 1024, %s8796_s11, [#allocation7], %s8705_s13, %s8705_s13, %s8706_s15  }
  0x2a   : > { %s8540_s21 = scalar_lea.hbm %s10607_s3, 9216 }
  0x2b   : > { %p8541_p1 = scmp.ne.s32.totalorder %s10607_s3, %s8540_s21  ;;  %p8547_p10 = scmp.lt.u32.totalorder %s8540_s21, %s10607_s3 }
  0x2d   : > { %p8543_p2 = pnand %p8541_p1, %p8819_p13 }
  0x2f   : > { %p8544_p6 = pneg %p8543_p2 }
  0x31   : > { %p8549_p3 = pnand %p8547_p10, %p8544_p6 }
  0x33   : > { %8552 = shalt.err (!%p8549_p3)
}
  0x34   : > { %s8553_s11 = scalar_lea.vmem %s8807_s14, 9216  ;;  %p8561_p12 = scmp.lt.s32.totalorder %s8807_s14, %s8807_s14 }
  0x35   : > { %p8554_p5 = scmp.ne.s32.totalorder %s8807_s14, %s8553_s11  ;;  %p8562_p0 = scmp.lt.s32.totalorder %s8553_s11, %s8553_s11 }
  0x37   : > { %p8556_p7 = pnand %p8554_p5, %p8819_p13  ;;  %p8563_p1 = por %p8562_p0, %p8561_p12 }
  0x39   : > { %p8557_p9 = pneg %p8556_p7 }
  0x3b   : > { %p8564_p2 = pnand %p8563_p1, %p8557_p9 }
  0x3d   : > { %8567 = shalt.err (!%p8564_p2)
}
  0x3e   : > { %8217 = dma.hbm_to_vmem [thread:$0]  (!%p8803_p11), %s10607_s3, 9216, %s8807_s14, [#allocation7], %s8705_s13, %s8705_s13, %s8706_s15  }
  0x3f   : > { %s8568_s20 = scalar_lea.hbm %s10609_s5, 1024 }
  0x40   : > { %p8569_p6 = scmp.ne.s32.totalorder %s10609_s5, %s8568_s20  ;;  %p8575_p5 = scmp.lt.u32.totalorder %s8568_s20, %s10609_s5 }
  0x42   : > { %p8571_p10 = pnand %p8569_p6, %p8819_p13 }
  0x44   : > { %p8572_p3 = pneg %p8571_p10 }
  0x46   : > { %p8577_p7 = pnand %p8575_p5, %p8572_p3 }
  0x48   : > { %8580 = shalt.err (!%p8577_p7)
}
  0x49   : > { %s8581_s11 = scalar_lea.vmem %s253_s16, 1024  ;;  %p8589_p1 = scmp.lt.s32.totalorder %s253_s16, %s253_s16 }
  0x4a   : > { %p8582_p9 = scmp.ne.s32.totalorder %s253_s16, %s8581_s11  ;;  %p8590_p2 = scmp.lt.s32.totalorder %s8581_s11, %s8581_s11 }
  0x4c   : > { %p8584_p12 = pnand %p8582_p9, %p8819_p13  ;;  %p8591_p4 = por %p8590_p2, %p8589_p1 }
  0x4e   : > { %p8585_p0 = pneg %p8584_p12 }
  0x50   : > { %p8592_p8 = pnand %p8591_p4, %p8585_p0 }
  0x52   : > { %8595 = shalt.err (!%p8592_p8)
}
  0x53   : > { %8220 = dma.hbm_to_vmem [thread:$0]  (!%p8803_p11), %s10609_s5, 1024, %s253_s16, [#allocation10], %s8705_s13, %s8705_s13, %s8706_s15  }
  0x54   : > { %s8892_s22 = sadd.s32 1, %s8700_s27   ;;  %s32_s17 = sadd.s32 1, %s8696_s26 }
  0x55   : > { %s29_s12 = ssub.s32 %s8700_s27, %s8892_s22  ;;  %p39_p8 = scmp.ne.s32.totalorder %s8696_s26, %s8692_s25 }
  0x56   : > { %p30_p4 = scmp.eq.s32.totalorder %s29_s12, 0  ;;  %p40_p13 = scmp.eq.s32.totalorder %s8700_s27, 0 }
  0x57   : > { %p8232_p6 = scmp.lt.s32.totalorder %s8700_s27, 2  ;;  %p10643_p3 = scmp.eq.s32.totalorder %s8773_s28, 1 }
  0x58   : > { %s8902_s18 = scalar_select %p30_p4, %s8696_s26, %s32_s17  }
  0x59   : > { %p41_p10 = por %p40_p13, %p39_p8  ;;  %p8906_p5 = por %p10643_p3, %p39_p8 }
  0x5a   : > { %s269_s20 = sand.u32 1, %s8696_s26   ;;  %s7097_s21 = sshll.u32 %s8700_s27, 11 }
  0x5b   : > { %s6752_s16 = sshll.u32 %s269_s20, 7  ;;  %s8915_s10 = scalar_lea.hbm %s10604_s0, %s7097_s21 }
  0x5c   : > { %s273_s11 = scalar_lea.vmem [#allocation3], %s6752_s16  ;;  %p8917_p11 = pnand %p8232_p6, %p41_p10 }
  0x5d   : > { %s280_s14 = sshll.u32 %s273_s11, 4  ;;  %s8923_s12 = scalar_lea.sflag [#allocation4], %s269_s20  ;;  %s8921_s14 = int_to_ptr.vmem [resolvable:$true] %s280_s14 }
  0x5e   : > { %s8596_s17 = scalar_lea.hbm %s8915_s10, 2048  ;;  %p8598_p9 = pneg %p8917_p11 }
  0x5f   : > { %p8597_p7 = scmp.ne.s32.totalorder %s8915_s10, %s8596_s17  ;;  %s8601_s23 = scalar_lea.hbm %s10604_s0, 4096 }
  0x60   : > { %p8602_p1 = scmp.lt.u32.totalorder %s8915_s10, %s10604_s0  ;;  %p8603_p2 = scmp.lt.u32.totalorder %s8601_s23, %s8596_s17 }
  0x61   : > { %p8599_p12 = pnand %p8598_p9, %p8597_p7  ;;  %p8605_p8 = scmp.lt.u32.totalorder %s8596_s17, %s8915_s10 }
  0x62   : > { %p8604_p4 = por %p8603_p2, %p8602_p1 }
  0x63   : > { %p8600_p0 = pneg %p8599_p12 }
  0x64   : > { %p8606_p13 = por %p8605_p8, %p8604_p4 }
  0x66   : > { %p8607_p6 = pnand %p8606_p13, %p8600_p0 }
  0x68   : > { %8610 = shalt.err (!%p8607_p6)
}
  0x69   : > { %s8611_s20 = scalar_lea.vmem %s8921_s14, 2048  ;;  %s8707_s21 = smov [#allocation3]  }
  0x6a   : > { %p8612_p10 = scmp.ne.s32.totalorder %s8921_s14, %s8611_s20  ;;  %s8616_s16 = sshll.u32 %s8707_s21, 4  ;;  %s8617_s16 = int_to_ptr.vmem [resolvable:$false] %s8616_s16 }
  0x6b   : > { %s8618_s29 = scalar_lea.vmem %s8617_s16, 4096  ;;  %p8619_p12 = scmp.lt.s32.totalorder %s8921_s14, %s8617_s16 }
  0x6c   : > { %p8614_p3 = pnand %p8612_p10, %p8598_p9  ;;  %p8620_p1 = scmp.lt.s32.totalorder %s8618_s29, %s8611_s20 }
  0x6e   : > { %p8615_p7 = pneg %p8614_p3  ;;  %p8621_p2 = por %p8620_p1, %p8619_p12 }
  0x70   : > { %p8622_p4 = pnand %p8621_p2, %p8615_p7 }
  0x72   : > { %8625 = shalt.err (!%p8622_p4)
}
  0x73   : > { %8224 = dma.hbm_to_vmem [thread:$0]  (!%p8917_p11), %s8915_s10, 2048, %s8921_s14, %s8923_s12, %s8705_s13, %s8705_s13, %s8706_s15  }
  0x74   : > { %p10646_p9 = scmp.ne.s32.totalorder %s10640_s9, 0 }
  0x76   : > { %292 = sbr.rel (%p10646_p9) target bundleno = 1320 (0x528), region = 48 }
  0x7d   : > { %s8957_s17 = sand.u32 1, %s8692_s25   ;;  %p10647_p0 = scmp.ne.s32.totalorder %s10637_s30, 0 }
  0x7e   : > { %s6756_s23 = sshll.u32 %s8957_s17, 7  ;;  %s295_s11 = scalar_lea.sflag [#allocation4], %s8957_s17 }
  0x7f   : > { %s8961_s20 = scalar_lea.vmem [#allocation3], %s6756_s23 }
  0x80   : > { %8671 = dma.done.wait (%p10647_p0), %s295_s11, 2048  }
  0x81   : > { %8673 = vsyncadd (%p10647_p0), %s295_s11, 4294965248  ;;  %p10648_p11 = scmp.eq.s32.totalorder %s8773_s28, 0 }
  0x83   : > { %8675 = dma.done.wait (%p10648_p11), [#allocation7], 10240   ;;  %p10649_p8 = pmov %p10648_p11 }
  0x85   : > { %8677 = vsyncadd (%p10649_p8), [#allocation7], 4294957056  ;;  %p10650_p13 = pmov %p10649_p8 }
  0x86   : > { %p10651_p6 = pmov %p10649_p8 }
  0x87   : > { %8679 = dma.done.wait (%p10650_p13), [#allocation10], 1024  }
  0x88   : > { %8681 = vsyncadd (%p10651_p6), [#allocation10], 4294966272  ;;  %v8277_v0 = vld [vmem:[#allocation6] sm:$0xff]   ;;  %v8278_v1 = vld [vmem:[#allocation6 + $0x8] sm:$0xff]   ;;  %vm758_vm0 = vcmask 1040384   ;;  %v8708_v52 = vmov 0  }
  0x89   : > { %7395 = vmatprep.subr.bf16.mxu0 %v8277_v0  ;;  %v8279_v2 = vld [vmem:[#allocation6 + $0x10] sm:$0xff]   ;;  %v8280_v3 = vld [vmem:[#allocation6 + $0x18] sm:$0xff]   ;;  %v342_v4 = vld [vmem:[%s8961_s20] sm:$0xff]   ;;  %vm759_vm1 = vsmask.f32 256  ;;  %vm1261_vm8 = vcmask 1043456  }
  0x8a   : > { %7396 = vmatpush3.bf16.msra.mxu0 %v8277_v0  ;;  %7411 = vmatprep.mubr.bf16.mxu0 %v342_v4  ;;  %v8281_v5 = vld [vmem:[#allocation6 + $0x20] sm:$0xff]   ;;  %v8282_v6 = vld [vmem:[#allocation6 + $0x28] sm:$0xff]   ;;  %v8283_v7 = vld [vmem:[#allocation6 + $0x30] sm:$0xff]   ;;  %vm809_vm3 = vsmask.f32 7938  ;;  %vm2469_vm12 = vcmask 1042432  }
  0x8b   : > { %7397 = vmatprep.subr.bf16.mxu0 %v8278_v1  ;;  %v8284_v8 = vld [vmem:[#allocation6 + $0x38] sm:$0xff]   ;;  %v344_v9 = vld [vmem:[%s8961_s20 + $0x8] sm:$0xff]   ;;  %v346_v10 = vld [vmem:[%s8961_s20 + $0x10] sm:$0xff]   ;;  %750 = vst [vmem:[#allocation2] sm:$0xf] %v8708_v52  ;;  %vm2470_vm13 = vcmask 1046532  }
  0x8c   : > { %v348_v11 = vld [vmem:[%s8961_s20 + $0x18] sm:$0xff]   ;;  %v350_v12 = vld [vmem:[%s8961_s20 + $0x20] sm:$0xff]   ;;  %v352_v13 = vld [vmem:[%s8961_s20 + $0x28] sm:$0xff]   ;;  %751 = vst [vmem:[#allocation2 + $0x4] sm:$0xf] %v8708_v52  ;;  %s6760_s21 = sshll.u32 %s8957_s17, 8 }
  0x8d   : > { %v354_v14 = vld [vmem:[%s8961_s20 + $0x30] sm:$0xff]   ;;  %v356_v15 = vld [vmem:[%s8961_s20 + $0x38] sm:$0xff]   ;;  %v358_v16 = vld [vmem:[%s8961_s20 + $0x40] sm:$0xff]   ;;  %752 = vst [vmem:[#allocation2 + $0x8] sm:$0x1] %v8708_v52  ;;  %s10477_s16 = scalar_lea.vmem [#allocation11], %s6760_s21 }
  0x8e   : > { %7398 = vmatpush3.bf16.msra.mxu0 %v8278_v1  ;;  %v360_v17 = vld [vmem:[%s8961_s20 + $0x48] sm:$0xff]   ;;  %v362_v18 = vld [vmem:[%s8961_s20 + $0x50] sm:$0xff]   ;;  %v364_v19 = vld [vmem:[%s8961_s20 + $0x58] sm:$0xff]   ;;  %754 = vst [vmem:[#allocation2 + $0xcc] sm:$0xf] %v8708_v52  ;;  %s7130_s29 = sshll.u32 %s8773_s28, 12 }
  0x8f   : > { %7399 = vmatprep.subr.bf16.mxu0 %v8279_v2  ;;  %v366_v20 = vld [vmem:[%s8961_s20 + $0x60] sm:$0xff]   ;;  %v368_v21 = vld [vmem:[%s8961_s20 + $0x68] sm:$0xff]   ;;  %v370_v22 = vld [vmem:[%s8961_s20 + $0x70] sm:$0xff]   ;;  %755 = vst [vmem:[#allocation2 + $0xd0] sm:$0xf] %v8708_v52  ;;  %s6644_s23 = sshll.u32 %s10477_s16, 4  ;;  %s10555_s30 = scalar_lea.hbm %s10611_s7, %s7130_s29  ;;  %s10557_s23 = int_to_ptr.vmem [resolvable:$true] %s6644_s23 }
  0x90   : > { %v372_v23 = vld [vmem:[%s8961_s20 + $0x78] sm:$0xff]   ;;  %v8301_v24 = vld [vmem:[#allocation8 + $0x40] sm:$0xff]   ;;  %vm8992_vm2 = vmand %vm758_vm0, %vm759_vm1  ;;  %756 = vst [vmem:[#allocation2 + $0xd4] sm:$0x1] %v8708_v52  ;;  %vm1439_vm5 = vsmask.f32 3328 }
  0x91   : > { %v764_v26 = vld [vmem:[#allocation2 + $0x18] sm:$0x1]  ;;  %vm8999_vm4 = vmand %vm758_vm0, %vm809_vm3  ;;  %v761_v29 = vld [vmem:[#allocation2 + $0xc] sm:$0x1]  ;;  %vm1440_vm6 = vsmask.f32 7440 }
  0x92   : > { %7400 = vmatpush3.bf16.msra.mxu0 %v8279_v2  ;;  %v765_v27 = vsel %vm8992_vm2, 0, %v764_v26  ;;  %v762_v30 = vsel %vm8992_vm2, 0, %v761_v29  ;;  %v814_v31 = vld [vmem:[#allocation2 + $0x20] sm:$0x1]  ;;  %v811_v33 = vld [vmem:[#allocation2 + $0x14] sm:$0x1]  ;;  %vm9037_vm7 = vmor %vm1439_vm5, %vm1440_vm6 }
  0x93   : > { %7401 = vmatprep.subr.bf16.mxu0 %v8280_v3  ;;  %766 = vst [vmem:[#allocation2 + $0x18] sm:$0x1] %v765_v27  ;;  %763 = vst [vmem:[#allocation2 + $0xc] sm:$0x1] %v762_v30  ;;  %v815_v32 = vsel %vm8999_vm4, 0, %v814_v31  ;;  %v8302_v34 = vld [vmem:[#allocation8 + $0x48] sm:$0xff]  }
  0x94   : > { %816 = vst [vmem:[#allocation2 + $0x20] sm:$0x1] %v815_v32  ;;  %v812_v35 = vsel %vm8999_vm4, 0, %v811_v33  ;;  %v770_v36 = vld [vmem:[#allocation2 + $0x30] sm:$0x1]  ;;  %v8303_v40 = vld [vmem:[#allocation8 + $0x50] sm:$0xff]   ;;  %vm9090_vm10 = vmand %vm1261_vm8, %vm809_vm3 }
  0x95   : > { %813 = vst [vmem:[#allocation2 + $0x14] sm:$0x1] %v812_v35  ;;  %v771_v37 = vsel %vm8992_vm2, 0, %v770_v36  ;;  %v767_v38 = vld [vmem:[#allocation2 + $0x24] sm:$0x1]  ;;  %v8304_v44 = vld [vmem:[#allocation8 + $0x58] sm:$0xff]   ;;  %vm9629_vm14 = vmor %vm2469_vm12, %vm2470_vm13 }
  0x96   : > { %7402 = vmatpush3.bf16.msra.mxu0 %v8280_v3  ;;  %772 = vst [vmem:[#allocation2 + $0x30] sm:$0x1] %v771_v37  ;;  %v768_v39 = vsel %vm8992_vm2, 0, %v767_v38  ;;  %v820_v41 = vld [vmem:[#allocation2 + $0x38] sm:$0x1]  ;;  %v8306_v55 = vld [vmem:[#allocation8 + $0x68] sm:$0xff]  }
  0x97   : > { %7403 = vmatprep.subr.bf16.mxu0 %v8281_v5  ;;  %769 = vst [vmem:[#allocation2 + $0x24] sm:$0x1] %v768_v39  ;;  %v821_v42 = vsel %vm8999_vm4, 0, %v820_v41  ;;  %v817_v43 = vld [vmem:[#allocation2 + $0x2c] sm:$0x1]  ;;  %v8305_v47 = vld [vmem:[#allocation8 + $0x60] sm:$0xff]  }
  0x98   : > { %822 = vst [vmem:[#allocation2 + $0x38] sm:$0x1] %v821_v42  ;;  %v818_v45 = vsel %vm8999_vm4, 0, %v817_v43  ;;  %v776_v46 = vld [vmem:[#allocation2 + $0x48] sm:$0x1]  ;;  %v8307_v57 = vld [vmem:[#allocation8 + $0xc0] sm:$0xff]  }
  0x99   : > { %819 = vst [vmem:[#allocation2 + $0x2c] sm:$0x1] %v818_v45  ;;  %v777_v48 = vsel %vm8992_vm2, 0, %v776_v46  ;;  %v773_v49 = vld [vmem:[#allocation2 + $0x3c] sm:$0x1]  ;;  %v8308_v58 = vld [vmem:[#allocation8 + $0x70] sm:$0xff]   ;;  %7923 = vmatprep.subr.bf16.mxu1 %v8307_v57 }
  0x9a   : > { %7404 = vmatpush3.bf16.msra.mxu0 %v8281_v5  ;;  %778 = vst [vmem:[#allocation2 + $0x48] sm:$0x1] %v777_v48  ;;  %v774_v50 = vsel %vm8992_vm2, 0, %v773_v49  ;;  %v826_v51 = vld [vmem:[#allocation2 + $0x50] sm:$0x1]  ;;  %7931 = vmatpush3.bf16.msra.mxu1 %v8307_v57  ;;  %v8309_v2 = vld [vmem:[#allocation8 + $0xc8] sm:$0xff]  }
  0x9b   : > { %7405 = vmatprep.subr.bf16.mxu0 %v8282_v6  ;;  %775 = vst [vmem:[#allocation2 + $0x3c] sm:$0x1] %v774_v50  ;;  %v827_v53 = vsel %vm8999_vm4, 0, %v826_v51  ;;  %v823_v54 = vld [vmem:[#allocation2 + $0x44] sm:$0x1]  ;;  %7924 = vmatprep.subr.bf16.mxu1 %v8309_v2  ;;  %v8312_v37 = vld [vmem:[#allocation8 + $0xd8] sm:$0xff]  }
  0x9c   : > { %828 = vst [vmem:[#allocation2 + $0x50] sm:$0x1] %v827_v53  ;;  %v824_v56 = vsel %vm8999_vm4, 0, %v823_v54  ;;  %v782_v59 = vld [vmem:[#allocation2 + $0x60] sm:$0x1]  ;;  %v8313_v45 = vld [vmem:[#allocation8 + $0xe0] sm:$0xff]  }
  0x9d   : > { %825 = vst [vmem:[#allocation2 + $0x44] sm:$0x1] %v824_v56  ;;  %v1375_v60 = vld [vmem:[#allocation2] sm:$0xf]  ;;  %v783_v61 = vsel %vm8992_vm2, 0, %v782_v59  ;;  %v8316_v57 = vld [vmem:[#allocation8 + $0xf8] sm:$0xff]  }
  0x9e   : > { %7406 = vmatpush3.bf16.msra.mxu0 %v8282_v6  ;;  %v779_v62 = vld [vmem:[#allocation2 + $0x54] sm:$0x1]  ;;  %v1443_v63 = vshrl.u32 %v1375_v60, 16  ;;  %784 = vst [vmem:[#allocation2 + $0x60] sm:$0x1] %v783_v61  ;;  %7932 = vmatpush3.bf16.msra.mxu1 %v8309_v2  ;;  %v9073_v2 = vld [vmem:[#allocation8 + $0x100] sm:$0xff]  }
  0x9f   : > { %7407 = vmatprep.subr.bf16.mxu0 %v8283_v7  ;;  %v780_v0 = vsel %vm8992_vm2, 0, %v779_v62  ;;  %v832_v1 = vld [vmem:[#allocation2 + $0x68] sm:$0x1]  ;;  %v1376_v3 = vld [vmem:[#allocation2 + $0x4] sm:$0xf]  ;;  %v8310_v6 = vld [vmem:[#allocation8 + $0x78] sm:$0xff]  }
  0xa0   : > { %781 = vst [vmem:[#allocation2 + $0x54] sm:$0x1] %v780_v0  ;;  %v833_v4 = vsel %vm8999_vm4, 0, %v832_v1  ;;  %v829_v5 = vld [vmem:[#allocation2 + $0x5c] sm:$0x1]  ;;  %v8424_v27 = vld [vmem:[#allocation9 + $0x18] sm:$0xff]  }
  0xa1   : > { %834 = vst [vmem:[#allocation2 + $0x68] sm:$0x1] %v833_v4  ;;  %v838_v30 = vld [vmem:[#allocation2 + $0x80] sm:$0x1]  ;;  %v794_v38 = vld [vmem:[#allocation2 + $0x90] sm:$0x1] }
  0xa2   : > { %7408 = vmatpush3.bf16.msra.mxu0 %v8283_v7  ;;  %v830_v7 = vsel %vm8999_vm4, 0, %v829_v5  ;;  %v839_v32 = vsel %vm8999_vm4, 0, %v838_v30  ;;  %v795_v39 = vsel %vm8992_vm2, 0, %v794_v38  ;;  %v844_v41 = vld [vmem:[#allocation2 + $0x98] sm:$0x1]  ;;  %s6631_s28 = scalar_lea.sflag [#allocation5], %s8957_s17 }
  0xa3   : > { %7409 = vmatprep.subr.bf16.mxu0 %v8284_v8  ;;  %831 = vst [vmem:[#allocation2 + $0x5c] sm:$0x1] %v830_v7  ;;  %840 = vst [vmem:[#allocation2 + $0x80] sm:$0x1] %v839_v32  ;;  %v845_v43 = vsel %vm8999_vm4, 0, %v844_v41  ;;  %v9081_v4 = vld [vmem:[#allocation8] sm:$0xff]  }
  0xa4   : > { %796 = vst [vmem:[#allocation2 + $0x90] sm:$0x1] %v795_v39  ;;  %846 = vst [vmem:[#allocation2 + $0x98] sm:$0x1] %v845_v43  ;;  %v800_v48 = vld [vmem:[#allocation2 + $0xa8] sm:$0x1] }
  0xa5   : > { %v801_v49 = vsel %vm8992_vm2, 0, %v800_v48  ;;  %v797_v50 = vld [vmem:[#allocation2 + $0x9c] sm:$0x1]  ;;  %v850_v51 = vld [vmem:[#allocation2 + $0xb0] sm:$0x1]  ;;  %s8626_s9 = scalar_lea.vmem %s10557_s23, 4096 }
  0xa6   : > { %7410 = vmatpush3.bf16.msra.mxu0 %v8284_v8  ;;  %v1423_v8 = vld [vmem:[#allocation2 + $0x8] sm:$0x1]  ;;  %802 = vst [vmem:[#allocation2 + $0xa8] sm:$0x1] %v801_v49  ;;  %v798_v52 = vsel %vm8992_vm2, 0, %v797_v50  ;;  %v851_v53 = vsel %vm8999_vm4, 0, %v850_v51  ;;  %p8627_p10 = scmp.ne.s32.totalorder %s10557_s23, %s8626_s9 }
  0xa7   : > { %7443 = vmatprep.subr.bf16.mxu0 %v8301_v24  ;;  %799 = vst [vmem:[#allocation2 + $0x9c] sm:$0x1] %v798_v52  ;;  %852 = vst [vmem:[#allocation2 + $0xb0] sm:$0x1] %v851_v53  ;;  %v847_v54 = vld [vmem:[#allocation2 + $0xa4] sm:$0x1] }
  0xa8   : > { %v848_v56 = vsel %vm8999_vm4, 0, %v847_v54  ;;  %v856_v62 = vld [vmem:[#allocation2 + $0xc8] sm:$0x1]  ;;  %v853_v0 = vld [vmem:[#allocation2 + $0xbc] sm:$0x1]  ;;  %p8628_p3 = pnand %p8627_p10, %p8906_p5  ;;  %s8709_s13 = smov [#allocation11]  }
  0xa9   : > { %7412 = vmatmul.mubr.bf16.vlgmr.msra.gmra.mrb[0].mxu0 %v344_v9  ;;  %v1445_v9 = vrot.slane %v1443_v63, 4  ;;  %849 = vst [vmem:[#allocation2 + $0xa4] sm:$0x1] %v848_v56  ;;  %v857_v63 = vsel %vm8999_vm4, 0, %v856_v62  ;;  %v854_v1 = vsel %vm8999_vm4, 0, %v853_v0  ;;  %s8630_s15 = sshll.u32 %s8709_s13, 4  ;;  %s8631_s15 = int_to_ptr.vmem [resolvable:$false] %s8630_s15 }
  0xaa   : > { %7415 = vmatprep.mubr.bf16.mxu0 %v346_v10  ;;  %7444 = vmatpush3.bf16.msra.mxu0 %v8301_v24  ;;  %v1446_v10 = vshll.u32 %v1375_v60, 16  ;;  %v8311_v24 = vld [vmem:[#allocation8 + $0xd0] sm:$0xff]   ;;  %v803_v60 = vld [vmem:[#allocation2 + $0xb4] sm:$0x1]  ;;  %858 = vst [vmem:[#allocation2 + $0xc8] sm:$0x1] %v857_v63  ;;  %p8629_p7 = pneg %p8628_p3  ;;  %p8633_p12 = scmp.lt.s32.totalorder %s10557_s23, %s8631_s15 }
  0xab   : > { %7445 = vmatprep.subr.bf16.mxu0 %v8302_v34  ;;  %7925 = vmatprep.subr.bf16.mxu1 %v8311_v24  ;;  %v804_v61 = vsel %vm8992_vm2, 0, %v803_v60  ;;  %855 = vst [vmem:[#allocation2 + $0xbc] sm:$0x1] %v854_v1  ;;  %vm939_vm9 = vsmask.f32 4368  ;;  %s8632_s10 = scalar_lea.vmem %s8631_s15, 8192 }
  0xac   : > { %7933 = vmatpush3.bf16.msra.mxu1 %v8311_v24  ;;  %805 = vst [vmem:[#allocation2 + $0xb4] sm:$0x1] %v804_v61  ;;  %vm9097_vm11 = vmor %vm759_vm1, %vm939_vm9  ;;  %v1274_v49 = vld [vmem:[#allocation2 + $0x20] sm:$0x1]  ;;  %p8634_p1 = scmp.lt.s32.totalorder %s8632_s10, %s8626_s9 }
  0xad   : > { %7926 = vmatprep.subr.bf16.mxu1 %v8312_v37 }
  0xae   : > { %7446 = vmatpush3.bf16.msra.mxu0 %v8302_v34  ;;  %v835_v34 = vld [vmem:[#allocation2 + $0x74] sm:$0x1]  ;;  %p8635_p2 = por %p8634_p1, %p8633_p12 }
  0xaf   : > { %7447 = vmatprep.subr.bf16.mxu0 %v8303_v40  ;;  %v836_v36 = vsel %vm8999_vm4, 0, %v835_v34  ;;  %v1270_v34 = vld [vmem:[#allocation2 + $0x18] sm:$0xf] }
  0xb0   : > { %837 = vst [vmem:[#allocation2 + $0x74] sm:$0x1] %v836_v36  ;;  %7934 = vmatpush3.bf16.msra.mxu1 %v8312_v37  ;;  %p8636_p4 = pnand %p8635_p2, %p8629_p7 }
  0xb1   : > { %7416 = vmatmul.mubr.bf16.gmra.mrb[4].mxu0 %v348_v11  ;;  %v1452_v11 = vshll.u32 %v1376_v3, 16  ;;  %7927 = vmatprep.subr.bf16.mxu1 %v8313_v45 }
  0xb2   : > { %7419 = vmatprep.mubr.bf16.mxu0 %v350_v12  ;;  %7448 = vmatpush3.bf16.msra.mxu0 %v8303_v40  ;;  %v1456_v12 = vshrl.u32 %v1376_v3, 16  ;;  %v791_v40 = vld [vmem:[#allocation2 + $0x84] sm:$0x1]  ;;  %v9079_v3 = vld [vmem:[%s10606_s2] ss:$0 sm:$0xff] }
  0xb3   : > { %7449 = vmatprep.subr.bf16.mxu0 %v8304_v44  ;;  %v792_v42 = vsel %vm8992_vm2, 0, %v791_v40 }
  0xb4   : > { %793 = vst [vmem:[#allocation2 + $0x84] sm:$0x1] %v792_v42  ;;  %7935 = vmatpush3.bf16.msra.mxu1 %v8313_v45  ;;  %v1263_v42 = vld [vmem:[#allocation2 + $0xc] sm:$0xf] }
  0xb6   : > { %7450 = vmatpush3.bf16.msra.mxu0 %v8304_v44  ;;  %v841_v44 = vld [vmem:[#allocation2 + $0x8c] sm:$0x1] }
  0xb7   : > { %7451 = vmatprep.subr.bf16.mxu0 %v8305_v47  ;;  %v842_v46 = vsel %vm8999_vm4, 0, %v841_v44 }
  0xb8   : > { %843 = vst [vmem:[#allocation2 + $0x8c] sm:$0x1] %v842_v46 }
  0xb9   : > { %7420 = vmatmul.mubr.bf16.gmra.mrb[8].mxu0 %v352_v13  ;;  %v1462_v13 = vshll.u32 %v1423_v8, 16 }
  0xba   : > { %7423 = vmatprep.mubr.bf16.mxu0 %v354_v14  ;;  %7452 = vmatpush3.bf16.msra.mxu0 %v8305_v47  ;;  %v1448_v14 = vrot.slane %v1446_v10, 5  ;;  %v8314_v47 = vld [vmem:[#allocation8 + $0xe8] sm:$0xff]  }
  0xbb   : > { %7453 = vmatprep.subr.bf16.mxu0 %v8306_v55  ;;  %7928 = vmatprep.subr.bf16.mxu1 %v8314_v47 }
  0xbc   : > { %7936 = vmatpush3.bf16.msra.mxu1 %v8314_v47 }
  0xbe   : > { %7454 = vmatpush3.bf16.msra.mxu0 %v8306_v55  ;;  %v8315_v55 = vld [vmem:[#allocation8 + $0xf0] sm:$0xff]  }
  0xbf   : > { %7455 = vmatprep.subr.bf16.mxu0 %v8308_v58  ;;  %7929 = vmatprep.subr.bf16.mxu1 %v8315_v55 }
  0xc0   : > { %7937 = vmatpush3.bf16.msra.mxu1 %v8315_v55  ;;  %v1267_v55 = vld [vmem:[#allocation2 + $0x14] sm:$0x1] }
  0xc1   : > { %7424 = vmatmul.mubr.bf16.gmra.mrb[12].mxu0 %v356_v15  ;;  %v1454_v15 = vrot.slane %v1452_v11, 5  ;;  %7930 = vmatprep.subr.bf16.mxu1 %v8316_v57 }
  0xc2   : > { %7427 = vmatprep.mubr.bf16.mxu0 %v358_v16  ;;  %7456 = vmatpush3.bf16.msra.mxu0 %v8308_v58  ;;  %v788_v16 = vld [vmem:[#allocation2 + $0x78] sm:$0x1]  ;;  %v806_v58 = vld [vmem:[#allocation2 + $0xc0] sm:$0x1] }
  0xc3   : > { %7457 = vmatprep.subr.bf16.mxu0 %v8310_v6  ;;  %v807_v59 = vsel %vm8992_vm2, 0, %v806_v58 }
  0xc4   : > { %808 = vst [vmem:[#allocation2 + $0xc0] sm:$0x1] %v807_v59  ;;  %7938 = vmatpush3.bf16.msra.mxu1 %v8316_v57 }
  0xc5   : > { %7635 = vmatprep.subr.bf16.mxu1 %v9073_v2 }
  0xc6   : > { %7458 = vmatpush3.bf16.msra.mxu0 %v8310_v6 }
  0xc7   : > { %7491 = vmatprep.subr.bf16.mxu0 %v9081_v4 }
  0xc9   : > { %7428 = vmatmul.mubr.bf16.gmra.mrb[16].mxu0 %v360_v17  ;;  %v1458_v17 = vrot.slane %v1456_v12, 4 }
  0xca   : > { %7431 = vmatprep.mubr.bf16.mxu0 %v362_v18  ;;  %v789_v18 = vsel %vm8992_vm2, 0, %v788_v16 }
  0xcb   : > { %790 = vst [vmem:[#allocation2 + $0x78] sm:$0x1] %v789_v18 }
  0xd1   : > { %7432 = vmatmul.mubr.bf16.gmra.mrb[20].mxu0 %v364_v19  ;;  %v785_v19 = vld [vmem:[#allocation2 + $0x6c] sm:$0x1] }
  0xd2   : > { %7435 = vmatprep.mubr.bf16.mxu0 %v366_v20  ;;  %v1449_v20 = vor.u32 %v1448_v14, %v1445_v9 }
  0xd4   : > { %v1450_v26 = vrot.slane %v1449_v20, 4 }
  0xd6   : > { %v1455_v31 = vsel %vm9037_vm7, %v1450_v26, %v1454_v15 }
  0xd9   : > { %7436 = vmatmul.mubr.bf16.gmra.mrb[24].mxu0 %v368_v21  ;;  %v786_v21 = vsel %vm8992_vm2, 0, %v785_v19 }
  0xda   : > { %7439 = vmatprep.mubr.bf16.mxu0 %v370_v22  ;;  %v1459_v22 = vor.u32 %v1458_v17, %v1454_v15  ;;  %787 = vst [vmem:[#allocation2 + $0x6c] sm:$0x1] %v786_v21 }
  0xdc   : > { %v1460_v29 = vrot.slane %v1459_v22, 4 }
  0xe1   : > { %7440 = vmatmul.mubr.bf16.gmra.mrb[28].mxu0 %v372_v23  ;;  %v1464_v23 = vrot.slane %v1462_v13, 5 }
  0xe3   : > { %v1465_v33 = vsel %vm9037_vm7, %v1460_v29, %v1464_v23 }
  0xe4   : > { %v6818_v35 = vcombine.low %v1455_v31, %v1465_v33 }
  0xe6   : > { %7459 = vmatprep.mubr.bf16.mxu0 %v6818_v35 }
 0x17c   : > { %v7413_v5 = vpop.f32.mrb[0].mxu0 }
 0x17d   : > { %v584_v6 = vadd.f32 %v7413_v5, %v9079_v3  ;;  %v575_v7 = vpop.f32.mrb[1].mxu0 }
 0x17e   : > { %v576_v28 = vadd.f32 %v9079_v3, %v575_v7  ;;  %v7414_v8 = vpop.f32.mrb[2].mxu0 }
 0x17f   : > { %v704_v9 = vmax.f32 %v584_v6, 0.0  ;;  %v587_v10 = vadd.f32 %v7414_v8, %v9079_v3  ;;  %v578_v11 = vpop.f32.mrb[3].mxu0 }
 0x180   : > { %v702_v12 = vmax.f32 %v576_v28, 0.0  ;;  %v579_v13 = vadd.f32 %v9079_v3, %v578_v11 }
 0x181   : > { %v7100_v14 = vpack.c.bf16 %v704_v9, %v704_v9  ;;  %v705_v15 = vmax.f32 %v587_v10, 0.0 }
 0x182   : > { %v7098_v16 = vpack.c.bf16 %v702_v12, %v702_v12  ;;  %v703_v17 = vmax.f32 %v579_v13, 0.0  ;;  %v1284_v12 = vld [vmem:[#allocation2 + $0x30] sm:$0xf] }
 0x183   : > { %v959_v18 = vshrl.u32 %v7100_v14, 16  ;;  %v7101_v19 = vpack.c.bf16 %v705_v15, %v705_v15  ;;  %v962_v20 = vshll.u32 %v7100_v14, 16 }
 0x184   : > { %v942_v21 = vshrl.u32 %v7098_v16, 16  ;;  %v945_v22 = vshll.u32 %v7098_v16, 16  ;;  %v7099_v23 = vpack.c.bf16 %v703_v17, %v703_v17  ;;  %v7417_v24 = vpop.f32.mrb[4].mxu0 }
 0x185   : > { %v961_v26 = vrot.slane %v959_v18, 7  ;;  %v967_v29 = vshrl.u32 %v7101_v19, 16  ;;  %v970_v30 = vshll.u32 %v7101_v19, 16  ;;  %v600_v31 = vadd.f32 %v7417_v24, %v9079_v3  ;;  %v591_v32 = vpop.f32.mrb[5].mxu0  ;;  %v1277_v19 = vld [vmem:[#allocation2 + $0x24] sm:$0xf] }
 0x186   : > { %v944_v35 = vrot.slane %v942_v21, 7  ;;  %v950_v36 = vshrl.u32 %v7099_v23, 16  ;;  %v953_v37 = vshll.u32 %v7099_v23, 16  ;;  %v592_v38 = vadd.f32 %v9079_v3, %v591_v32  ;;  %v7418_v39 = vpop.f32.mrb[6].mxu0 }
 0x187   : > { %v964_v40 = vor.u32 %v962_v20, %v961_v26  ;;  %v965_v41 = vrot.slane %v961_v26, 4  ;;  %v969_v43 = vrot.slane %v967_v29, 7  ;;  %v708_v44 = vmax.f32 %v600_v31, 0.0  ;;  %v594_v45 = vpop.f32.mrb[7].mxu0 }
 0x188   : > { %v947_v46 = vor.u32 %v945_v22, %v944_v35  ;;  %v948_v47 = vrot.slane %v944_v35, 4  ;;  %v952_v50 = vrot.slane %v950_v36, 7  ;;  %v706_v51 = vmax.f32 %v592_v38, 0.0 }
 0x189   : > { %v1271_v52 = vsel %vm9090_vm10, %v964_v40, %v1270_v34  ;;  %v972_v53 = vor.u32 %v970_v30, %v969_v43  ;;  %v974_v54 = vrot.slane %v969_v43, 4  ;;  %v7104_v56 = vpack.c.bf16 %v708_v44, %v708_v44  ;;  %v1288_v43 = vld [vmem:[#allocation2 + $0x38] sm:$0x1]  ;;  %v1281_v44 = vld [vmem:[#allocation2 + $0x2c] sm:$0x1] }
 0x18a   : > { %1272 = vst [vmem:[#allocation2 + $0x18] sm:$0xf] %v1271_v52  ;;  %v1264_v57 = vsel %vm9090_vm10, %v947_v46, %v1263_v42  ;;  %v955_v58 = vor.u32 %v953_v37, %v952_v50  ;;  %v957_v59 = vrot.slane %v952_v50, 4  ;;  %v7102_v60 = vpack.c.bf16 %v706_v51, %v706_v51 }
 0x18b   : > { %1265 = vst [vmem:[#allocation2 + $0xc] sm:$0xf] %v1264_v57  ;;  %v973_v61 = vsel %vm9097_vm11, %v965_v41, %v972_v53  ;;  %v1275_v62 = vsel %vm8992_vm2, %v974_v54, %v1274_v49  ;;  %v993_v63 = vshrl.u32 %v7104_v56, 16  ;;  %v996_v5 = vshll.u32 %v7104_v56, 16  ;;  %v1298_v57 = vld [vmem:[#allocation2 + $0x48] sm:$0xf] }
 0x18c   : > { %1273 = vst [vmem:[#allocation2 + $0x1c] sm:$0xf] %v973_v61  ;;  %1276 = vst [vmem:[#allocation2 + $0x20] sm:$0x1] %v1275_v62  ;;  %v956_v0 = vsel %vm9097_vm11, %v948_v47, %v955_v58  ;;  %v1268_v1 = vsel %vm8992_vm2, %v957_v59, %v1267_v55  ;;  %v976_v6 = vshrl.u32 %v7102_v60, 16  ;;  %v7421_v7 = vpop.f32.mrb[8].mxu0  ;;  %v603_v8 = vadd.f32 %v7418_v39, %v9079_v3 }
 0x18d   : > { %1266 = vst [vmem:[#allocation2 + $0x10] sm:$0xf] %v956_v0  ;;  %1269 = vst [vmem:[#allocation2 + $0x14] sm:$0x1] %v1268_v1  ;;  %v9113_v28 = vrot.slane %v993_v63, 7  ;;  %v595_v9 = vadd.f32 %v9079_v3, %v594_v45  ;;  %v616_v10 = vadd.f32 %v7421_v7, %v9079_v3  ;;  %v607_v11 = vpop.f32.mrb[9].mxu0 }
 0x18e   : > { %v978_v13 = vrot.slane %v976_v6, 7  ;;  %v979_v14 = vshll.u32 %v7102_v60, 16  ;;  %v608_v15 = vadd.f32 %v9079_v3, %v607_v11  ;;  %v7422_v16 = vpop.f32.mrb[10].mxu0  ;;  %v709_v20 = vmax.f32 %v603_v8, 0.0 }
 0x18f   : > { %v998_v17 = vor.u32 %v996_v5, %v9113_v28  ;;  %v999_v18 = vrot.slane %v9113_v28, 4  ;;  %v707_v21 = vmax.f32 %v595_v9, 0.0  ;;  %v610_v22 = vpop.f32.mrb[11].mxu0  ;;  %v712_v26 = vmax.f32 %v616_v10, 0.0  ;;  %v1291_v5 = vld [vmem:[#allocation2 + $0x3c] sm:$0xf] }
 0x190   : > { %v981_v23 = vor.u32 %v979_v14, %v978_v13  ;;  %v982_v24 = vrot.slane %v978_v13, 4  ;;  %v710_v29 = vmax.f32 %v608_v15, 0.0  ;;  %v7105_v31 = vpack.c.bf16 %v709_v20, %v709_v20 }
 0x191   : > { %v1285_v30 = vsel %vm9090_vm10, %v998_v17, %v1284_v12  ;;  %v7103_v32 = vpack.c.bf16 %v707_v21, %v707_v21  ;;  %v619_v34 = vadd.f32 %v7422_v16, %v9079_v3  ;;  %v7108_v36 = vpack.c.bf16 %v712_v26, %v712_v26 }
 0x192   : > { %1286 = vst [vmem:[#allocation2 + $0x30] sm:$0xf] %v1285_v30  ;;  %v1278_v35 = vsel %vm9090_vm10, %v981_v23, %v1277_v19  ;;  %v7106_v37 = vpack.c.bf16 %v710_v29, %v710_v29  ;;  %v611_v38 = vadd.f32 %v9079_v3, %v610_v22  ;;  %v1001_v39 = vshrl.u32 %v7105_v31, 16  ;;  %v1302_v30 = vld [vmem:[#allocation2 + $0x50] sm:$0x1] }
 0x193   : > { %1279 = vst [vmem:[#allocation2 + $0x24] sm:$0xf] %v1278_v35  ;;  %v1004_v40 = vshll.u32 %v7105_v31, 16  ;;  %v984_v41 = vshrl.u32 %v7103_v32, 16  ;;  %v987_v42 = vshll.u32 %v7103_v32, 16  ;;  %v1027_v45 = vshrl.u32 %v7108_v36, 16 }
 0x194   : > { %v1030_v46 = vshll.u32 %v7108_v36, 16  ;;  %v1010_v47 = vshrl.u32 %v7106_v37, 16  ;;  %v1013_v49 = vshll.u32 %v7106_v37, 16  ;;  %v7425_v50 = vpop.f32.mrb[12].mxu0  ;;  %v1003_v51 = vrot.slane %v1001_v39, 7 }
 0x195   : > { %v986_v52 = vrot.slane %v984_v41, 7  ;;  %v713_v53 = vmax.f32 %v619_v34, 0.0  ;;  %v711_v54 = vmax.f32 %v611_v38, 0.0  ;;  %v623_v55 = vpop.f32.mrb[13].mxu0  ;;  %v9127_v56 = vrot.slane %v1027_v45, 7 }
 0x196   : > { %v9129_v58 = vrot.slane %v1010_v47, 7  ;;  %v632_v59 = vadd.f32 %v7425_v50, %v9079_v3  ;;  %v624_v60 = vadd.f32 %v9079_v3, %v623_v55  ;;  %v7426_v61 = vpop.f32.mrb[14].mxu0  ;;  %v1006_v62 = vor.u32 %v1004_v40, %v1003_v51  ;;  %v1295_v31 = vld [vmem:[#allocation2 + $0x44] sm:$0x1] }
 0x197   : > { %v1008_v63 = vrot.slane %v1003_v51, 4  ;;  %v989_v0 = vor.u32 %v987_v42, %v986_v52  ;;  %v991_v1 = vrot.slane %v986_v52, 4  ;;  %v626_v6 = vpop.f32.mrb[15].mxu0  ;;  %v1032_v7 = vor.u32 %v1030_v46, %v9127_v56 }
 0x198   : > { %v1033_v28 = vrot.slane %v9127_v56, 4  ;;  %v1015_v8 = vor.u32 %v1013_v49, %v9129_v58  ;;  %v1016_v9 = vrot.slane %v9129_v58, 4  ;;  %v1007_v10 = vsel %vm9097_vm11, %v999_v18, %v1006_v62  ;;  %v1305_v62 = vld [vmem:[#allocation2 + $0x54] sm:$0xf] }
 0x199   : > { %v1289_v11 = vsel %vm8992_vm2, %v1008_v63, %v1288_v43  ;;  %v990_v12 = vsel %vm9097_vm11, %v982_v24, %v989_v0  ;;  %v1282_v13 = vsel %vm8992_vm2, %v991_v1, %v1281_v44  ;;  %1287 = vst [vmem:[#allocation2 + $0x34] sm:$0xf] %v1007_v10  ;;  %v1299_v14 = vsel %vm9090_vm10, %v1032_v7, %v1298_v57 }
 0x19a   : > { %1290 = vst [vmem:[#allocation2 + $0x38] sm:$0x1] %v1289_v11  ;;  %1280 = vst [vmem:[#allocation2 + $0x28] sm:$0xf] %v990_v12  ;;  %v1292_v15 = vsel %vm9090_vm10, %v1015_v8, %v1291_v5  ;;  %v7109_v16 = vpack.c.bf16 %v713_v53, %v713_v53  ;;  %v7107_v17 = vpack.c.bf16 %v711_v54, %v711_v54  ;;  %v716_v18 = vmax.f32 %v632_v59, 0.0 }
 0x19b   : > { %1283 = vst [vmem:[#allocation2 + $0x2c] sm:$0x1] %v1282_v13  ;;  %1300 = vst [vmem:[#allocation2 + $0x48] sm:$0xf] %v1299_v14  ;;  %v714_v19 = vmax.f32 %v624_v60, 0.0  ;;  %v635_v20 = vadd.f32 %v7426_v61, %v9079_v3  ;;  %v627_v21 = vadd.f32 %v9079_v3, %v626_v6 }
 0x19c   : > { %1293 = vst [vmem:[#allocation2 + $0x3c] sm:$0xf] %v1292_v15  ;;  %v1035_v22 = vshrl.u32 %v7109_v16, 16  ;;  %v1038_v23 = vshll.u32 %v7109_v16, 16  ;;  %v1018_v24 = vshrl.u32 %v7107_v17, 16  ;;  %v1021_v26 = vshll.u32 %v7107_v17, 16 }
 0x19d   : > { %v7429_v29 = vpop.f32.mrb[16].mxu0  ;;  %v7112_v32 = vpack.c.bf16 %v716_v18, %v716_v18  ;;  %v7110_v34 = vpack.c.bf16 %v714_v19, %v714_v19  ;;  %v717_v35 = vmax.f32 %v635_v20, 0.0  ;;  %v715_v36 = vmax.f32 %v627_v21, 0.0  ;;  %v1312_v61 = vld [vmem:[#allocation2 + $0x60] sm:$0xf] }
 0x19e   : > { %v639_v37 = vpop.f32.mrb[17].mxu0  ;;  %v1037_v38 = vrot.slane %v1035_v22, 7  ;;  %v1020_v39 = vrot.slane %v1018_v24, 7  ;;  %v648_v40 = vadd.f32 %v7429_v29, %v9079_v3  ;;  %v1377_v6 = vld [vmem:[#allocation2 + $0xc] sm:$0xf] }
 0x19f   : > { %v640_v41 = vadd.f32 %v9079_v3, %v639_v37  ;;  %v7430_v42 = vpop.f32.mrb[18].mxu0  ;;  %v1061_v43 = vshrl.u32 %v7112_v32, 16  ;;  %v1064_v44 = vshll.u32 %v7112_v32, 16  ;;  %v1044_v45 = vshrl.u32 %v7110_v34, 16  ;;  %v1316_v17 = vld [vmem:[#allocation2 + $0x68] sm:$0x1] }
 0x1a0   : > { %v1047_v46 = vshll.u32 %v7110_v34, 16  ;;  %v642_v47 = vpop.f32.mrb[19].mxu0  ;;  %v1040_v49 = vor.u32 %v1038_v23, %v1037_v38  ;;  %v1042_v50 = vrot.slane %v1037_v38, 4  ;;  %v1023_v51 = vor.u32 %v1021_v26, %v1020_v39  ;;  %v1309_v22 = vld [vmem:[#allocation2 + $0x5c] sm:$0x1] }
 0x1a1   : > { %v1025_v52 = vrot.slane %v1020_v39, 4  ;;  %v1063_v53 = vrot.slane %v1061_v43, 7  ;;  %v1046_v54 = vrot.slane %v1044_v45, 7  ;;  %v7113_v55 = vpack.c.bf16 %v717_v35, %v717_v35  ;;  %v1326_v45 = vld [vmem:[#allocation2 + $0x78] sm:$0xf] }
 0x1a2   : > { %v7111_v56 = vpack.c.bf16 %v715_v36, %v715_v36  ;;  %v1041_v57 = vsel %vm9097_vm11, %v1033_v28, %v1040_v49  ;;  %v1303_v58 = vsel %vm8992_vm2, %v1042_v50, %v1302_v30  ;;  %v1024_v59 = vsel %vm9097_vm11, %v1016_v9, %v1023_v51 }
 0x1a3   : > { %v1296_v60 = vsel %vm8992_vm2, %v1025_v52, %v1295_v31  ;;  %1301 = vst [vmem:[#allocation2 + $0x4c] sm:$0xf] %v1041_v57  ;;  %1304 = vst [vmem:[#allocation2 + $0x50] sm:$0x1] %v1303_v58  ;;  %v1066_v63 = vor.u32 %v1064_v44, %v1063_v53  ;;  %v1067_v0 = vrot.slane %v1063_v53, 4  ;;  %v1049_v1 = vor.u32 %v1047_v46, %v1046_v54 }
 0x1a4   : > { %1294 = vst [vmem:[#allocation2 + $0x40] sm:$0xf] %v1024_v59  ;;  %1297 = vst [vmem:[#allocation2 + $0x44] sm:$0x1] %v1296_v60  ;;  %v1050_v5 = vrot.slane %v1046_v54, 4  ;;  %v1069_v7 = vshrl.u32 %v7113_v55, 16  ;;  %v651_v19 = vadd.f32 %v7430_v42, %v9079_v3  ;;  %v643_v20 = vadd.f32 %v9079_v3, %v642_v47 }
 0x1a5   : > { %v1072_v28 = vshll.u32 %v7113_v55, 16  ;;  %v1052_v8 = vshrl.u32 %v7111_v56, 16  ;;  %v1055_v10 = vshll.u32 %v7111_v56, 16  ;;  %v9161_v11 = vpop.f32.mrb[20].mxu0  ;;  %v1313_v9 = vsel %vm9090_vm10, %v1066_v63, %v1312_v61  ;;  %v1319_v46 = vld [vmem:[#allocation2 + $0x6c] sm:$0xf] }
 0x1a6   : > { %v1306_v12 = vsel %vm9090_vm10, %v1049_v1, %v1305_v62  ;;  %v720_v13 = vmax.f32 %v648_v40, 0.0  ;;  %v718_v14 = vmax.f32 %v640_v41, 0.0  ;;  %v9167_v15 = vpop.f32.mrb[21].mxu0  ;;  %1314 = vst [vmem:[#allocation2 + $0x60] sm:$0xf] %v1313_v9  ;;  %v1071_v16 = vrot.slane %v1069_v7, 7 }
 0x1a7   : > { %1307 = vst [vmem:[#allocation2 + $0x54] sm:$0xf] %v1306_v12  ;;  %v1054_v18 = vrot.slane %v1052_v8, 7  ;;  %v9171_v21 = vpop.f32.mrb[22].mxu0  ;;  %v1467_v26 = vshrl.u32 %v1377_v6, 16  ;;  %v1470_v29 = vshll.u32 %v1377_v6, 16 }
 0x1a8   : > { %v7116_v23 = vpack.c.bf16 %v720_v13, %v720_v13  ;;  %v7114_v24 = vpack.c.bf16 %v718_v14, %v718_v14  ;;  %v9173_v30 = vpop.f32.mrb[23].mxu0  ;;  %v1074_v31 = vor.u32 %v1072_v28, %v1071_v16  ;;  %v1076_v32 = vrot.slane %v1071_v16, 4  ;;  %v1378_v40 = vld [vmem:[#allocation2 + $0x10] sm:$0xf]  ;;  %v1424_v52 = vld [vmem:[#allocation2 + $0x14] sm:$0x1] }
 0x1a9   : > { %v1057_v34 = vor.u32 %v1055_v10, %v1054_v18  ;;  %v1059_v35 = vrot.slane %v1054_v18, 4  ;;  %v721_v50 = vmax.f32 %v651_v19, 0.0  ;;  %v719_v51 = vmax.f32 %v643_v20, 0.0  ;;  %v1379_v6 = vld [vmem:[#allocation2 + $0x18] sm:$0xf] }
 0x1aa   : > { %v1095_v36 = vshrl.u32 %v7116_v23, 16  ;;  %v1098_v37 = vshll.u32 %v7116_v23, 16  ;;  %v1078_v38 = vshrl.u32 %v7114_v24, 16  ;;  %v1081_v39 = vshll.u32 %v7114_v24, 16  ;;  %v1380_v12 = vld [vmem:[#allocation2 + $0x1c] sm:$0xf] }
 0x1ab   : > { %v1075_v41 = vsel %vm9097_vm11, %v1067_v0, %v1074_v31  ;;  %v1317_v42 = vsel %vm8992_vm2, %v1076_v32, %v1316_v17  ;;  %v1058_v43 = vsel %vm9097_vm11, %v1050_v5, %v1057_v34  ;;  %v1310_v44 = vsel %vm8992_vm2, %v1059_v35, %v1309_v22  ;;  %v1323_v34 = vld [vmem:[#allocation2 + $0x74] sm:$0x1] }
 0x1ac   : > { %1315 = vst [vmem:[#allocation2 + $0x64] sm:$0xf] %v1075_v41  ;;  %1318 = vst [vmem:[#allocation2 + $0x68] sm:$0x1] %v1317_v42  ;;  %v1097_v47 = vrot.slane %v1095_v36, 7  ;;  %v1080_v49 = vrot.slane %v1078_v38, 7  ;;  %v7117_v63 = vpack.c.bf16 %v721_v50, %v721_v50  ;;  %v7115_v0 = vpack.c.bf16 %v719_v51, %v719_v51 }
 0x1ad   : > { %1308 = vst [vmem:[#allocation2 + $0x58] sm:$0xf] %v1058_v43  ;;  %1311 = vst [vmem:[#allocation2 + $0x5c] sm:$0x1] %v1310_v44  ;;  %v1469_v53 = vrot.slane %v1467_v26, 4  ;;  %v1472_v54 = vrot.slane %v1470_v29, 5 }
 0x1ae   : > { %v1476_v55 = vshll.u32 %v1378_v40, 16  ;;  %v1480_v56 = vshrl.u32 %v1378_v40, 16  ;;  %v9183_v57 = vpop.f32.mrb[24].mxu0  ;;  %v1100_v58 = vor.u32 %v1098_v37, %v1097_v47  ;;  %v1101_v59 = vrot.slane %v1097_v47, 4  ;;  %v1330_v26 = vld [vmem:[#allocation2 + $0x80] sm:$0x1] }
 0x1af   : > { %v1083_v60 = vor.u32 %v1081_v39, %v1080_v49  ;;  %v1084_v61 = vrot.slane %v1080_v49, 4  ;;  %v9185_v62 = vpop.f32.mrb[25].mxu0  ;;  %v1473_v1 = vor.u32 %v1472_v54, %v1469_v53  ;;  %v1486_v9 = vshll.u32 %v1424_v52, 16  ;;  %v1425_v43 = vld [vmem:[#allocation2 + $0x20] sm:$0x1] }
 0x1b0   : > { %v1478_v5 = vrot.slane %v1476_v55, 5  ;;  %v9187_v7 = vpop.f32.mrb[26].mxu0  ;;  %v1327_v28 = vsel %vm9090_vm10, %v1100_v58, %v1326_v45  ;;  %v1482_v10 = vrot.slane %v1480_v56, 4  ;;  %v1103_v14 = vshrl.u32 %v7117_v63, 16  ;;  %v1381_v55 = vld [vmem:[#allocation2 + $0x24] sm:$0xf] }
 0x1b1   : > { %v1320_v8 = vsel %vm9090_vm10, %v1083_v60, %v1319_v46  ;;  %v9193_v13 = vpop.f32.mrb[27].mxu0  ;;  %1328 = vst [vmem:[#allocation2 + $0x78] sm:$0xf] %v1327_v28  ;;  %v1106_v16 = vshll.u32 %v7117_v63, 16  ;;  %v1086_v17 = vshrl.u32 %v7115_v0, 16  ;;  %v1089_v18 = vshll.u32 %v7115_v0, 16 }
 0x1b2   : > { %1321 = vst [vmem:[#allocation2 + $0x6c] sm:$0xf] %v1320_v8  ;;  %v1474_v19 = vrot.slane %v1473_v1, 4  ;;  %v1483_v20 = vor.u32 %v1482_v10, %v1478_v5  ;;  %v1488_v22 = vrot.slane %v1486_v9, 5  ;;  %v1491_v23 = vshrl.u32 %v1379_v6, 16  ;;  %v8326_v58 = vld [vmem:[#allocation8 + $0x8] sm:$0xff]  }
 0x1b3   : > { %v1105_v24 = vrot.slane %v1103_v14, 7  ;;  %v1088_v29 = vrot.slane %v1086_v17, 7  ;;  %v1494_v31 = vshll.u32 %v1379_v6, 16  ;;  %v1500_v32 = vshll.u32 %v1380_v12, 16 }
 0x1b4   : > { %v1479_v35 = vsel %vm9037_vm7, %v1474_v19, %v1478_v5  ;;  %v1484_v36 = vrot.slane %v1483_v20, 4  ;;  %v1493_v37 = vrot.slane %v1491_v23, 4  ;;  %v1504_v38 = vshrl.u32 %v1380_v12, 16  ;;  %v9197_v44 = vpop.f32.mrb[28].mxu0  ;;  %v1382_v19 = vld [vmem:[#allocation2 + $0x28] sm:$0xf] }
 0x1b5   : > { %v1108_v39 = vor.u32 %v1106_v16, %v1105_v24  ;;  %v1110_v40 = vrot.slane %v1105_v24, 4  ;;  %v1091_v41 = vor.u32 %v1089_v18, %v1088_v29  ;;  %v1093_v42 = vrot.slane %v1088_v29, 4  ;;  %v9201_v50 = vpop.f32.mrb[29].mxu0  ;;  %v8329_v20 = vld [vmem:[#allocation8 + $0x10] sm:$0xff]  }
 0x1b6   : > { %v1489_v45 = vsel %vm9037_vm7, %v1484_v36, %v1488_v22  ;;  %v1496_v46 = vrot.slane %v1494_v31, 5  ;;  %v1502_v47 = vrot.slane %v1500_v32, 5  ;;  %v1506_v49 = vrot.slane %v1504_v38, 4  ;;  %v9211_v56 = vpop.f32.mrb[30].mxu0  ;;  %v9228_v29 = vld [vmem:[#allocation2 + $0x2c] sm:$0x1] }
 0x1b7   : > { %v1109_v51 = vsel %vm9097_vm11, %v1101_v59, %v1108_v39  ;;  %v1331_v52 = vsel %vm8992_vm2, %v1110_v40, %v1330_v26  ;;  %v1092_v53 = vsel %vm9097_vm11, %v1084_v61, %v1091_v41  ;;  %v1324_v54 = vsel %vm8992_vm2, %v1093_v42, %v1323_v34  ;;  %v9213_v1 = vpop.f32.mrb[31].mxu0  ;;  %v9230_v39 = vld [vmem:[#allocation8 + $0x108] sm:$0xff]   ;;  %v1340_v40 = vld [vmem:[#allocation2 + $0x90] sm:$0xf] }
 0x1b8   : > { %1329 = vst [vmem:[#allocation2 + $0x7c] sm:$0xf] %v1109_v51  ;;  %1332 = vst [vmem:[#allocation2 + $0x80] sm:$0x1] %v1331_v52  ;;  %v6819_v60 = vcombine.low %v1479_v35, %v1489_v45  ;;  %v1497_v63 = vor.u32 %v1496_v46, %v1493_v37  ;;  %v1507_v59 = vor.u32 %v1506_v49, %v1502_v47  ;;  %v1510_v0 = vshll.u32 %v1425_v43, 16 }
 0x1b9   : > { %1322 = vst [vmem:[#allocation2 + $0x70] sm:$0xf] %v1092_v53  ;;  %1325 = vst [vmem:[#allocation2 + $0x74] sm:$0x1] %v1324_v54  ;;  %v664_v61 = vadd.f32 %v9161_v11, %v9079_v3  ;;  %v656_v5 = vadd.f32 %v9079_v3, %v9167_v15  ;;  %v667_v6 = vadd.f32 %v9171_v21, %v9079_v3  ;;  %v1515_v12 = vshrl.u32 %v1381_v55, 16 }
 0x1ba   : > { %v659_v28 = vadd.f32 %v9079_v3, %v9173_v30  ;;  %7460 = vmatmul.mubr.bf16.vlgmr.msra.gmra.mrb[32].mxu0 %v6819_v60  ;;  %v1498_v8 = vrot.slane %v1497_v63, 4  ;;  %v1508_v10 = vrot.slane %v1507_v59, 4  ;;  %v1512_v9 = vrot.slane %v1510_v0, 5 }
 0x1bb   : > { %v724_v14 = vmax.f32 %v664_v61, 0.0  ;;  %v722_v16 = vmax.f32 %v656_v5, 0.0  ;;  %v725_v17 = vmax.f32 %v667_v6, 0.0  ;;  %7492 = vmatpush3.bf16.msra.mxu0 %v9081_v4  ;;  %v1517_v21 = vrot.slane %v1515_v12, 4 }
 0x1bc   : > { %v723_v18 = vmax.f32 %v659_v28, 0.0  ;;  %v1503_v11 = vsel %vm9037_vm7, %v1498_v8, %v1502_v47  ;;  %v1513_v15 = vsel %vm9037_vm7, %v1508_v10, %v1512_v9  ;;  %v1518_v30 = vshll.u32 %v1381_v55, 16  ;;  %7493 = vmatprep.subr.bf16.mxu0 %v8326_v58  ;;  %v8332_v47 = vld [vmem:[#allocation8 + $0x18] sm:$0xff]   ;;  %v1333_v55 = vld [vmem:[#allocation2 + $0x84] sm:$0xf] }
 0x1bd   : > { %v6820_v22 = vcombine.low %v1503_v11, %v1513_v15  ;;  %v7120_v23 = vpack.c.bf16 %v724_v14, %v724_v14  ;;  %v7118_v24 = vpack.c.bf16 %v722_v16, %v722_v16  ;;  %v7121_v26 = vpack.c.bf16 %v725_v17, %v725_v17  ;;  %v1344_v28 = vld [vmem:[#allocation2 + $0x98] sm:$0x1]  ;;  %v1337_v8 = vld [vmem:[#allocation2 + $0x8c] sm:$0x1]  ;;  %v1383_v16 = vld [vmem:[#allocation2 + $0x30] sm:$0xf] }
 0x1be   : > { %v7119_v31 = vpack.c.bf16 %v723_v18, %v723_v18  ;;  %v1520_v32 = vrot.slane %v1518_v30, 5  ;;  %v1524_v34 = vshll.u32 %v1382_v19, 16  ;;  %v1528_v4 = vshrl.u32 %v1382_v19, 16  ;;  %v8335_v17 = vld [vmem:[#allocation8 + $0x20] sm:$0xff]  }
 0x1bf   : > { %7463 = vmatprep.mubr.bf16.mxu0 %v6820_v22  ;;  %v1129_v35 = vshrl.u32 %v7120_v23, 16  ;;  %v1132_v36 = vshll.u32 %v7120_v23, 16  ;;  %v1112_v37 = vshrl.u32 %v7118_v24, 16  ;;  %v1115_v38 = vshll.u32 %v7118_v24, 16  ;;  %7494 = vmatpush3.bf16.msra.mxu0 %v8326_v58  ;;  %v8319_v54 = vld [vmem:[#allocation2 + $0x78] sm:$0xff]  }
 0x1c0   : > { %v1137_v41 = vshrl.u32 %v7121_v26, 16  ;;  %v1140_v42 = vshll.u32 %v7121_v26, 16  ;;  %v1120_v43 = vshrl.u32 %v7119_v31, 16  ;;  %v1123_v45 = vshll.u32 %v7119_v31, 16  ;;  %v8317_v46 = vld [vmem:[#allocation2 + $0x6c] sm:$0xff]   ;;  %7495 = vmatprep.subr.bf16.mxu0 %v8329_v20 }
 0x1c1   : > { %v1131_v49 = vrot.slane %v1129_v35, 7  ;;  %v1114_v51 = vrot.slane %v1112_v37, 7  ;;  %v1521_v52 = vor.u32 %v1520_v32, %v1517_v21  ;;  %v1526_v53 = vrot.slane %v1524_v34, 5  ;;  %7619 = vmatprep.mubr.bf16.mxu1 %v8317_v46  ;;  %v1384_v21 = vld [vmem:[#allocation2 + $0x34] sm:$0xf] }
 0x1c2   : > { %v1139_v60 = vrot.slane %v1137_v41, 7  ;;  %v1122_v63 = vrot.slane %v1120_v43, 7  ;;  %v1530_v59 = vrot.slane %v1528_v4, 4  ;;  %v1534_v0 = vshll.u32 %v9228_v29, 16  ;;  %7620 = vmatmul.mubr.bf16.vlgmr.msra.gmra.mrb[0].mxu1 %v8319_v54  ;;  %v1427_v30 = vld [vmem:[#allocation2 + $0x38] sm:$0x1] }
 0x1c3   : > { %v1134_v58 = vor.u32 %v1132_v36, %v1131_v49  ;;  %v1135_v61 = vrot.slane %v1131_v49, 4  ;;  %v1117_v5 = vor.u32 %v1115_v38, %v1114_v51  ;;  %v1118_v6 = vrot.slane %v1114_v51, 4  ;;  %7496 = vmatpush3.bf16.msra.mxu0 %v8329_v20  ;;  %7636 = vmatpush3.bf16.msra.mxu1 %v9073_v2  ;;  %v8322_v20 = vld [vmem:[#allocation8 + $0x110] sm:$0xff]   ;;  %v1385_v34 = vld [vmem:[#allocation2 + $0x3c] sm:$0xf]  ;;  %v8325_v4 = vld [vmem:[#allocation8 + $0x118] sm:$0xff]  }
 0x1c4   : > { %v1142_v10 = vor.u32 %v1140_v42, %v1139_v60  ;;  %v1144_v9 = vrot.slane %v1139_v60, 4  ;;  %v1125_v12 = vor.u32 %v1123_v45, %v1122_v63  ;;  %v1127_v14 = vrot.slane %v1122_v63, 4  ;;  %7497 = vmatprep.subr.bf16.mxu0 %v8332_v47  ;;  %7637 = vmatprep.subr.bf16.mxu1 %v9230_v39  ;;  %v8338_v45 = vld [vmem:[#allocation8 + $0x28] sm:$0xff]   ;;  %v9323_v25 = vld [vmem:[#allocation2 + $0x70] sm:$0xf] }
 0x1c5   : > { %v1341_v18 = vsel %vm9090_vm10, %v1134_v58, %v1340_v40  ;;  %v1334_v19 = vsel %vm9090_vm10, %v1117_v5, %v1333_v55  ;;  %v1522_v11 = vrot.slane %v1521_v52, 4  ;;  %v1531_v15 = vor.u32 %v1530_v59, %v1526_v53  ;;  %v8328_v55 = vld [vmem:[#allocation8 + $0x120] sm:$0xff]   ;;  %v8340_v59 = vld [vmem:[#allocation8 + $0x30] sm:$0xff]  }
 0x1c6   : > { %1342 = vst [vmem:[#allocation2 + $0x90] sm:$0xf] %v1341_v18  ;;  %1335 = vst [vmem:[#allocation2 + $0x84] sm:$0xf] %v1334_v19  ;;  %v1143_v2 = vsel %vm9097_vm11, %v1135_v61, %v1142_v10  ;;  %v1345_v22 = vsel %vm8992_vm2, %v1144_v9, %v1344_v28  ;;  %v1126_v23 = vsel %vm9097_vm11, %v1118_v6, %v1125_v12  ;;  %v1536_v31 = vrot.slane %v1534_v0, 5 }
 0x1c7   : > { %v1338_v24 = vsel %vm8992_vm2, %v1127_v14, %v1337_v8  ;;  %1343 = vst [vmem:[#allocation2 + $0x94] sm:$0xf] %v1143_v2  ;;  %1346 = vst [vmem:[#allocation2 + $0x98] sm:$0x1] %v1345_v22  ;;  %v1527_v26 = vsel %vm9037_vm7, %v1522_v11, %v1526_v53  ;;  %v1532_v29 = vrot.slane %v1531_v15, 4  ;;  %v1539_v32 = vshrl.u32 %v1383_v16, 16  ;;  %7498 = vmatpush3.bf16.msra.mxu0 %v8332_v47 }
 0x1c8   : > { %1336 = vst [vmem:[#allocation2 + $0x88] sm:$0xf] %v1126_v23  ;;  %1339 = vst [vmem:[#allocation2 + $0x8c] sm:$0x1] %v1338_v24  ;;  %v1542_v35 = vshll.u32 %v1383_v16, 16  ;;  %v1548_v36 = vshll.u32 %v1384_v21, 16  ;;  %7638 = vmatpush3.bf16.msra.mxu1 %v9230_v39  ;;  %7499 = vmatprep.subr.bf16.mxu0 %v8335_v17  ;;  %v680_v42 = vadd.f32 %v9183_v57, %v9079_v3 }
 0x1c9   : > { %v1552_v37 = vshrl.u32 %v1384_v21, 16  ;;  %v1558_v38 = vshll.u32 %v1427_v30, 16  ;;  %v1537_v40 = vsel %vm9037_vm7, %v1532_v29, %v1536_v31  ;;  %v1541_v41 = vrot.slane %v1539_v32, 4  ;;  %7639 = vmatprep.subr.bf16.mxu1 %v8322_v20  ;;  %v1347_v18 = vld [vmem:[#allocation2 + $0x9c] sm:$0xf]  ;;  %v8341_v21 = vld [vmem:[#allocation8 + $0x38] sm:$0xff]  }
 0x1ca   : > { %v672_v43 = vadd.f32 %v9079_v3, %v9185_v62  ;;  %v6821_v46 = vcombine.low %v1527_v26, %v1537_v40  ;;  %v1544_v47 = vrot.slane %v1542_v35, 5  ;;  %v1550_v49 = vrot.slane %v1548_v36, 5  ;;  %v1386_v22 = vld [vmem:[#allocation2 + $0x40] sm:$0xf]  ;;  %v1358_v40 = vld [vmem:[#allocation2 + $0xb0] sm:$0x1] }
 0x1cb   : > { %v1554_v51 = vrot.slane %v1552_v37, 4  ;;  %v1560_v52 = vrot.slane %v1558_v38, 5  ;;  %v728_v53 = vmax.f32 %v680_v42, 0.0  ;;  %v683_v54 = vadd.f32 %v9187_v7, %v9079_v3  ;;  %7500 = vmatpush3.bf16.msra.mxu0 %v8335_v17  ;;  %v1354_v17 = vld [vmem:[#allocation2 + $0xa8] sm:$0xf]  ;;  %v8331_v24 = vld [vmem:[#allocation8 + $0x128] sm:$0xff]  }
 0x1cc   : > { %v726_v39 = vmax.f32 %v672_v43, 0.0  ;;  %7464 = vmatmul.mubr.bf16.gmra.mrb[36].mxu0 %v6821_v46  ;;  %v1545_v60 = vor.u32 %v1544_v47, %v1541_v41  ;;  %v675_v62 = vadd.f32 %v9079_v3, %v9193_v13  ;;  %v1563_v63 = vshrl.u32 %v1385_v34, 16  ;;  %7640 = vmatpush3.bf16.msra.mxu1 %v8322_v20  ;;  %v1351_v47 = vld [vmem:[#allocation2 + $0xa4] sm:$0x1] }
 0x1cd   : > { %v1555_v57 = vor.u32 %v1554_v51, %v1550_v49  ;;  %v7124_v0 = vpack.c.bf16 %v728_v53, %v728_v53  ;;  %v729_v61 = vmax.f32 %v683_v54, 0.0  ;;  %v1566_v5 = vshll.u32 %v1385_v34, 16  ;;  %7641 = vmatprep.subr.bf16.mxu1 %v8325_v4  ;;  %7501 = vmatprep.subr.bf16.mxu0 %v8338_v45  ;;  %v1428_v34 = vld [vmem:[#allocation2 + $0x44] sm:$0x1]  ;;  %v9268_v53 = vld [vmem:[#allocation8 + $0x80] sm:$0xff]  }
 0x1ce   : > { %v7122_v58 = vpack.c.bf16 %v726_v39, %v726_v39  ;;  %v1546_v6 = vrot.slane %v1545_v60, 4  ;;  %v727_v7 = vmax.f32 %v675_v62, 0.0  ;;  %v1565_v8 = vrot.slane %v1563_v63, 4  ;;  %v8324_v15 = vld [vmem:[#allocation2 + $0x90] sm:$0xff]   ;;  %v1388_v62 = vld [vmem:[#allocation2 + $0x4c] sm:$0xf] }
 0x1cf   : > { %v1556_v28 = vrot.slane %v1555_v57, 4  ;;  %v1163_v10 = vshrl.u32 %v7124_v0, 16  ;;  %v1166_v9 = vshll.u32 %v7124_v0, 16  ;;  %v8321_v16 = vld [vmem:[#allocation2 + $0x84] sm:$0xff]   ;;  %7502 = vmatpush3.bf16.msra.mxu0 %v8338_v45  ;;  %v7125_v19 = vpack.c.bf16 %v729_v61, %v729_v61  ;;  %v1429_v61 = vld [vmem:[#allocation2 + $0x50] sm:$0x1] }
 0x1d0   : > { %v1146_v12 = vshrl.u32 %v7122_v58, 16  ;;  %v1149_v14 = vshll.u32 %v7122_v58, 16  ;;  %v1551_v3 = vsel %vm9037_vm7, %v1546_v6, %v1550_v49  ;;  %v7123_v11 = vpack.c.bf16 %v727_v7, %v727_v7  ;;  %7642 = vmatpush3.bf16.msra.mxu1 %v8325_v4  ;;  %7623 = vmatprep.mubr.bf16.mxu1 %v8321_v16  ;;  %v1387_v57 = vld [vmem:[#allocation2 + $0x48] sm:$0xf] }
 0x1d1   : > { %v1561_v13 = vsel %vm9037_vm7, %v1556_v28, %v1560_v52  ;;  %v1165_v20 = vrot.slane %v1163_v10, 7  ;;  %v1568_v23 = vrot.slane %v1566_v5, 5  ;;  %7643 = vmatprep.subr.bf16.mxu1 %v8328_v55  ;;  %v1171_v26 = vshrl.u32 %v7125_v19, 16  ;;  %7624 = vmatmul.mubr.bf16.gmra.mrb[4].mxu1 %v8324_v15  ;;  %v8334_v52 = vld [vmem:[#allocation8 + $0x130] sm:$0xff]  }
 0x1d2   : > { %v6822_v30 = vcombine.low %v1551_v3, %v1561_v13  ;;  %v1148_v2 = vrot.slane %v1146_v12, 7  ;;  %v1174_v29 = vshll.u32 %v7125_v19, 16  ;;  %v1154_v31 = vshrl.u32 %v7123_v11, 16  ;;  %7503 = vmatprep.subr.bf16.mxu0 %v8340_v59 }
 0x1d3   : > { %v1157_v32 = vshll.u32 %v7123_v11, 16  ;;  %v1168_v35 = vor.u32 %v1166_v9, %v1165_v20  ;;  %v1169_v36 = vrot.slane %v1165_v20, 4  ;;  %7504 = vmatpush3.bf16.msra.mxu0 %v8340_v59  ;;  %v1173_v38 = vrot.slane %v1171_v26, 7 }
 0x1d4   : > { %7467 = vmatprep.mubr.bf16.mxu0 %v6822_v30  ;;  %v1151_v4 = vor.u32 %v1149_v14, %v1148_v2  ;;  %v1152_v37 = vrot.slane %v1148_v2, 4  ;;  %v1156_v41 = vrot.slane %v1154_v31, 7  ;;  %v1569_v42 = vor.u32 %v1568_v23, %v1565_v8  ;;  %7644 = vmatpush3.bf16.msra.mxu1 %v8328_v55  ;;  %v8337_v14 = vld [vmem:[#allocation8 + $0x138] sm:$0xff]  }
 0x1d5   : > { %v1572_v43 = vshll.u32 %v1386_v22, 16  ;;  %7505 = vmatprep.subr.bf16.mxu0 %v8341_v21  ;;  %v1355_v45 = vsel %vm9090_vm10, %v1168_v35, %v1354_v17  ;;  %v1576_v49 = vshrl.u32 %v1386_v22, 16  ;;  %v1582_v51 = vshll.u32 %v1428_v34, 16  ;;  %7645 = vmatprep.subr.bf16.mxu1 %v8331_v24  ;;  %v8445_v17 = vld [vmem:[%s10606_s2] ss:$0 sm:$0xff] }
 0x1d6   : > { %v1348_v46 = vsel %vm9090_vm10, %v1151_v4, %v1347_v18  ;;  %1356 = vst [vmem:[#allocation2 + $0xa8] sm:$0xf] %v1355_v45  ;;  %v1176_v39 = vor.u32 %v1174_v29, %v1173_v38  ;;  %v1178_v54 = vrot.slane %v1173_v38, 4  ;;  %v1159_v60 = vor.u32 %v1157_v32, %v1156_v41  ;;  %v1389_v23 = vld [vmem:[#allocation2 + $0x54] sm:$0xf] }
 0x1d7   : > { %1349 = vst [vmem:[#allocation2 + $0x9c] sm:$0xf] %v1348_v46  ;;  %v1161_v55 = vrot.slane %v1156_v41, 4  ;;  %v1570_v63 = vrot.slane %v1569_v42, 4  ;;  %v1574_v59 = vrot.slane %v1572_v43, 5  ;;  %v1578_v0 = vrot.slane %v1576_v49, 4  ;;  %7506 = vmatpush3.bf16.msra.mxu0 %v8341_v21 }
 0x1d8   : > { %v1584_v58 = vrot.slane %v1582_v51, 5  ;;  %v1177_v5 = vsel %vm9097_vm11, %v1169_v36, %v1176_v39  ;;  %v1359_v6 = vsel %vm8992_vm2, %v1178_v54, %v1358_v40  ;;  %v1160_v28 = vsel %vm9097_vm11, %v1152_v37, %v1159_v60  ;;  %7646 = vmatpush3.bf16.msra.mxu1 %v8331_v24  ;;  %7539 = vmatprep.subr.bf16.mxu0 %v9268_v53 }
 0x1d9   : > { %v1352_v7 = vsel %vm8992_vm2, %v1161_v55, %v1351_v47  ;;  %1357 = vst [vmem:[#allocation2 + $0xac] sm:$0xf] %v1177_v5  ;;  %1360 = vst [vmem:[#allocation2 + $0xb0] sm:$0x1] %v1359_v6  ;;  %v1575_v8 = vsel %vm9037_vm7, %v1570_v63, %v1574_v59  ;;  %v1579_v10 = vor.u32 %v1578_v0, %v1574_v59  ;;  %v1587_v9 = vshrl.u32 %v1387_v57, 16 }
 0x1da   : > { %1350 = vst [vmem:[#allocation2 + $0xa0] sm:$0xf] %v1160_v28  ;;  %1353 = vst [vmem:[#allocation2 + $0xa4] sm:$0x1] %v1352_v7  ;;  %v1590_v12 = vshll.u32 %v1387_v57, 16  ;;  %7647 = vmatprep.subr.bf16.mxu1 %v8334_v52  ;;  %v1596_v16 = vshll.u32 %v1388_v62, 16  ;;  %v696_v18 = vadd.f32 %v8445_v17, %v9197_v44  ;;  %v688_v21 = vadd.f32 %v8445_v17, %v9201_v50 }
 0x1db   : > { %v1600_v3 = vshrl.u32 %v1388_v62, 16  ;;  %v1606_v13 = vshll.u32 %v1429_v61, 16  ;;  %v1580_v19 = vrot.slane %v1579_v10, 4  ;;  %v1589_v11 = vrot.slane %v1587_v9, 4  ;;  %v9289_v44 = vld [vmem:[#allocation8 + $0x140] sm:$0xff]  }
 0x1dc   : > { %v1592_v15 = vrot.slane %v1590_v12, 5  ;;  %v1598_v30 = vrot.slane %v1596_v16, 5  ;;  %v732_v22 = vmax.f32 %v696_v18, 0.0  ;;  %7648 = vmatpush3.bf16.msra.mxu1 %v8334_v52  ;;  %v730_v29 = vmax.f32 %v688_v21, 0.0  ;;  %v1368_v52 = vld [vmem:[#allocation2 + $0xc0] sm:$0xf] }
 0x1dd   : > { %v1602_v20 = vrot.slane %v1600_v3, 4  ;;  %v1608_v2 = vrot.slane %v1606_v13, 5  ;;  %v1585_v24 = vsel %vm9037_vm7, %v1580_v19, %v1584_v58  ;;  %v699_v31 = vadd.f32 %v8445_v17, %v9211_v56  ;;  %7649 = vmatprep.subr.bf16.mxu1 %v8337_v14  ;;  %v9297_v59 = vld [vmem:[#allocation2 + $0x58] sm:$0xf]  ;;  %v1361_v61 = vld [vmem:[#allocation2 + $0xb4] sm:$0xf] }
 0x1de   : > { %v1593_v26 = vor.u32 %v1592_v15, %v1589_v11  ;;  %v6823_v32 = vcombine.low %v1575_v8, %v1585_v24  ;;  %v7128_v35 = vpack.c.bf16 %v732_v22, %v732_v22  ;;  %v691_v50 = vadd.f32 %v8445_v17, %v9213_v1  ;;  %v1372_v10 = vld [vmem:[#allocation2 + $0xc8] sm:$0x1]  ;;  %v1430_v16 = vld [vmem:[#allocation2 + $0x5c] sm:$0x1]  ;;  %v9305_v21 = vld [vmem:[#allocation2 + $0x60] sm:$0xf] }
 0x1df   : > { %v1603_v34 = vor.u32 %v1602_v20, %v1598_v30  ;;  %v7126_v4 = vpack.c.bf16 %v730_v29, %v730_v29  ;;  %v733_v37 = vmax.f32 %v699_v31, 0.0  ;;  %v1611_v38 = vshrl.u32 %v1389_v23, 16  ;;  %v1365_v11 = vld [vmem:[#allocation2 + $0xbc] sm:$0x1]  ;;  %v1431_v31 = vld [vmem:[#allocation2 + $0x68] sm:$0x1] }
 0x1e0   : > { %v1594_v36 = vrot.slane %v1593_v26, 4  ;;  %7468 = vmatmul.mubr.bf16.gmra.mrb[40].mxu0 %v6823_v32  ;;  %v1197_v41 = vshrl.u32 %v7128_v35, 16  ;;  %v1200_v42 = vshll.u32 %v7128_v35, 16  ;;  %v731_v43 = vmax.f32 %v691_v50, 0.0  ;;  %7650 = vmatpush3.bf16.msra.mxu1 %v8337_v14  ;;  %v8330_v60 = vld [vmem:[#allocation2 + $0xa8] sm:$0xff]  }
 0x1e1   : > { %v1604_v40 = vrot.slane %v1603_v34, 4  ;;  %v1180_v45 = vshrl.u32 %v7126_v4, 16  ;;  %v1183_v46 = vshll.u32 %v7126_v4, 16  ;;  %v7129_v47 = vpack.c.bf16 %v733_v37, %v733_v37  ;;  %v8327_v49 = vld [vmem:[#allocation2 + $0x9c] sm:$0xff]   ;;  %7683 = vmatprep.subr.bf16.mxu1 %v9289_v44 }
 0x1e2   : > { %v1599_v56 = vsel %vm9037_vm7, %v1594_v36, %v1598_v30  ;;  %v1199_v51 = vrot.slane %v1197_v41, 7  ;;  %v7127_v39 = vpack.c.bf16 %v731_v43, %v731_v43  ;;  %v1613_v54 = vrot.slane %v1611_v38, 4  ;;  %7627 = vmatprep.mubr.bf16.mxu1 %v8327_v49  ;;  %v9318_v36 = vld [vmem:[#allocation2 + $0x6c] sm:$0xf]  ;;  %v1432_v49 = vld [vmem:[#allocation2 + $0x74] sm:$0x1] }
 0x1e3   : > { %v1609_v1 = vsel %vm9037_vm7, %v1604_v40, %v1608_v2  ;;  %v1182_v57 = vrot.slane %v1180_v45, 7  ;;  %v1205_v62 = vshrl.u32 %v7129_v47, 16  ;;  %v1208_v63 = vshll.u32 %v7129_v47, 16  ;;  %7628 = vmatmul.mubr.bf16.gmra.mrb[8].mxu1 %v8330_v60 }
 0x1e4   : > { %v6824_v55 = vcombine.low %v1599_v56, %v1609_v1  ;;  %v1202_v0 = vor.u32 %v1200_v42, %v1199_v51  ;;  %v1203_v58 = vrot.slane %v1199_v51, 4  ;;  %v1188_v5 = vshrl.u32 %v7127_v39, 16  ;;  %v9325_v56 = vld [vmem:[#allocation2 + $0x78] sm:$0xf] }
 0x1e5   : > { %v1191_v6 = vshll.u32 %v7127_v39, 16  ;;  %v1185_v28 = vor.u32 %v1183_v46, %v1182_v57  ;;  %v1186_v7 = vrot.slane %v1182_v57, 4  ;;  %v1207_v8 = vrot.slane %v1205_v62, 7 }
 0x1e6   : > { %7471 = vmatprep.mubr.bf16.mxu0 %v6824_v55  ;;  %v1614_v9 = vshll.u32 %v1389_v23, 16  ;;  %v1369_v12 = vsel %vm9090_vm10, %v1202_v0, %v1368_v52  ;;  %v1190_v14 = vrot.slane %v1188_v5, 7  ;;  %v1620_v3 = vshll.u32 %v9297_v59, 16  ;;  %v9307_v23 = vld [vmem:[#allocation2 + $0x64] sm:$0xf] }
 0x1e7   : > { %v1624_v13 = vshrl.u32 %v9297_v59, 16  ;;  %1370 = vst [vmem:[#allocation2 + $0xc0] sm:$0xf] %v1369_v12  ;;  %v1362_v17 = vsel %vm9090_vm10, %v1185_v28, %v1361_v61  ;;  %v1210_v18 = vor.u32 %v1208_v63, %v1207_v8  ;;  %v1212_v19 = vrot.slane %v1207_v8, 4  ;;  %v9334_v63 = vld [vmem:[#allocation2 + $0x7c] sm:$0xf] }
 0x1e8   : > { %v1616_v15 = vrot.slane %v1614_v9, 5  ;;  %1363 = vst [vmem:[#allocation2 + $0xb4] sm:$0xf] %v1362_v17  ;;  %v1193_v30 = vor.u32 %v1191_v6, %v1190_v14  ;;  %v1195_v20 = vrot.slane %v1190_v14, 4  ;;  %v1622_v2 = vrot.slane %v1620_v3, 5 }
 0x1e9   : > { %v1626_v22 = vrot.slane %v1624_v13, 4  ;;  %v1211_v24 = vsel %vm9097_vm11, %v1203_v58, %v1210_v18  ;;  %v1373_v33 = vsel %vm8992_vm2, %v1212_v19, %v1372_v10  ;;  %v1630_v29 = vshll.u32 %v1430_v16, 16  ;;  %v1433_v6 = vld [vmem:[#allocation2 + $0x80] sm:$0x1] }
 0x1ea   : > { %v1617_v26 = vor.u32 %v1616_v15, %v1613_v54  ;;  %1371 = vst [vmem:[#allocation2 + $0xc4] sm:$0xf] %v1211_v24  ;;  %1374 = vst [vmem:[#allocation2 + $0xc8] sm:$0x1] %v1373_v33  ;;  %v1194_v32 = vsel %vm9097_vm11, %v1186_v7, %v1193_v30  ;;  %v1366_v34 = vsel %vm8992_vm2, %v1195_v20, %v1365_v11  ;;  %v1635_v50 = vshrl.u32 %v9305_v21, 16 }
 0x1eb   : > { %v1627_v35 = vor.u32 %v1626_v22, %v1622_v2  ;;  %1364 = vst [vmem:[#allocation2 + $0xb8] sm:$0xf] %v1194_v32  ;;  %1367 = vst [vmem:[#allocation2 + $0xbc] sm:$0x1] %v1366_v34  ;;  %v1632_v37 = vrot.slane %v1630_v29, 5  ;;  %v1638_v38 = vshll.u32 %v9305_v21, 16 }
 0x1ec   : > { %v1618_v4 = vrot.slane %v1617_v26, 4  ;;  %v1644_v40 = vshll.u32 %v9307_v23, 16  ;;  %v1637_v42 = vrot.slane %v1635_v50, 4  ;;  %v1648_v48 = vshrl.u32 %v9307_v23, 16  ;;  %v9342_v11 = vld [vmem:[#allocation2 + $0x84] sm:$0xf] }
 0x1ed   : > { %v1628_v41 = vrot.slane %v1627_v35, 4  ;;  %v1654_v43 = vshll.u32 %v1431_v31, 16  ;;  %v1640_v46 = vrot.slane %v1638_v38, 5  ;;  %v1659_v1 = vshrl.u32 %v9318_v36, 16  ;;  %v9347_v24 = vld [vmem:[#allocation2 + $0x88] sm:$0xf] }
 0x1ee   : > { %v1623_v45 = vsel %vm9037_vm7, %v1618_v4, %v1622_v2  ;;  %v1646_v47 = vrot.slane %v1644_v40, 5  ;;  %v1650_v52 = vrot.slane %v1648_v48, 4  ;;  %v1662_v54 = vshll.u32 %v9318_v36, 16  ;;  %v1434_v50 = vld [vmem:[#allocation2 + $0x8c] sm:$0x1] }
 0x1ef   : > { %v1633_v51 = vsel %vm9037_vm7, %v1628_v41, %v1632_v37  ;;  %v1656_v39 = vrot.slane %v1654_v43, 5  ;;  %v1641_v55 = vor.u32 %v1640_v46, %v1637_v42  ;;  %v1661_v57 = vrot.slane %v1659_v1, 4  ;;  %v9354_v42 = vld [vmem:[#allocation2 + $0x90] sm:$0xf] }
 0x1f0   : > { %v6825_v60 = vcombine.low %v1623_v45, %v1633_v51  ;;  %v1668_v62 = vshll.u32 %v9323_v25, 16  ;;  %v1651_v0 = vor.u32 %v1650_v52, %v1646_v47  ;;  %v1664_v58 = vrot.slane %v1662_v54, 5 }
 0x1f1   : > { %v1672_v61 = vshrl.u32 %v9323_v25, 16  ;;  %v1678_v5 = vshll.u32 %v1432_v49, 16  ;;  %v1642_v28 = vrot.slane %v1641_v55, 4  ;;  %v1683_v8 = vshrl.u32 %v9325_v56, 16  ;;  %v8336_v15 = vld [vmem:[#allocation2 + $0xc0] sm:$0xff]  }
 0x1f2   : > { %7472 = vmatmul.mubr.bf16.gmra.mrb[44].mxu0 %v6825_v60  ;;  %v1670_v7 = vrot.slane %v1668_v62, 5  ;;  %v1686_v10 = vshll.u32 %v9325_v56, 16  ;;  %v1652_v9 = vrot.slane %v1651_v0, 4  ;;  %v1665_v12 = vor.u32 %v1664_v58, %v1661_v57  ;;  %v8333_v3 = vld [vmem:[#allocation2 + $0xb4] sm:$0xff]  }
 0x1f3   : > { %v1674_v14 = vrot.slane %v1672_v61, 4  ;;  %v1680_v16 = vrot.slane %v1678_v5, 5  ;;  %v1647_v13 = vsel %vm9037_vm7, %v1642_v28, %v1646_v47  ;;  %v1685_v17 = vrot.slane %v1683_v8, 4  ;;  %7631 = vmatprep.mubr.bf16.mxu1 %v8333_v3  ;;  %v9359_v47 = vld [vmem:[#allocation2 + $0x94] sm:$0xf] }
 0x1f4   : > { %v1688_v18 = vrot.slane %v1686_v10, 5  ;;  %v1692_v19 = vshll.u32 %v9334_v63, 16  ;;  %v1657_v30 = vsel %vm9037_vm7, %v1652_v9, %v1656_v39  ;;  %v1666_v20 = vrot.slane %v1665_v12, 4  ;;  %7632 = vmatmul.mubr.bf16.gmra.mrb[12].mxu1 %v8336_v15  ;;  %v1435_v55 = vld [vmem:[#allocation2 + $0x98] sm:$0x1] }
 0x1f5   : > { %v1675_v2 = vor.u32 %v1674_v14, %v1670_v7  ;;  %v1696_v22 = vshrl.u32 %v9334_v63, 16  ;;  %v6826_v33 = vcombine.low %v1647_v13, %v1657_v30  ;;  %v1702_v31 = vshll.u32 %v1433_v6, 16  ;;  %v9367_v5 = vld [vmem:[#allocation2 + $0x9c] sm:$0xf]  ;;  %v9371_v10 = vld [vmem:[#allocation2 + $0xa0] sm:$0xf] }
 0x1f6   : > { %v1689_v26 = vor.u32 %v1688_v18, %v1685_v17  ;;  %v1694_v29 = vrot.slane %v1692_v19, 5  ;;  %v1671_v32 = vsel %vm9037_vm7, %v1666_v20, %v1670_v7  ;;  %v1707_v4 = vshrl.u32 %v9342_v11, 16  ;;  %v9374_v19 = vld [vmem:[#allocation2 + $0xa8] sm:$0xf]  ;;  %v1436_v20 = vld [vmem:[#allocation2 + $0xa4] sm:$0x1] }
 0x1f7   : > { %v1676_v34 = vrot.slane %v1675_v2, 4  ;;  %v1698_v35 = vrot.slane %v1696_v22, 4  ;;  %7475 = vmatprep.mubr.bf16.mxu0 %v6826_v33  ;;  %v1704_v38 = vrot.slane %v1702_v31, 5  ;;  %v1710_v40 = vshll.u32 %v9342_v11, 16  ;;  %v9380_v33 = vld [vmem:[#allocation2 + $0xac] sm:$0xf] }
 0x1f8   : > { %v1690_v37 = vrot.slane %v1689_v26, 4  ;;  %v1716_v41 = vshll.u32 %v9347_v24, 16  ;;  %v1709_v45 = vrot.slane %v1707_v4, 4  ;;  %v1720_v46 = vshrl.u32 %v9347_v24, 16 }
 0x1f9   : > { %v1681_v48 = vsel %vm9037_vm7, %v1676_v34, %v1680_v16  ;;  %v1699_v43 = vor.u32 %v1698_v35, %v1694_v29  ;;  %v1712_v51 = vrot.slane %v1710_v40, 5  ;;  %v1726_v60 = vshll.u32 %v1434_v50, 16 }
 0x1fa   : > { %v6827_v49 = vcombine.low %v1671_v32, %v1681_v48  ;;  %v1695_v1 = vsel %vm9037_vm7, %v1690_v37, %v1694_v29  ;;  %v1718_v52 = vrot.slane %v1716_v41, 5  ;;  %v1722_v54 = vrot.slane %v1720_v46, 4  ;;  %v3292_v37 = vld [vmem:[#allocation2 + $0xc] sm:$0xf]  ;;  %v1437_v46 = vld [vmem:[#allocation2 + $0xb0] sm:$0x1] }
 0x1fb   : > { %v1700_v39 = vrot.slane %v1699_v43, 4  ;;  %v1731_v57 = vshrl.u32 %v9354_v42, 16  ;;  %v1713_v62 = vor.u32 %v1712_v51, %v1709_v45  ;;  %v1734_v0 = vshll.u32 %v9354_v42, 16 }
 0x1fc   : > { %7476 = vmatmul.mubr.bf16.gmra.mrb[48].mxu0 %v6827_v49  ;;  %v1740_v58 = vshll.u32 %v9359_v47, 16  ;;  %v1744_v61 = vshrl.u32 %v9359_v47, 16  ;;  %v1723_v28 = vor.u32 %v1722_v54, %v1718_v52  ;;  %v1728_v7 = vrot.slane %v1726_v60, 5  ;;  %v9392_v60 = vld [vmem:[#allocation2 + $0x10] sm:$0xf] }
 0x1fd   : > { %v1705_v6 = vsel %vm9037_vm7, %v1700_v39, %v1704_v38  ;;  %v1733_v8 = vrot.slane %v1731_v57, 4  ;;  %v1714_v12 = vrot.slane %v1713_v62, 4  ;;  %v1736_v14 = vrot.slane %v1734_v0, 5 }
 0x1fe   : > { %v6828_v9 = vcombine.low %v1695_v1, %v1705_v6  ;;  %v1742_v16 = vrot.slane %v1740_v58, 5  ;;  %v1724_v3 = vrot.slane %v1723_v28, 4  ;;  %v1746_v13 = vrot.slane %v1744_v61, 4  ;;  %v9395_v28 = vld [vmem:[#allocation2 + $0x14] sm:$0x1] }
 0x1ff   : > { %v1750_v17 = vshll.u32 %v1435_v55, 16  ;;  %v1755_v18 = vshrl.u32 %v9367_v5, 16  ;;  %v1719_v15 = vsel %vm9037_vm7, %v1714_v12, %v1718_v52  ;;  %v1737_v30 = vor.u32 %v1736_v14, %v1733_v8 }
 0x200   : > { %7479 = vmatprep.mubr.bf16.mxu0 %v6828_v9  ;;  %v1758_v2 = vshll.u32 %v9367_v5, 16  ;;  %v1764_v22 = vshll.u32 %v9371_v10, 16  ;;  %v1729_v26 = vsel %vm9037_vm7, %v1724_v3, %v1728_v7  ;;  %v1747_v29 = vor.u32 %v1746_v13, %v1742_v16 }
 0x201   : > { %v1752_v31 = vrot.slane %v1750_v17, 5  ;;  %v1757_v32 = vrot.slane %v1755_v18, 4  ;;  %v6829_v34 = vcombine.low %v1719_v15, %v1729_v26  ;;  %v1738_v35 = vrot.slane %v1737_v30, 4  ;;  %v9402_v15 = vld [vmem:[#allocation2 + $0xb8] sm:$0xf] }
 0x202   : > { %v1760_v50 = vrot.slane %v1758_v2, 5  ;;  %v1766_v4 = vrot.slane %v1764_v22, 5  ;;  %v1748_v38 = vrot.slane %v1747_v29, 4  ;;  %v1768_v40 = vshrl.u32 %v9371_v10, 16  ;;  %v3295_v26 = vld [vmem:[#allocation2 + $0x18] sm:$0xf] }
 0x203   : > { %v1774_v41 = vshll.u32 %v1436_v20, 16  ;;  %v1779_v48 = vshrl.u32 %v9374_v19, 16  ;;  %v1743_v43 = vsel %vm9037_vm7, %v1738_v35, %v1742_v16  ;;  %v1782_v49 = vshll.u32 %v9374_v19, 16  ;;  %v9400_v16 = vld [vmem:[#allocation2 + $0xb4] sm:$0xf] }
 0x204   : > { %7480 = vmatmul.mubr.bf16.gmra.mrb[52].mxu0 %v6829_v34  ;;  %v1761_v45 = vor.u32 %v1760_v50, %v1757_v32  ;;  %v1788_v1 = vshll.u32 %v9380_v33, 16  ;;  %v1753_v51 = vsel %vm9037_vm7, %v1748_v38, %v1752_v31  ;;  %v1770_v52 = vrot.slane %v1768_v40, 4  ;;  %v1438_v38 = vld [vmem:[#allocation2 + $0xbc] sm:$0x1] }
 0x205   : > { %v1776_v39 = vrot.slane %v1774_v41, 5  ;;  %v1781_v54 = vrot.slane %v1779_v48, 4  ;;  %v6830_v55 = vcombine.low %v1743_v43, %v1753_v51  ;;  %v1784_v62 = vrot.slane %v1782_v49, 5  ;;  %v9414_v51 = vld [vmem:[#allocation2 + $0x1c] sm:$0xf] }
 0x206   : > { %v1762_v57 = vrot.slane %v1761_v45, 4  ;;  %v1790_v0 = vrot.slane %v1788_v1, 5  ;;  %v1771_v58 = vor.u32 %v1770_v52, %v1766_v4  ;;  %v1792_v61 = vshrl.u32 %v9380_v33, 16 }
 0x207   : > { %v1798_v6 = vshll.u32 %v1437_v46, 16  ;;  %v3341_v7 = vshrl.u32 %v3292_v37, 16  ;;  %7483 = vmatprep.mubr.bf16.mxu0 %v6830_v55  ;;  %v1785_v9 = vor.u32 %v1784_v62, %v1781_v54  ;;  %v3344_v12 = vshll.u32 %v3292_v37, 16  ;;  %v9418_v55 = vld [vmem:[#allocation2 + $0x20] sm:$0x1] }
 0x208   : > { %v1767_v8 = vsel %vm9037_vm7, %v1762_v57, %v1766_v4  ;;  %v3350_v14 = vshll.u32 %v9392_v60, 16  ;;  %v1772_v3 = vrot.slane %v1771_v58, 4  ;;  %v1794_v13 = vrot.slane %v1792_v61, 4 }
 0x209   : > { %v1800_v17 = vrot.slane %v1798_v6, 5  ;;  %v3343_v18 = vrot.slane %v3341_v7, 4  ;;  %v1786_v30 = vrot.slane %v1785_v9, 4  ;;  %v3346_v20 = vrot.slane %v3344_v12, 5  ;;  %v3298_v6 = vld [vmem:[#allocation2 + $0x24] sm:$0xf] }
 0x20a   : > { %v3352_v2 = vrot.slane %v3350_v14, 5  ;;  %v3354_v22 = vshrl.u32 %v9392_v60, 16  ;;  %v1777_v29 = vsel %vm9037_vm7, %v1772_v3, %v1776_v39  ;;  %v1795_v31 = vor.u32 %v1794_v13, %v1790_v0  ;;  %v9422_v14 = vld [vmem:[#allocation2 + $0x28] sm:$0xf] }
 0x20b   : > { %v3360_v32 = vshll.u32 %v9395_v28, 16  ;;  %v1803_v34 = vshrl.u32 %v9400_v16, 16  ;;  %v6831_v35 = vcombine.low %v1767_v8, %v1777_v29  ;;  %v1791_v50 = vsel %vm9037_vm7, %v1786_v30, %v1790_v0 }
 0x20c   : > { %v3347_v4 = vor.u32 %v3346_v20, %v3343_v18  ;;  %v3356_v37 = vrot.slane %v3354_v22, 4  ;;  %v1796_v40 = vrot.slane %v1795_v31, 4  ;;  %v1806_v43 = vshll.u32 %v9400_v16, 16 }
 0x20d   : > { %v3362_v41 = vrot.slane %v3360_v32, 5  ;;  %v1805_v48 = vrot.slane %v1803_v34, 4  ;;  %7484 = vmatmul.mubr.bf16.gmra.mrb[56].mxu0 %v6831_v35  ;;  %v1812_v49 = vshll.u32 %v9402_v15, 16  ;;  %v1816_v1 = vshrl.u32 %v9402_v15, 16  ;;  %v9429_v34 = vld [vmem:[#allocation2 + $0x2c] sm:$0x1] }
 0x20e   : > { %v3348_v45 = vrot.slane %v3347_v4, 4  ;;  %v3357_v46 = vor.u32 %v3356_v37, %v3352_v2  ;;  %v1801_v52 = vsel %vm9037_vm7, %v1796_v40, %v1800_v17  ;;  %v1808_v39 = vrot.slane %v1806_v43, 5 }
 0x20f   : > { %v1822_v54 = vshll.u32 %v1438_v38, 16  ;;  %v3365_v57 = vshrl.u32 %v3295_v26, 16  ;;  %v6832_v62 = vcombine.low %v1791_v50, %v1801_v52  ;;  %v1814_v61 = vrot.slane %v1812_v49, 5  ;;  %v3301_v38 = vld [vmem:[#allocation2 + $0x30] sm:$0xf] }
 0x210   : > { %v3353_v0 = vsel %vm9037_vm7, %v3348_v45, %v3352_v2  ;;  %v3358_v58 = vrot.slane %v3357_v46, 4  ;;  %v1809_v7 = vor.u32 %v1808_v39, %v1805_v48  ;;  %v1818_v8 = vrot.slane %v1816_v1, 4  ;;  %v9438_v52 = vld [vmem:[#allocation2 + $0x34] sm:$0xf] }
 0x211   : > { %v1824_v9 = vrot.slane %v1822_v54, 5  ;;  %v3367_v12 = vrot.slane %v3365_v57, 4  ;;  %7487 = vmatprep.mubr.bf16.mxu0 %v6832_v62  ;;  %v3368_v13 = vshll.u32 %v3295_v26, 16  ;;  %v3374_v17 = vshll.u32 %v9414_v51, 16 }
 0x212   : > { %v3363_v3 = vsel %vm9037_vm7, %v3358_v58, %v3362_v41  ;;  %v3378_v18 = vshrl.u32 %v9414_v51, 16  ;;  %v1810_v20 = vrot.slane %v1809_v7, 4  ;;  %v1819_v2 = vor.u32 %v1818_v8, %v1814_v61  ;;  %v8446_v7 = vld [vmem:[#allocation2] sm:$0xf]  ;;  %v9442_v8 = vld [vmem:[#allocation2 + $0x4] sm:$0xf] }
 0x213   : > { %v6930_v30 = vcombine.low %v3353_v0, %v3363_v3  ;;  %v3384_v22 = vshll.u32 %v9418_v55, 16  ;;  %v3370_v29 = vrot.slane %v3368_v13, 5  ;;  %v3376_v31 = vrot.slane %v3374_v17, 5  ;;  %v9440_v0 = vld [vmem:[#allocation2 + $0x38] sm:$0x1]  ;;  %v8343_v17 = vld [vmem:[#allocation8 + $0x148] sm:$0xff]  }
 0x214   : > { %v3380_v32 = vrot.slane %v3378_v18, 4  ;;  %v3389_v35 = vshrl.u32 %v3298_v6, 16  ;;  %v1815_v50 = vsel %vm9037_vm7, %v1810_v20, %v1814_v61  ;;  %v1820_v26 = vrot.slane %v1819_v2, 4  ;;  %v8448_v18 = vld [vmem:[#allocation2 + $0xc] sm:$0xf] }
 0x215   : > { %7651 = vmatprep.mubr.bf16.mxu1 %v6930_v30  ;;  %v3386_v4 = vrot.slane %v3384_v22, 5  ;;  %v3392_v37 = vshll.u32 %v3298_v6, 16  ;;  %v3371_v40 = vor.u32 %v3370_v29, %v3367_v12  ;;  %v3398_v43 = vshll.u32 %v9422_v14, 16  ;;  %v3304_v12 = vld [vmem:[#allocation2 + $0x3c] sm:$0xf] }
 0x216   : > { %v3381_v41 = vor.u32 %v3380_v32, %v3376_v31  ;;  %v3391_v48 = vrot.slane %v3389_v35, 4  ;;  %v1825_v45 = vsel %vm9037_vm7, %v1820_v26, %v1824_v9  ;;  %v3402_v49 = vshrl.u32 %v9422_v14, 16  ;;  %v9449_v30 = vld [vmem:[#allocation2 + $0x10] sm:$0xf]  ;;  %v9452_v22 = vld [vmem:[#allocation2 + $0x40] sm:$0xf] }
 0x217   : > { %v3394_v46 = vrot.slane %v3392_v37, 5  ;;  %v3408_v1 = vshll.u32 %v9429_v34, 16  ;;  %v6833_v39 = vcombine.low %v1815_v50, %v1825_v45  ;;  %v3372_v54 = vrot.slane %v3371_v40, 4  ;;  %v9459_v45 = vld [vmem:[#allocation2 + $0x1c] sm:$0xf] }
 0x218   : > { %v3382_v57 = vrot.slane %v3381_v41, 4  ;;  %v3400_v62 = vrot.slane %v3398_v43, 5  ;;  %v3404_v61 = vrot.slane %v3402_v49, 4  ;;  %v6842_v9 = vcombine.low %v8446_v7, %v9442_v8  ;;  %v8450_v43 = vld [vmem:[#allocation2 + $0x18] sm:$0xf] }
 0x219   : > { %v3395_v58 = vor.u32 %v3394_v46, %v3391_v48  ;;  %v3410_v6 = vrot.slane %v3408_v1, 5  ;;  %7488 = vmatmul.mubr.bf16.gmra.mrb[60].mxu0 %v6833_v39  ;;  %v3377_v3 = vsel %vm9037_vm7, %v3372_v54, %v3376_v31  ;;  %v6843_v20 = vcombine.low %v8448_v18, %v9449_v30  ;;  %v9462_v49 = vld [vmem:[#allocation2 + $0x44] sm:$0x1] }
 0x21a   : > { %v3387_v13 = vsel %vm9037_vm7, %v3382_v57, %v3386_v4  ;;  %v3413_v2 = vshrl.u32 %v3301_v38, 16  ;;  %v3405_v35 = vor.u32 %v3404_v61, %v3400_v62  ;;  %7507 = vmatprep.mubr.bf16.mxu0 %v6842_v9  ;;  %v3416_v50 = vshll.u32 %v3301_v38, 16  ;;  %v3307_v38 = vld [vmem:[#allocation2 + $0x48] sm:$0xf] }
 0x21b   : > { %v6931_v29 = vcombine.low %v3377_v3, %v3387_v13  ;;  %v3396_v32 = vrot.slane %v3395_v58, 4  ;;  %v3422_v31 = vshll.u32 %v9438_v52, 16  ;;  %v3426_v37 = vshrl.u32 %v9438_v52, 16 }
 0x21c   : > { %v3415_v26 = vrot.slane %v3413_v2, 4  ;;  %v3432_v4 = vshll.u32 %v9440_v0, 16  ;;  %v3406_v41 = vrot.slane %v3405_v35, 4  ;;  %v3418_v48 = vrot.slane %v3416_v50, 5  ;;  %v8346_v2 = vld [vmem:[#allocation8 + $0x150] sm:$0xff]  }
 0x21d   : > { %7652 = vmatmul.mubr.bf16.vlgmr.msra.gmra.mrb[16].mxu1 %v6931_v29  ;;  %v3401_v40 = vsel %vm9037_vm7, %v3396_v32, %v3400_v62  ;;  %v6844_v46 = vcombine.low %v8450_v43, %v9459_v45  ;;  %v3424_v1 = vrot.slane %v3422_v31, 5  ;;  %v3428_v39 = vrot.slane %v3426_v37, 4  ;;  %v9469_v29 = vld [vmem:[#allocation2 + $0x4c] sm:$0xf]  ;;  %v8359_v31 = vld [vmem:[#allocation8 + $0x88] sm:$0xff]  }
 0x21e   : > { %7684 = vmatpush3.bf16.msra.mxu1 %v9289_v44  ;;  %v3434_v54 = vrot.slane %v3432_v4, 5  ;;  %v3437_v57 = vshrl.u32 %v3304_v12, 16  ;;  %v3411_v58 = vsel %vm9037_vm7, %v3406_v41, %v3410_v6  ;;  %v3419_v62 = vor.u32 %v3418_v48, %v3415_v26  ;;  %v8452_v26 = vld [vmem:[#allocation2 + $0x24] sm:$0xf]  ;;  %v9472_v37 = vld [vmem:[#allocation2 + $0x28] sm:$0xf] }
 0x21f   : > { %7685 = vmatprep.subr.bf16.mxu1 %v8343_v17  ;;  %v3440_v61 = vshll.u32 %v3304_v12, 16  ;;  %v3446_v7 = vshll.u32 %v9452_v22, 16  ;;  %v6932_v9 = vcombine.low %v3401_v40, %v3411_v58  ;;  %v3429_v3 = vor.u32 %v3428_v39, %v3424_v1  ;;  %v9477_v39 = vld [vmem:[#allocation2 + $0x50] sm:$0x1] }
 0x220   : > { %v3439_v13 = vrot.slane %v3437_v57, 4  ;;  %v3450_v18 = vshrl.u32 %v9452_v22, 16  ;;  %v3420_v44 = vrot.slane %v3419_v62, 4  ;;  %v3456_v50 = vshll.u32 %v9462_v49, 16  ;;  %10662 = vst [vmem:[#allocation17_spill] sm:$0xff] %v9477_v39 }
 0x221   : > { %v3442_v32 = vrot.slane %v3440_v61, 5  ;;  %v3448_v35 = vrot.slane %v3446_v7, 5  ;;  %7655 = vmatprep.mubr.bf16.mxu1 %v6932_v9  ;;  %7508 = vmatmul.mubr.bf16.vlgmr.msra.gmra.mrb[32].mxu0 %v6843_v20  ;;  %v3430_v6 = vrot.slane %v3429_v3, 4  ;;  %v6845_v4 = vcombine.low %v8452_v26, %v9472_v37  ;;  %v3310_v7 = vld [vmem:[#allocation2 + $0x54] sm:$0xf] }
 0x222   : > { %v3452_v12 = vrot.slane %v3450_v18, 4  ;;  %v3461_v40 = vshrl.u32 %v3307_v38, 16  ;;  %v3425_v41 = vsel %vm9037_vm7, %v3420_v44, %v3424_v1  ;;  %7686 = vmatpush3.bf16.msra.mxu1 %v8343_v17  ;;  %7511 = vmatprep.mubr.bf16.mxu0 %v6844_v46  ;;  %v3458_v43 = vrot.slane %v3456_v50, 5  ;;  %v8349_v9 = vld [vmem:[#allocation8 + $0x158] sm:$0xff]  }
 0x223   : > { %v3443_v48 = vor.u32 %v3442_v32, %v3439_v13  ;;  %v3464_v57 = vshll.u32 %v3307_v38, 16  ;;  %v3435_v20 = vsel %vm9037_vm7, %v3430_v6, %v3434_v54  ;;  %7687 = vmatprep.subr.bf16.mxu1 %v8346_v2  ;;  %v3470_v61 = vshll.u32 %v9469_v29, 16  ;;  %7540 = vmatpush3.bf16.msra.mxu0 %v9268_v53  ;;  %v9484_v13 = vld [vmem:[#allocation2 + $0x58] sm:$0xf]  ;;  %v8362_v38 = vld [vmem:[#allocation8 + $0x90] sm:$0xff]  }
 0x224   : > { %v3453_v58 = vor.u32 %v3452_v12, %v3448_v35  ;;  %v3463_v62 = vrot.slane %v3461_v40, 4  ;;  %v6933_v1 = vcombine.low %v3425_v41, %v3435_v20  ;;  %v3474_v3 = vshrl.u32 %v9469_v29, 16  ;;  %7541 = vmatprep.subr.bf16.mxu0 %v8359_v31  ;;  %v8454_v32 = vld [vmem:[#allocation2 + $0x30] sm:$0xf]  ;;  %v9487_v50 = vld [vmem:[#allocation2 + $0x34] sm:$0xf] }
 0x225   : > { %v3444_v17 = vrot.slane %v3443_v48, 4  ;;  %v3466_v46 = vrot.slane %v3464_v57, 5  ;;  %v3472_v54 = vrot.slane %v3470_v61, 5  ;;  %v3480_v44 = vshll.u32 %v9477_v39, 16  ;;  %10663 = vst [vmem:[#allocation18_spill] sm:$0xff] %v9487_v50 }
 0x226   : > { %v3454_v18 = vrot.slane %v3453_v58, 4  ;;  %v6846_v6 = vcombine.low %v8454_v32, %v9487_v50  ;;  %7656 = vmatmul.mubr.bf16.gmra.mrb[20].mxu1 %v6933_v1  ;;  %v3476_v26 = vrot.slane %v3474_v3, 4  ;;  %v9492_v40 = vld [vmem:[#allocation2 + $0x5c] sm:$0x1]  ;;  %v3485_v41 = vshrl.u32 %v3310_v7, 16 }
 0x227   : > { %v3449_v53 = vsel %vm9037_vm7, %v3444_v17, %v3448_v35  ;;  %v3467_v12 = vor.u32 %v3466_v46, %v3463_v62  ;;  %10664 = vst [vmem:[#allocation19_spill] sm:$0xff] %v9492_v40  ;;  %v3482_v57 = vrot.slane %v3480_v44, 5  ;;  %7688 = vmatpush3.bf16.msra.mxu1 %v8346_v2  ;;  %v3488_v20 = vshll.u32 %v3310_v7, 16  ;;  %v3313_v61 = vld [vmem:[#allocation2 + $0x60] sm:$0xf]  ;;  %7542 = vmatpush3.bf16.msra.mxu0 %v8359_v31  ;;  %v8352_v35 = vld [vmem:[#allocation8 + $0x160] sm:$0xff]  }
 0x228   : > { %v3459_v48 = vsel %vm9037_vm7, %v3454_v18, %v3458_v43  ;;  %v3494_v58 = vshll.u32 %v9484_v13, 16  ;;  %v3477_v39 = vor.u32 %v3476_v26, %v3472_v54  ;;  %v3487_v50 = vrot.slane %v3485_v41, 4  ;;  %7689 = vmatprep.subr.bf16.mxu1 %v8349_v9  ;;  %7543 = vmatprep.subr.bf16.mxu0 %v8362_v38  ;;  %v8364_v62 = vld [vmem:[#allocation8 + $0x98] sm:$0xff]   ;;  %v9499_v7 = vld [vmem:[#allocation2 + $0x64] sm:$0xf] }
 0x229   : > { %v6934_v32 = vcombine.low %v3449_v53, %v3459_v48  ;;  %v3468_v1 = vrot.slane %v3467_v12, 4  ;;  %7512 = vmatmul.mubr.bf16.gmra.mrb[36].mxu0 %v6845_v4  ;;  %v3490_v17 = vrot.slane %v3488_v20, 5  ;;  %v3498_v43 = vshrl.u32 %v9484_v13, 16  ;;  %10665 = vst [vmem:[#allocation20_spill] sm:$0xff] %v9499_v7  ;;  %v8456_v18 = vld [vmem:[#allocation2 + $0x3c] sm:$0xf] }
 0x22a   : > { %v3496_v46 = vrot.slane %v3494_v58, 5  ;;  %v3504_v2 = vshll.u32 %v9492_v40, 16  ;;  %v3478_v3 = vrot.slane %v3477_v39, 4  ;;  %7515 = vmatprep.mubr.bf16.mxu0 %v6846_v6  ;;  %v9503_v44 = vld [vmem:[#allocation2 + $0x40] sm:$0xf]  ;;  %v3509_v4 = vshrl.u32 %v3313_v61, 16 }
 0x22b   : > { %7659 = vmatprep.mubr.bf16.mxu1 %v6934_v32  ;;  %v3473_v31 = vsel %vm9037_vm7, %v3468_v1, %v3472_v54  ;;  %10666 = vst [vmem:[#allocation21_spill] sm:$0xff] %v9503_v44  ;;  %v6847_v53 = vcombine.low %v8456_v18, %v9503_v44  ;;  %v3491_v12 = vor.u32 %v3490_v17, %v3487_v50  ;;  %v3500_v26 = vrot.slane %v3498_v43, 4  ;;  %v9506_v48 = vld [vmem:[#allocation2 + $0x68] sm:$0x1]  ;;  %v3316_v32 = vld [vmem:[#allocation2 + $0x6c] sm:$0xf] }
 0x22c   : > { %v3506_v41 = vrot.slane %v3504_v2, 5  ;;  %10667 = vst [vmem:[#allocation22_spill] sm:$0xff] %v9506_v48  ;;  %v3512_v20 = vshll.u32 %v3313_v61, 16  ;;  %7690 = vmatpush3.bf16.msra.mxu1 %v8349_v9  ;;  %7544 = vmatpush3.bf16.msra.mxu0 %v8362_v38  ;;  %v3483_v58 = vsel %vm9037_vm7, %v3478_v3, %v3482_v57  ;;  %v3511_v54 = vrot.slane %v3509_v4, 4  ;;  %v8367_v1 = vld [vmem:[#allocation8 + $0xa0] sm:$0xff]   ;;  %v8355_v9 = vld [vmem:[#allocation8 + $0x168] sm:$0xff]  }
 0x22d   : > { %v3518_v39 = vshll.u32 %v9499_v7, 16  ;;  %v3522_v6 = vshrl.u32 %v9499_v7, 16  ;;  %7691 = vmatprep.subr.bf16.mxu1 %v8352_v35  ;;  %7545 = vmatprep.subr.bf16.mxu0 %v8364_v62  ;;  %v6935_v50 = vcombine.low %v3473_v31, %v3483_v58  ;;  %v3492_v17 = vrot.slane %v3491_v12, 4  ;;  %v9512_v18 = vld [vmem:[#allocation2 + $0x70] sm:$0xf] }
 0x22e   : > { %v3501_v43 = vor.u32 %v3500_v26, %v3496_v46  ;;  %v3514_v2 = vrot.slane %v3512_v20, 5  ;;  %v3528_v57 = vshll.u32 %v9506_v48, 16  ;;  %v8458_v3 = vld [vmem:[#allocation2 + $0x48] sm:$0xf]  ;;  %v9515_v4 = vld [vmem:[#allocation2 + $0x4c] sm:$0xf] }
 0x22f   : > { %v3520_v38 = vrot.slane %v3518_v39, 5  ;;  %v3524_v61 = vrot.slane %v3522_v6, 4  ;;  %10668 = vst [vmem:[#allocation23_spill] sm:$0xff] %v9515_v4  ;;  %v6848_v7 = vcombine.low %v8458_v3, %v9515_v4  ;;  %7660 = vmatmul.mubr.bf16.gmra.mrb[24].mxu1 %v6935_v50  ;;  %v3497_v40 = vsel %vm9037_vm7, %v3492_v17, %v3496_v46  ;;  %v3319_v20 = vld [vmem:[#allocation2 + $0x78] sm:$0xf]  ;;  %v8360_v17 = vld [vmem:[#allocation8 + $0x170] sm:$0xff]  }
 0x230   : > { %v3502_v31 = vrot.slane %v3501_v43, 4  ;;  %v3515_v12 = vor.u32 %v3514_v2, %v3511_v54  ;;  %v3533_v26 = vshrl.u32 %v3316_v32, 16  ;;  %7546 = vmatpush3.bf16.msra.mxu0 %v8364_v62  ;;  %v3530_v44 = vrot.slane %v3528_v57, 5  ;;  %v9520_v39 = vld [vmem:[#allocation2 + $0x74] sm:$0x1]  ;;  %7692 = vmatpush3.bf16.msra.mxu1 %v8352_v35  ;;  %v8369_v62 = vld [vmem:[#allocation8 + $0xa8] sm:$0xff]  }
 0x231   : > { %v3525_v58 = vor.u32 %v3524_v61, %v3520_v38  ;;  %v3536_v6 = vshll.u32 %v3316_v32, 16  ;;  %v3542_v48 = vshll.u32 %v9512_v18, 16  ;;  %7547 = vmatprep.subr.bf16.mxu0 %v8367_v1  ;;  %7516 = vmatmul.mubr.bf16.gmra.mrb[40].mxu0 %v6847_v53  ;;  %v3546_v54 = vshrl.u32 %v9512_v18, 16  ;;  %v9526_v57 = vld [vmem:[#allocation2 + $0x7c] sm:$0xf] }
 0x232   : > { %v3507_v50 = vsel %vm9037_vm7, %v3502_v31, %v3506_v41  ;;  %v3516_v3 = vrot.slane %v3515_v12, 4  ;;  %v3535_v46 = vrot.slane %v3533_v26, 4  ;;  %7693 = vmatprep.subr.bf16.mxu1 %v8355_v9  ;;  %7519 = vmatprep.mubr.bf16.mxu0 %v6848_v7  ;;  %v3552_v53 = vshll.u32 %v9520_v39, 16  ;;  %v8460_v41 = vld [vmem:[#allocation2 + $0x54] sm:$0xf] }
 0x233   : > { %v6936_v43 = vcombine.low %v3497_v40, %v3507_v50  ;;  %v3526_v2 = vrot.slane %v3525_v58, 4  ;;  %v3538_v61 = vrot.slane %v3536_v6, 5  ;;  %v3544_v32 = vrot.slane %v3542_v48, 5  ;;  %v9534_v7 = vld [vmem:[#allocation2 + $0x80] sm:$0x1]  ;;  %v8372_v58 = vld [vmem:[#allocation8 + $0xb0] sm:$0xff]  }
 0x234   : > { %v3521_v35 = vsel %vm9037_vm7, %v3516_v3, %v3520_v38  ;;  %v3548_v4 = vrot.slane %v3546_v54, 4  ;;  %v6849_v31 = vcombine.low %v8460_v41, %v9297_v59  ;;  %7548 = vmatpush3.bf16.msra.mxu0 %v8367_v1  ;;  %v3557_v48 = vshrl.u32 %v3319_v20, 16  ;;  %7694 = vmatpush3.bf16.msra.mxu1 %v8355_v9  ;;  %v3322_v54 = vld [vmem:[#allocation2 + $0x84] sm:$0xf]  ;;  %v8365_v59 = vld [vmem:[#allocation8 + $0x178] sm:$0xff]  }
 0x235   : > { %7663 = vmatprep.mubr.bf16.mxu1 %v6936_v43  ;;  %v3531_v40 = vsel %vm9037_vm7, %v3526_v2, %v3530_v44  ;;  %v3539_v12 = vor.u32 %v3538_v61, %v3535_v46  ;;  %v3560_v26 = vshll.u32 %v3319_v20, 16  ;;  %v3554_v50 = vrot.slane %v3552_v53, 5  ;;  %7695 = vmatprep.subr.bf16.mxu1 %v8360_v17  ;;  %v9538_v46 = vld [vmem:[#allocation2 + $0x88] sm:$0xf] }
 0x236   : > { %v6937_v6 = vcombine.low %v3521_v35, %v3531_v40  ;;  %v3549_v38 = vor.u32 %v3548_v4, %v3544_v32  ;;  %v3566_v3 = vshll.u32 %v9526_v57, 16  ;;  %7549 = vmatprep.subr.bf16.mxu0 %v8369_v62  ;;  %v3559_v43 = vrot.slane %v3557_v48, 4  ;;  %v9545_v40 = vld [vmem:[#allocation2 + $0x8c] sm:$0x1]  ;;  %v3325_v48 = vld [vmem:[#allocation2 + $0x90] sm:$0xf] }
 0x237   : > { %v3540_v1 = vrot.slane %v3539_v12, 4  ;;  %v3562_v41 = vrot.slane %v3560_v26, 5  ;;  %v3570_v44 = vshrl.u32 %v9526_v57, 16  ;;  %v3576_v2 = vshll.u32 %v9534_v7, 16 }
 0x238   : > { %7664 = vmatmul.mubr.bf16.gmra.mrb[28].mxu1 %v6937_v6  ;;  %v3550_v20 = vrot.slane %v3549_v38, 4  ;;  %v3568_v9 = vrot.slane %v3566_v3, 5  ;;  %v6850_v4 = vcombine.low %v9305_v21, %v9307_v23  ;;  %7550 = vmatpush3.bf16.msra.mxu0 %v8369_v62  ;;  %v3581_v12 = vshrl.u32 %v3322_v54, 16  ;;  %v9550_v23 = vld [vmem:[#allocation8 + $0x180] sm:$0xff]   ;;  %v8373_v62 = vld [vmem:[#allocation8 + $0xb8] sm:$0xff]  }
 0x239   : > { %v3545_v61 = vsel %vm9037_vm7, %v3540_v1, %v3544_v32  ;;  %v3563_v35 = vor.u32 %v3562_v41, %v3559_v43  ;;  %v3572_v53 = vrot.slane %v3570_v44, 4  ;;  %7696 = vmatpush3.bf16.msra.mxu1 %v8360_v17  ;;  %7551 = vmatprep.subr.bf16.mxu0 %v8372_v58  ;;  %v3578_v6 = vrot.slane %v3576_v2, 5 }
 0x23a   : > { %v3555_v26 = vsel %vm9037_vm7, %v3550_v20, %v3554_v50  ;;  %7520 = vmatmul.mubr.bf16.gmra.mrb[44].mxu0 %v6849_v31  ;;  %v3584_v38 = vshll.u32 %v3322_v54, 16  ;;  %v3590_v21 = vshll.u32 %v9538_v46, 16  ;;  %7697 = vmatprep.subr.bf16.mxu1 %v8365_v59  ;;  %v3583_v43 = vrot.slane %v3581_v12, 4  ;;  %v9554_v31 = vld [vmem:[#allocation2 + $0x94] sm:$0xf] }
 0x23b   : > { %v6938_v32 = vcombine.low %v3545_v61, %v3555_v26  ;;  %v3564_v3 = vrot.slane %v3563_v35, 4  ;;  %v3573_v1 = vor.u32 %v3572_v53, %v3568_v9  ;;  %7523 = vmatprep.mubr.bf16.mxu0 %v6850_v4  ;;  %v3594_v44 = vshrl.u32 %v9538_v46, 16  ;;  %v9560_v12 = vld [vmem:[#allocation2 + $0x98] sm:$0x1] }
 0x23c   : > { %v3586_v41 = vrot.slane %v3584_v38, 5  ;;  %v3592_v17 = vrot.slane %v3590_v21, 5  ;;  %v3600_v50 = vshll.u32 %v9545_v40, 16  ;;  %7552 = vmatpush3.bf16.msra.mxu0 %v8372_v58  ;;  %v6851_v2 = vcombine.low %v9318_v36, %v9323_v25  ;;  %v3328_v36 = vld [vmem:[#allocation2 + $0x9c] sm:$0xf] }
 0x23d   : > { %7667 = vmatprep.mubr.bf16.mxu1 %v6938_v32  ;;  %v3569_v54 = vsel %vm9037_vm7, %v3564_v3, %v3568_v9  ;;  %v3574_v20 = vrot.slane %v3573_v1, 4  ;;  %v3605_v61 = vshrl.u32 %v3325_v48, 16  ;;  %7698 = vmatpush3.bf16.msra.mxu1 %v8365_v59  ;;  %v3596_v35 = vrot.slane %v3594_v44, 4  ;;  %v9567_v1 = vld [vmem:[#allocation2 + $0xa0] sm:$0xf]  ;;  %v9572_v44 = vld [vmem:[#allocation8 + $0xc0] sm:$0xff]  }
 0x23e   : > { %v3587_v4 = vor.u32 %v3586_v41, %v3583_v43  ;;  %v3602_v53 = vrot.slane %v3600_v50, 5  ;;  %v3608_v26 = vshll.u32 %v3325_v48, 16  ;;  %7731 = vmatprep.subr.bf16.mxu1 %v9550_v23  ;;  %7553 = vmatprep.subr.bf16.mxu0 %v8373_v62  ;;  %v3614_v9 = vshll.u32 %v9554_v31, 16 }
 0x23f   : > { %v3579_v58 = vsel %vm9037_vm7, %v3574_v20, %v3578_v6  ;;  %v3607_v38 = vrot.slane %v3605_v61, 4  ;;  %v3618_v21 = vshrl.u32 %v9554_v31, 16  ;;  %v3597_v32 = vor.u32 %v3596_v35, %v3592_v17  ;;  %v9577_v35 = vld [vmem:[#allocation2 + $0xa4] sm:$0x1] }
 0x240   : > { %v6939_v25 = vcombine.low %v3569_v54, %v3579_v58  ;;  %v3588_v59 = vrot.slane %v3587_v4, 4  ;;  %v3610_v3 = vrot.slane %v3608_v26, 5  ;;  %7554 = vmatpush3.bf16.msra.mxu0 %v8373_v62  ;;  %v3616_v48 = vrot.slane %v3614_v9, 5 }
 0x241   : > { %v3620_v43 = vrot.slane %v3618_v21, 4  ;;  %v3624_v41 = vshll.u32 %v9560_v12, 16  ;;  %v6852_v6 = vcombine.low %v9325_v56, %v9334_v63  ;;  %7587 = vmatprep.subr.bf16.mxu0 %v9572_v44  ;;  %v3598_v54 = vrot.slane %v3597_v32, 4  ;;  %v9583_v32 = vld [vmem:[#allocation2 + $0xac] sm:$0xf] }
 0x242   : > { %7668 = vmatmul.mubr.bf16.gmra.mrb[0].mxu1 %v6939_v25  ;;  %v3593_v50 = vsel %vm9037_vm7, %v3588_v59, %v3592_v17  ;;  %7524 = vmatmul.mubr.bf16.gmra.mrb[48].mxu0 %v6851_v2  ;;  %v3611_v20 = vor.u32 %v3610_v3, %v3607_v38  ;;  %v3629_v61 = vshrl.u32 %v3328_v36, 16  ;;  %v3632_v26 = vshll.u32 %v3328_v36, 16  ;;  %v3331_v17 = vld [vmem:[#allocation2 + $0xa8] sm:$0xf] }
 0x243   : > { %v3621_v62 = vor.u32 %v3620_v43, %v3616_v48  ;;  %v3626_v4 = vrot.slane %v3624_v41, 5  ;;  %7527 = vmatprep.mubr.bf16.mxu0 %v6852_v6  ;;  %v3638_v56 = vshll.u32 %v9567_v1, 16  ;;  %v3603_v63 = vsel %vm9037_vm7, %v3598_v54, %v3602_v53 }
 0x244   : > { %v3612_v58 = vrot.slane %v3611_v20, 4  ;;  %v3631_v9 = vrot.slane %v3629_v61, 4  ;;  %v3642_v21 = vshrl.u32 %v9567_v1, 16  ;;  %v6940_v25 = vcombine.low %v3593_v50, %v3603_v63  ;;  %v9592_v50 = vld [vmem:[#allocation2 + $0xb0] sm:$0x1] }
 0x245   : > { %v3622_v2 = vrot.slane %v3621_v62, 4  ;;  %v3634_v38 = vrot.slane %v3632_v26, 5  ;;  %v3640_v59 = vrot.slane %v3638_v56, 5  ;;  %v3648_v43 = vshll.u32 %v9577_v35, 16  ;;  %v3334_v56 = vld [vmem:[#allocation2 + $0xb4] sm:$0xf] }
 0x246   : > { %v3617_v3 = vsel %vm9037_vm7, %v3612_v58, %v3616_v48  ;;  %v3644_v36 = vrot.slane %v3642_v21, 4  ;;  %v6853_v53 = vcombine.low %v9342_v11, %v9347_v24  ;;  %7671 = vmatprep.mubr.bf16.mxu1 %v6940_v25  ;;  %v3653_v54 = vshrl.u32 %v3331_v17, 16  ;;  %v9596_v24 = vld [vmem:[#allocation2 + $0xb8] sm:$0xf] }
 0x247   : > { %v3627_v41 = vsel %vm9037_vm7, %v3622_v2, %v3626_v4  ;;  %v3635_v6 = vor.u32 %v3634_v38, %v3631_v9  ;;  %v3656_v20 = vshll.u32 %v3331_v17, 16  ;;  %v3650_v26 = vrot.slane %v3648_v43, 5 }
 0x248   : > { %v6941_v61 = vcombine.low %v3617_v3, %v3627_v41  ;;  %v3645_v62 = vor.u32 %v3644_v36, %v3640_v59  ;;  %v3662_v48 = vshll.u32 %v9583_v32, 16  ;;  %v3655_v58 = vrot.slane %v3653_v54, 4  ;;  %v9605_v41 = vld [vmem:[#allocation2 + $0xbc] sm:$0x1]  ;;  %v3337_v54 = vld [vmem:[#allocation2 + $0xc0] sm:$0xf] }
 0x249   : > { %v3636_v63 = vrot.slane %v3635_v6, 4  ;;  %v3658_v21 = vrot.slane %v3656_v20, 5  ;;  %v3666_v11 = vshrl.u32 %v9583_v32, 16  ;;  %v3672_v25 = vshll.u32 %v9592_v50, 16 }
 0x24a   : > { %7672 = vmatmul.mubr.bf16.gmra.mrb[4].mxu1 %v6941_v61  ;;  %v3646_v4 = vrot.slane %v3645_v62, 4  ;;  %7528 = vmatmul.mubr.bf16.gmra.mrb[52].mxu0 %v6853_v53  ;;  %v3664_v9 = vrot.slane %v3662_v48, 5  ;;  %v6854_v17 = vcombine.low %v9354_v42, %v9359_v47  ;;  %v3677_v3 = vshrl.u32 %v3334_v56, 16 }
 0x24b   : > { %v3659_v2 = vor.u32 %v3658_v21, %v3655_v58  ;;  %v3668_v38 = vrot.slane %v3666_v11, 4  ;;  %v3641_v36 = vsel %vm9037_vm7, %v3636_v63, %v3640_v59  ;;  %v3680_v6 = vshll.u32 %v3334_v56, 16  ;;  %v9609_v59 = vld [vmem:[#allocation2 + $0xc4] sm:$0xf] }
 0x24c   : > { %v3651_v43 = vsel %vm9037_vm7, %v3646_v4, %v3650_v26  ;;  %7531 = vmatprep.mubr.bf16.mxu0 %v6854_v17  ;;  %v3686_v53 = vshll.u32 %v9596_v24, 16  ;;  %v3679_v42 = vrot.slane %v3677_v3, 4  ;;  %v3674_v47 = vrot.slane %v3672_v25, 5  ;;  %v9616_v25 = vld [vmem:[#allocation2 + $0xc8] sm:$0x1] }
 0x24d   : > { %v6942_v20 = vcombine.low %v3641_v36, %v3651_v43  ;;  %v3660_v61 = vrot.slane %v3659_v2, 4  ;;  %v3669_v62 = vor.u32 %v3668_v38, %v3664_v9  ;;  %v3682_v48 = vrot.slane %v3680_v6, 5 }
 0x24e   : > { %v3688_v58 = vrot.slane %v3686_v53, 5  ;;  %v3690_v21 = vshrl.u32 %v9596_v24, 16  ;;  %v3696_v56 = vshll.u32 %v9605_v41, 16  ;;  %v3701_v11 = vshrl.u32 %v3337_v54, 16 }
 0x24f   : > { %7675 = vmatprep.mubr.bf16.mxu1 %v6942_v20  ;;  %v3665_v26 = vsel %vm9037_vm7, %v3660_v61, %v3664_v9  ;;  %v3670_v63 = vrot.slane %v3669_v62, 4  ;;  %v3683_v4 = vor.u32 %v3682_v48, %v3679_v42  ;;  %v6855_v2 = vcombine.low %v9367_v5, %v9371_v10 }
 0x250   : > { %v3692_v17 = vrot.slane %v3690_v21, 4  ;;  %v3704_v38 = vshll.u32 %v3337_v54, 16  ;;  %v3703_v36 = vrot.slane %v3701_v11, 4  ;;  %v3710_v43 = vshll.u32 %v9609_v59, 16  ;;  %v4046_v21 = vld [vmem:[#allocation2 + $0xc] sm:$0xe] }
 0x251   : > { %v3675_v3 = vsel %vm9037_vm7, %v3670_v63, %v3674_v47  ;;  %v3714_v9 = vshrl.u32 %v9609_v59, 16  ;;  %v3684_v53 = vrot.slane %v3683_v4, 4  ;;  %v3720_v5 = vshll.u32 %v9616_v25, 16 }
 0x252   : > { %v6943_v6 = vcombine.low %v3665_v26, %v3675_v3  ;;  %v3693_v20 = vor.u32 %v3692_v17, %v3688_v58  ;;  %7532 = vmatmul.mubr.bf16.gmra.mrb[56].mxu0 %v6855_v2  ;;  %v3706_v61 = vrot.slane %v3704_v38, 5  ;;  %v3712_v62 = vrot.slane %v3710_v43, 5  ;;  %v4047_v3 = vld [vmem:[#allocation2 + $0x18] sm:$0xe] }
 0x253   : > { %v3716_v42 = vrot.slane %v3714_v9, 4  ;;  %v6856_v10 = vcombine.low %v9374_v19, %v9380_v33  ;;  %v3698_v47 = vrot.slane %v3696_v56, 5  ;;  %v3689_v26 = vsel %vm9037_vm7, %v3684_v53, %v3688_v58 }
 0x254   : > { %7676 = vmatmul.mubr.bf16.gmra.mrb[8].mxu1 %v6943_v6  ;;  %v3694_v54 = vrot.slane %v3693_v20, 4  ;;  %v3707_v48 = vor.u32 %v3706_v61, %v3703_v36  ;;  %v4112_v19 = vrot.slane %v9392_v60, 5  ;;  %v3722_v2 = vrot.slane %v3720_v5, 5  ;;  %v4048_v6 = vld [vmem:[#allocation2 + $0x24] sm:$0xe] }
 0x255   : > { %v3717_v63 = vor.u32 %v3716_v42, %v3712_v62  ;;  %7535 = vmatprep.mubr.bf16.mxu0 %v6856_v10  ;;  %v6954_v38 = vrot.slane %v4046_v21, 9  ;;  %v4115_v43 = vrot.slane %v9395_v28, 5  ;;  %v6857_v58 = vcombine.low %v9400_v16, %v9402_v15  ;;  %v2421_v42 = vld [vmem:[#allocation2] sm:$0xe] }
 0x256   : > { %v3699_v11 = vsel %vm9037_vm7, %v3694_v54, %v3698_v47  ;;  %v3708_v4 = vrot.slane %v3707_v48, 4  ;;  %v4114_v36 = vrot.slane %v4112_v19, 4  ;;  %v4119_v9 = vrot.slane %v9414_v51, 5  ;;  %v2422_v47 = vld [vmem:[#allocation2 + $0xc] sm:$0xe] }
 0x257   : > { %v6944_v33 = vcombine.low %v3689_v26, %v3699_v11  ;;  %v3718_v56 = vrot.slane %v3717_v63, 4  ;;  %v4113_v20 = vsel %vm9629_vm14, %v6954_v38, %v4112_v19  ;;  %v4126_v61 = vrot.slane %v9422_v14, 5  ;;  %v8462_v63 = vld [vmem:[#allocation2 + $0x8] sm:$0x1] }
 0x258   : > { %v3713_v53 = vsel %vm9037_vm7, %v3708_v4, %v3712_v62  ;;  %v4116_v16 = vsel %vm9629_vm14, %v4114_v36, %v4115_v43  ;;  %v4121_v15 = vrot.slane %v4119_v9, 4  ;;  %v4122_v51 = vrot.slane %v9418_v55, 5  ;;  %v8463_v43 = vld [vmem:[#allocation2 + $0x14] sm:$0x1] }
 0x259   : > { %7679 = vmatprep.mubr.bf16.mxu1 %v6944_v33  ;;  %v3723_v60 = vsel %vm9037_vm7, %v3718_v56, %v3722_v2  ;;  %v6970_v5 = vcombine.low %v4113_v20, %v4116_v16  ;;  %v6955_v10 = vrot.slane %v4047_v3, 9  ;;  %v6956_v62 = vrot.slane %v4048_v6, 9  ;;  %v4049_v33 = vld [vmem:[#allocation2 + $0x30] sm:$0xe]  ;;  %v2423_v6 = vld [vmem:[#allocation2 + $0x18] sm:$0xe] }
 0x25a   : > { %v6945_v28 = vcombine.low %v3713_v53, %v3723_v60  ;;  %7536 = vmatmul.mubr.bf16.gmra.mrb[60].mxu0 %v6857_v58  ;;  %v4128_v54 = vrot.slane %v4126_v61, 4  ;;  %v4123_v48 = vsel %vm9629_vm14, %v4121_v15, %v4122_v51  ;;  %v6866_v21 = vrot.slane %v2421_v42, 9  ;;  %v4050_v16 = vld [vmem:[#allocation2 + $0x3c] sm:$0xe]  ;;  %v8374_v15 = vld [vmem:[#allocation8 + $0x188] sm:$0xff]  }
 0x25b   : > { %v2474_v14 = vrot.slane %v9442_v8, 5  ;;  %v2477_v26 = vrot.slane %v8462_v63, 5  ;;  %v4120_v11 = vsel %vm9629_vm14, %v6955_v10, %v4119_v9  ;;  %v4127_v55 = vsel %vm9629_vm14, %v6956_v62, %v4126_v61  ;;  %v8464_v10 = vld [vmem:[#allocation2 + $0x20] sm:$0x1] }
 0x25c   : > { %7680 = vmatmul.mubr.bf16.gmra.mrb[12].mxu1 %v6945_v28  ;;  %v4129_v4 = vrot.slane %v9429_v34, 5  ;;  %v2481_v19 = vrot.slane %v9449_v30, 5  ;;  %v6971_v56 = vcombine.low %v4120_v11, %v4123_v48  ;;  %v6867_v8 = vrot.slane %v2422_v47, 9 }
 0x25d   : > { %7699 = vmatprep.mubr.bf16.mxu1 %v6970_v5  ;;  %v2475_v2 = vsel %vm9629_vm14, %v6866_v21, %v2474_v14  ;;  %v2476_v38 = vrot.slane %v2474_v14, 4  ;;  %v2484_v58 = vrot.slane %v8463_v43, 5  ;;  %v4133_v9 = vrot.slane %v9438_v52, 5  ;;  %v10671_v43 = vld [vmem:[#allocation18_spill] sm:$0xff] }
 0x25e   : > { %v4130_v3 = vsel %vm9629_vm14, %v4128_v54, %v4129_v4  ;;  %v2483_v36 = vrot.slane %v2481_v19, 4  ;;  %v2482_v30 = vsel %vm9629_vm14, %v6867_v8, %v2481_v19  ;;  %v6957_v53 = vrot.slane %v4049_v33, 9  ;;  %v2424_v54 = vld [vmem:[#allocation2 + $0x24] sm:$0xe] }
 0x25f   : > { %v2478_v34 = vsel %vm9629_vm14, %v2476_v38, %v2477_v26  ;;  %v2488_v60 = vrot.slane %v9459_v45, 5  ;;  %v4135_v42 = vrot.slane %v4133_v9, 4  ;;  %v4136_v28 = vrot.slane %v9440_v0, 5  ;;  %v8465_v38 = vld [vmem:[#allocation2 + $0x2c] sm:$0x1] }
 0x260   : > { %v6882_v20 = vcombine.low %v2475_v2, %v2478_v34  ;;  %v2485_v61 = vsel %vm9629_vm14, %v2483_v36, %v2484_v58  ;;  %v6868_v51 = vrot.slane %v2423_v6, 9  ;;  %v2491_v62 = vrot.slane %v8464_v10, 5  ;;  %v2425_v36 = vld [vmem:[#allocation2 + $0x30] sm:$0xe] }
 0x261   : > { %v6883_v52 = vcombine.low %v2482_v30, %v2485_v61  ;;  %v2490_v5 = vrot.slane %v2488_v60, 4  ;;  %v6972_v47 = vcombine.low %v4127_v55, %v4130_v3  ;;  %v4134_v45 = vsel %vm9629_vm14, %v6957_v53, %v4133_v9  ;;  %v8466_v9 = vld [vmem:[#allocation8 + $0xc8] sm:$0xff]   ;;  %v4052_v53 = vld [vmem:[#allocation2 + $0x54] sm:$0xe] }
 0x262   : > { %7555 = vmatprep.mubr.bf16.mxu0 %v6882_v20  ;;  %v4137_v48 = vsel %vm9629_vm14, %v4135_v42, %v4136_v28  ;;  %v4140_v21 = vrot.slane %v9452_v22, 5  ;;  %v2489_v0 = vsel %vm9629_vm14, %v6868_v51, %v2488_v60  ;;  %v6958_v63 = vrot.slane %v4050_v16, 9  ;;  %v4051_v22 = vld [vmem:[#allocation2 + $0x48] sm:$0xe]  ;;  %v8467_v42 = vld [vmem:[#allocation2 + $0x38] sm:$0x1] }
 0x263   : > { %7556 = vmatmul.mubr.bf16.vlgmr.msra.gmra.mrb[32].mxu0 %v6883_v52  ;;  %v2492_v14 = vsel %vm9629_vm14, %v2490_v5, %v2491_v62  ;;  %v2495_v26 = vrot.slane %v9472_v37, 5  ;;  %v4143_v4 = vrot.slane %v9462_v49, 5  ;;  %v6869_v19 = vrot.slane %v2424_v54, 9  ;;  %v2426_v16 = vld [vmem:[#allocation2 + $0x3c] sm:$0xe]  ;;  %v8376_v62 = vld [vmem:[#allocation8 + $0x198] sm:$0xff]  }
 0x264   : > { %7700 = vmatmul.mubr.bf16.vlgmr.msra.gmra.mrb[16].mxu1 %v6971_v56  ;;  %v6884_v11 = vcombine.low %v2489_v0, %v2492_v14  ;;  %v4142_v55 = vrot.slane %v4140_v21, 4  ;;  %v6973_v33 = vcombine.low %v4134_v45, %v4137_v48  ;;  %v8375_v56 = vld [vmem:[#allocation8 + $0x190] sm:$0xff]   ;;  %v2498_v8 = vrot.slane %v8465_v38, 5  ;;  %7588 = vmatpush3.bf16.msra.mxu0 %v9572_v44  ;;  %v10672_v44 = vld [vmem:[#allocation17_spill] sm:$0xff] }
 0x265   : > { %7732 = vmatpush3.bf16.msra.mxu1 %v9550_v23  ;;  %7703 = vmatprep.mubr.bf16.mxu1 %v6972_v47  ;;  %v2497_v2 = vrot.slane %v2495_v26, 4  ;;  %v4147_v3 = vrot.slane %v9469_v29, 5  ;;  %v4141_v37 = vsel %vm9629_vm14, %v6958_v63, %v4140_v21  ;;  %v2496_v23 = vsel %vm9629_vm14, %v6869_v19, %v2495_v26  ;;  %v10673_v45 = vld [vmem:[#allocation21_spill] sm:$0xff]  ;;  %v8468_v21 = vld [vmem:[#allocation8 + $0xd0] sm:$0xff]   ;;  %v8469_v19 = vld [vmem:[#allocation2 + $0x44] sm:$0x1] }
 0x266   : > { %7733 = vmatprep.subr.bf16.mxu1 %v8374_v15  ;;  %7559 = vmatprep.mubr.bf16.mxu0 %v6884_v11  ;;  %v4144_v49 = vsel %vm9629_vm14, %v4142_v55, %v4143_v4  ;;  %v2502_v58 = vrot.slane %v10671_v43, 5  ;;  %v6959_v6 = vrot.slane %v4051_v22, 9  ;;  %v4150_v30 = vrot.slane %v10672_v44, 5  ;;  %v10674_v63 = vld [vmem:[#allocation19_spill] sm:$0xff]  ;;  %v4053_v11 = vld [vmem:[#allocation2 + $0x60] sm:$0xe] }
 0x267   : > { %7589 = vmatprep.subr.bf16.mxu0 %v8466_v9  ;;  %v2499_v29 = vsel %vm9629_vm14, %v2497_v2, %v2498_v8  ;;  %v4149_v34 = vrot.slane %v4147_v3, 4  ;;  %v6974_v60 = vcombine.low %v4141_v37, %v4144_v49  ;;  %v6870_v20 = vrot.slane %v2425_v36, 9  ;;  %v10675_v2 = vld [vmem:[#allocation20_spill] sm:$0xff]  ;;  %v2427_v8 = vld [vmem:[#allocation2 + $0x48] sm:$0xe] }
 0x268   : > { %v2504_v61 = vrot.slane %v2502_v58, 4  ;;  %v2505_v28 = vrot.slane %v8467_v42, 5  ;;  %v6885_v52 = vcombine.low %v2496_v23, %v2499_v29  ;;  %v9696_v51 = vsel %vm9629_vm14, %v6959_v6, %v4147_v3  ;;  %7590 = vmatpush3.bf16.msra.mxu0 %v8466_v9  ;;  %v10676_v37 = vld [vmem:[#allocation23_spill] sm:$0xff]  ;;  %v10677_v9 = vld [vmem:[#allocation22_spill] sm:$0xff] }
 0x269   : > { %7734 = vmatpush3.bf16.msra.mxu1 %v8374_v15  ;;  %v9700_v5 = vsel %vm9629_vm14, %v4149_v34, %v4150_v30  ;;  %v4154_v10 = vrot.slane %v9484_v13, 5  ;;  %v2503_v15 = vsel %vm9629_vm14, %v6870_v20, %v2502_v58  ;;  %v6960_v47 = vrot.slane %v4052_v53, 9  ;;  %7591 = vmatprep.subr.bf16.mxu0 %v8468_v21  ;;  %v8470_v30 = vld [vmem:[#allocation2 + $0x50] sm:$0x1] }
 0x26a   : > { %7735 = vmatprep.subr.bf16.mxu1 %v8375_v56  ;;  %v2506_v54 = vsel %vm9629_vm14, %v2504_v61, %v2505_v28  ;;  %v2509_v48 = vrot.slane %v10673_v45, 5  ;;  %v4157_v26 = vrot.slane %v10674_v63, 5  ;;  %v6871_v13 = vrot.slane %v2426_v16, 9  ;;  %v8471_v20 = vld [vmem:[#allocation8 + $0xd8] sm:$0xff]   ;;  %v8473_v63 = vld [vmem:[#allocation2 + $0x5c] sm:$0x1] }
 0x26b   : > { %7560 = vmatmul.mubr.bf16.gmra.mrb[36].mxu0 %v6885_v52  ;;  %v6886_v0 = vcombine.low %v2503_v15, %v2506_v54  ;;  %v4156_v14 = vrot.slane %v4154_v10, 4  ;;  %v6975_v55 = vcombine.low %v9696_v51, %v9700_v5  ;;  %v2512_v22 = vrot.slane %v8469_v19, 5  ;;  %v2428_v52 = vld [vmem:[#allocation2 + $0x54] sm:$0xe]  ;;  %v8472_v15 = vld [vmem:[#allocation2 + $0x58] sm:$0xf] }
 0x26c   : > { %7704 = vmatmul.mubr.bf16.gmra.mrb[20].mxu1 %v6973_v33  ;;  %v2511_v4 = vrot.slane %v2509_v48, 4  ;;  %v4161_v38 = vrot.slane %v10675_v2, 5  ;;  %v4155_v33 = vsel %vm9629_vm14, %v6960_v47, %v4154_v10  ;;  %v2510_v36 = vsel %vm9629_vm14, %v6871_v13, %v2509_v48  ;;  %7592 = vmatpush3.bf16.msra.mxu0 %v8468_v21  ;;  %v4055_v47 = vld [vmem:[#allocation2 + $0x78] sm:$0xe] }
 0x26d   : > { %7707 = vmatprep.mubr.bf16.mxu1 %v6974_v60  ;;  %7736 = vmatpush3.bf16.msra.mxu1 %v8375_v56  ;;  %v4158_v3 = vsel %vm9629_vm14, %v4156_v14, %v4157_v26  ;;  %v2516_v49 = vrot.slane %v10676_v37, 5  ;;  %v8377_v56 = vld [vmem:[#allocation8 + $0x1a0] sm:$0xff]   ;;  %v6961_v43 = vrot.slane %v4053_v11, 9  ;;  %v4164_v29 = vrot.slane %v10677_v9, 5  ;;  %v4054_v60 = vld [vmem:[#allocation2 + $0x6c] sm:$0xe] }
 0x26e   : > { %7563 = vmatprep.mubr.bf16.mxu0 %v6886_v0  ;;  %7737 = vmatprep.subr.bf16.mxu1 %v8376_v62  ;;  %v2513_v23 = vsel %vm9629_vm14, %v2511_v4, %v2512_v22  ;;  %v4163_v58 = vrot.slane %v4161_v38, 4  ;;  %v6976_v6 = vcombine.low %v4155_v33, %v4158_v3  ;;  %v6872_v34 = vrot.slane %v2427_v8, 9  ;;  %v8474_v22 = vld [vmem:[#allocation2 + $0x64] sm:$0xf]  ;;  %v8476_v37 = vld [vmem:[#allocation2 + $0x68] sm:$0x1] }
 0x26f   : > { %v2518_v44 = vrot.slane %v2516_v49, 4  ;;  %v2519_v53 = vrot.slane %v8470_v30, 5  ;;  %7593 = vmatprep.subr.bf16.mxu0 %v8471_v20  ;;  %v6887_v61 = vcombine.low %v2510_v36, %v2513_v23  ;;  %v9724_v42 = vsel %vm9629_vm14, %v6961_v43, %v4161_v38  ;;  %v4056_v23 = vld [vmem:[#allocation2 + $0x84] sm:$0xe]  ;;  %v8379_v43 = vld [vmem:[#allocation8 + $0x1b0] sm:$0xff]  }
 0x270   : > { %v9728_v28 = vsel %vm9629_vm14, %v4163_v58, %v4164_v29  ;;  %v4168_v16 = vrot.slane %v9512_v18, 5  ;;  %v2517_v5 = vsel %vm9629_vm14, %v6872_v34, %v2516_v49  ;;  %v2523_v54 = vrot.slane %v8472_v15, 5  ;;  %v8378_v18 = vld [vmem:[#allocation8 + $0x1a8] sm:$0xff]   ;;  %7594 = vmatpush3.bf16.msra.mxu0 %v8471_v20  ;;  %v2430_v30 = vld [vmem:[#allocation2 + $0x6c] sm:$0xe] }
 0x271   : > { %7738 = vmatpush3.bf16.msra.mxu1 %v8376_v62  ;;  %v6977_v51 = vcombine.low %v9724_v42, %v9728_v28  ;;  %v2520_v10 = vsel %vm9629_vm14, %v2518_v44, %v2519_v53  ;;  %v6962_v48 = vrot.slane %v4054_v60, 9  ;;  %v4171_v62 = vrot.slane %v9520_v39, 5  ;;  %v2429_v39 = vld [vmem:[#allocation2 + $0x60] sm:$0xe]  ;;  %v8478_v53 = vld [vmem:[#allocation2 + $0x70] sm:$0xf] }
 0x272   : > { %7739 = vmatprep.subr.bf16.mxu1 %v8377_v56  ;;  %v6888_v45 = vcombine.low %v2517_v5, %v2520_v10  ;;  %v4170_v21 = vrot.slane %v4168_v16, 4  ;;  %v6873_v0 = vrot.slane %v2428_v52, 9  ;;  %v2525_v14 = vrot.slane %v2523_v54, 4  ;;  %v8477_v29 = vld [vmem:[#allocation8 + $0xe8] sm:$0xff]  }
 0x273   : > { %7564 = vmatmul.mubr.bf16.gmra.mrb[40].mxu0 %v6887_v61  ;;  %v2526_v26 = vrot.slane %v8473_v63, 5  ;;  %v4175_v13 = vrot.slane %v9526_v57, 5  ;;  %v4169_v11 = vsel %vm9629_vm14, %v6962_v48, %v4168_v16  ;;  %v6963_v19 = vrot.slane %v4055_v47, 9  ;;  %v8475_v57 = vld [vmem:[#allocation8 + $0xe0] sm:$0xff]   ;;  %v8380_v47 = vld [vmem:[#allocation8 + $0x1b8] sm:$0xff]  }
 0x274   : > { %7708 = vmatmul.mubr.bf16.gmra.mrb[24].mxu1 %v6975_v55  ;;  %7567 = vmatprep.mubr.bf16.mxu0 %v6888_v45  ;;  %v4172_v4 = vsel %vm9629_vm14, %v4170_v21, %v4171_v62  ;;  %v2530_v2 = vrot.slane %v8474_v22, 5  ;;  %v4178_v33 = vrot.slane %v9534_v7, 5  ;;  %v2524_v3 = vsel %vm9629_vm14, %v6873_v0, %v2523_v54  ;;  %v2431_v54 = vld [vmem:[#allocation2 + $0x78] sm:$0xe]  ;;  %v8479_v48 = vld [vmem:[#allocation2 + $0x74] sm:$0x1] }
 0x275   : > { %7711 = vmatprep.mubr.bf16.mxu1 %v6976_v6  ;;  %v6978_v55 = vcombine.low %v4169_v11, %v4172_v4  ;;  %v2527_v38 = vsel %vm9629_vm14, %v2525_v14, %v2526_v26  ;;  %v4177_v8 = vrot.slane %v4175_v13, 4  ;;  %7740 = vmatpush3.bf16.msra.mxu1 %v8377_v56  ;;  %v2533_v49 = vrot.slane %v8476_v37, 5  ;;  %v8480_v62 = vld [vmem:[#allocation2 + $0x7c] sm:$0xf]  ;;  %v8481_v26 = vld [vmem:[#allocation2 + $0x80] sm:$0x1] }
 0x276   : > { %7595 = vmatprep.subr.bf16.mxu0 %v8475_v57  ;;  %v2532_v36 = vrot.slane %v2530_v2, 4  ;;  %7741 = vmatprep.subr.bf16.mxu1 %v8378_v18  ;;  %v9750_v58 = vsel %vm9629_vm14, %v6963_v19, %v4175_v13  ;;  %v6874_v56 = vrot.slane %v2429_v39, 9  ;;  %v4182_v9 = vrot.slane %v9538_v46, 5  ;;  %v4057_v46 = vld [vmem:[#allocation2 + $0x90] sm:$0xe]  ;;  %v8482_v4 = vld [vmem:[#allocation8 + $0xf0] sm:$0xff]  }
 0x277   : > { %7596 = vmatpush3.bf16.msra.mxu0 %v8475_v57  ;;  %v9754_v7 = vsel %vm9629_vm14, %v4177_v8, %v4178_v33  ;;  %v6889_v6 = vcombine.low %v2524_v3, %v2527_v38  ;;  %v2537_v60 = vrot.slane %v8478_v53, 5  ;;  %v6964_v61 = vrot.slane %v4056_v23, 9  ;;  %v4058_v11 = vld [vmem:[#allocation2 + $0x9c] sm:$0xe]  ;;  %v8483_v33 = vld [vmem:[#allocation2 + $0x88] sm:$0xf] }
 0x278   : > { %7597 = vmatprep.subr.bf16.mxu0 %v8477_v29  ;;  %v6979_v34 = vcombine.low %v9750_v58, %v9754_v7  ;;  %v2534_v44 = vsel %vm9629_vm14, %v2532_v36, %v2533_v49  ;;  %v2531_v20 = vsel %vm9629_vm14, %v6874_v56, %v2530_v2  ;;  %v4184_v16 = vrot.slane %v4182_v9, 4  ;;  %v9784_v2 = vld [vmem:[#allocation8 + $0x1c0] sm:$0xff]   ;;  %v8484_v3 = vld [vmem:[#allocation8 + $0xf8] sm:$0xff]   ;;  %v4059_v23 = vld [vmem:[#allocation2 + $0xa8] sm:$0xe] }
 0x279   : > { %v4185_v52 = vrot.slane %v9545_v40, 5  ;;  %7742 = vmatpush3.bf16.msra.mxu1 %v8378_v18  ;;  %v6890_v5 = vcombine.low %v2531_v20, %v2534_v44  ;;  %v2539_v10 = vrot.slane %v2537_v60, 4  ;;  %v4189_v15 = vrot.slane %v9554_v31, 5  ;;  %v2432_v44 = vld [vmem:[#allocation2 + $0x84] sm:$0xe] }
 0x27a   : > { %7743 = vmatprep.subr.bf16.mxu1 %v8379_v43  ;;  %v4183_v45 = vsel %vm9629_vm14, %v6964_v61, %v4182_v9  ;;  %v2540_v21 = vrot.slane %v8479_v48, 5  ;;  %v2544_v18 = vrot.slane %v8480_v62, 5  ;;  %v6965_v0 = vrot.slane %v4057_v46, 9  ;;  %v2433_v53 = vld [vmem:[#allocation2 + $0x90] sm:$0xe] }
 0x27b   : > { %7598 = vmatpush3.bf16.msra.mxu0 %v8477_v29  ;;  %v4186_v40 = vsel %vm9629_vm14, %v4184_v16, %v4185_v52  ;;  %v4191_v14 = vrot.slane %v4189_v15, 4  ;;  %v4192_v63 = vrot.slane %v9560_v12, 5  ;;  %v6875_v42 = vrot.slane %v2430_v30, 9  ;;  %v8486_v52 = vld [vmem:[#allocation2 + $0x8c] sm:$0x1] }
 0x27c   : > { %7712 = vmatmul.mubr.bf16.gmra.mrb[28].mxu1 %v6977_v51  ;;  %7568 = vmatmul.mubr.bf16.gmra.mrb[44].mxu0 %v6889_v6  ;;  %v6980_v31 = vcombine.low %v4183_v45, %v4186_v40  ;;  %v6876_v28 = vrot.slane %v2431_v54, 9  ;;  %v2546_v51 = vrot.slane %v2544_v18, 4  ;;  %v2547_v13 = vrot.slane %v8481_v26, 5  ;;  %v8488_v40 = vld [vmem:[#allocation2 + $0xa0] sm:$0xf] }
 0x27d   : > { %7715 = vmatprep.mubr.bf16.mxu1 %v6978_v55  ;;  %7571 = vmatprep.mubr.bf16.mxu0 %v6890_v5  ;;  %v2541_v19 = vsel %vm9629_vm14, %v2539_v10, %v2540_v21  ;;  %v9777_v39 = vsel %vm9629_vm14, %v6965_v0, %v4189_v15  ;;  %v9781_v22 = vsel %vm9629_vm14, %v4191_v14, %v4192_v63  ;;  %v4196_v12 = vrot.slane %v9567_v1, 5  ;;  %v8487_v10 = vld [vmem:[#allocation2 + $0x98] sm:$0x1]  ;;  %v4061_v62 = vld [vmem:[#allocation2 + $0xc0] sm:$0xe] }
 0x27e   : > { %7744 = vmatpush3.bf16.msra.mxu1 %v8379_v43  ;;  %7599 = vmatprep.subr.bf16.mxu0 %v8482_v4  ;;  %v2538_v55 = vsel %vm9629_vm14, %v6875_v42, %v2537_v60  ;;  %v6981_v38 = vcombine.low %v9777_v39, %v9781_v22  ;;  %v2548_v8 = vsel %vm9629_vm14, %v2546_v51, %v2547_v13  ;;  %v2551_v57 = vrot.slane %v8483_v33, 5  ;;  %v8485_v60 = vld [vmem:[#allocation2 + $0x94] sm:$0xf]  ;;  %v8489_v42 = vld [vmem:[#allocation2 + $0xac] sm:$0xf] }
 0x27f   : > { %7745 = vmatprep.subr.bf16.mxu1 %v8380_v47  ;;  %7600 = vmatpush3.bf16.msra.mxu0 %v8482_v4  ;;  %v2545_v1 = vsel %vm9629_vm14, %v6876_v28, %v2544_v18  ;;  %v6966_v36 = vrot.slane %v4058_v11, 9  ;;  %v4198_v37 = vrot.slane %v4196_v12, 4  ;;  %v4199_v49 = vrot.slane %v9577_v35, 5  ;;  %v2434_v4 = vld [vmem:[#allocation2 + $0x9c] sm:$0xe] }
 0x280   : > { %7601 = vmatprep.subr.bf16.mxu0 %v8484_v3  ;;  %v6891_v43 = vcombine.low %v2538_v55, %v2541_v19  ;;  %v6892_v56 = vcombine.low %v2545_v1, %v2548_v8  ;;  %v4203_v9 = vrot.slane %v9583_v32, 5  ;;  %v2553_v30 = vrot.slane %v2551_v57, 4  ;;  %v4060_v39 = vld [vmem:[#allocation2 + $0xb4] sm:$0xe]  ;;  %v8490_v22 = vld [vmem:[#allocation2 + $0xa4] sm:$0x1] }
 0x281   : > { %v4197_v29 = vsel %vm9629_vm14, %v6966_v36, %v4196_v12  ;;  %v4200_v6 = vsel %vm9629_vm14, %v4198_v37, %v4199_v49  ;;  %v2558_v20 = vrot.slane %v8485_v60, 5  ;;  %v6967_v32 = vrot.slane %v4059_v23, 9  ;;  %v2435_v8 = vld [vmem:[#allocation2 + $0xa8] sm:$0xe]  ;;  %v8492_v36 = vld [vmem:[#allocation2 + $0xb8] sm:$0xf] }
 0x282   : > { %7746 = vmatpush3.bf16.msra.mxu1 %v8380_v47  ;;  %v6982_v35 = vcombine.low %v4197_v29, %v4200_v6  ;;  %v4205_v61 = vrot.slane %v4203_v9, 4  ;;  %v4206_v16 = vrot.slane %v9592_v50, 5  ;;  %v2554_v46 = vrot.slane %v8486_v52, 5  ;;  %v2436_v60 = vld [vmem:[#allocation2 + $0xb4] sm:$0xe] }
 0x283   : > { %7779 = vmatprep.subr.bf16.mxu1 %v9784_v2  ;;  %7602 = vmatpush3.bf16.msra.mxu0 %v8484_v3  ;;  %v2560_v5 = vrot.slane %v2558_v20, 4  ;;  %v2561_v15 = vrot.slane %v8487_v10, 5  ;;  %v6877_v54 = vrot.slane %v2432_v44, 9  ;;  %v4204_v47 = vsel %vm9629_vm14, %v6967_v32, %v4203_v9  ;;  %v8383_v10 = vld [vmem:[#allocation2 + $0x24] sm:$0xff]  }
 0x284   : > { %7716 = vmatmul.mubr.bf16.gmra.mrb[0].mxu1 %v6979_v34  ;;  %7572 = vmatmul.mubr.bf16.gmra.mrb[48].mxu0 %v6891_v43  ;;  %v4207_v58 = vsel %vm9629_vm14, %v4205_v61, %v4206_v16  ;;  %v6878_v7 = vrot.slane %v2433_v53, 9  ;;  %v2555_v34 = vsel %vm9629_vm14, %v2553_v30, %v2554_v46  ;;  %v2565_v48 = vrot.slane %v8488_v40, 5  ;;  %v8381_v46 = vld [vmem:[#allocation2 + $0x18] sm:$0xff]   ;;  %v8392_v40 = vld [vmem:[#allocation2 + $0x30] sm:$0xff]  }
 0x285   : > { %7719 = vmatprep.mubr.bf16.mxu1 %v6980_v31  ;;  %7575 = vmatprep.mubr.bf16.mxu0 %v6892_v56  ;;  %v6983_v45 = vcombine.low %v4204_v47, %v4207_v58  ;;  %v2562_v50 = vsel %vm9629_vm14, %v2560_v5, %v2561_v15  ;;  %v4210_v21 = vrot.slane %v9596_v24, 5  ;;  %v2552_v18 = vsel %vm9629_vm14, %v6877_v54, %v2551_v57  ;;  %v8384_v5 = vld [vmem:[#allocation2 + $0xc] sm:$0xff]   ;;  %v8386_v15 = vld [vmem:[#allocation8 + $0x1c8] sm:$0xff]   ;;  %v8387_v54 = vld [vmem:[#allocation2 + $0x18] sm:$0xff]  }
 0x286   : > { %v2559_v31 = vsel %vm9629_vm14, %v6878_v7, %v2558_v20  ;;  %v4217_v0 = vrot.slane %v9609_v59, 5  ;;  %v6893_v14 = vcombine.low %v2552_v18, %v2555_v34  ;;  %v2572_v28 = vrot.slane %v8489_v42, 5  ;;  %v8493_v20 = vld [vmem:[#allocation2 + $0xbc] sm:$0x1]  ;;  %v8385_v47 = vld [vmem:[#allocation2 + $0x30] sm:$0xff]   ;;  %v8389_v58 = vld [vmem:[#allocation2 + $0x24] sm:$0xff]  }
 0x287   : > { %v6894_v63 = vcombine.low %v2559_v31, %v2562_v50  ;;  %v2567_v51 = vrot.slane %v2565_v48, 4  ;;  %v6969_v26 = vrot.slane %v4061_v62, 9  ;;  %v4220_v11 = vrot.slane %v9616_v25, 5  ;;  %v8391_v7 = vld [vmem:[#allocation8 + $0x1d0] sm:$0xff]   ;;  %v4931_v34 = vld [vmem:[#allocation2 + $0x18] sm:$0xf] }
 0x288   : > { %v4219_v13 = vrot.slane %v4217_v0, 4  ;;  %v4212_v24 = vrot.slane %v4210_v21, 4  ;;  %v2574_v19 = vrot.slane %v2572_v28, 4  ;;  %v2568_v12 = vrot.slane %v8490_v22, 5  ;;  %v8388_v50 = vld [vmem:[#allocation2 + $0x3c] sm:$0xff]   ;;  %v8390_v18 = vld [vmem:[#allocation2 + $0x48] sm:$0xff]  }
 0x289   : > { %v4218_v59 = vsel %vm9629_vm14, %v6969_v26, %v4217_v0  ;;  %v4213_v33 = vrot.slane %v9605_v41, 5  ;;  %v6879_v3 = vrot.slane %v2434_v4, 9  ;;  %v2579_v37 = vrot.slane %v8492_v36, 5  ;;  %v8401_v42 = vld [vmem:[#allocation8 + $0x1e0] sm:$0xff]   ;;  %v8395_v22 = vld [vmem:[#allocation2 + $0x60] sm:$0xff]  }
 0x28a   : > { %v4221_v55 = vsel %vm9629_vm14, %v4219_v13, %v4220_v11  ;;  %v2569_v1 = vsel %vm9629_vm14, %v2567_v51, %v2568_v12  ;;  %v6968_v49 = vrot.slane %v4060_v39, 9  ;;  %v6880_v43 = vrot.slane %v2435_v8, 9  ;;  %v8393_v39 = vld [vmem:[#allocation2 + $0x54] sm:$0xff]   ;;  %v8397_v12 = vld [vmem:[#allocation2 + $0x48] sm:$0xff]   ;;  %v4937_v36 = vld [vmem:[#allocation2 + $0x30] sm:$0xf] }
 0x28b   : > { %v6985_v25 = vcombine.low %v4218_v59, %v4221_v55  ;;  %v4214_v23 = vsel %vm9629_vm14, %v4212_v24, %v4213_v33  ;;  %v2566_v41 = vsel %vm9629_vm14, %v6879_v3, %v2565_v48  ;;  %v2581_v53 = vrot.slane %v2579_v37, 4  ;;  %v8396_v48 = vld [vmem:[#allocation8 + $0x1d8] sm:$0xff]   ;;  %v9844_v59 = vld [vmem:[#allocation2 + $0x20] sm:$0x1] }
 0x28c   : > { %7720 = vmatmul.mubr.bf16.gmra.mrb[4].mxu1 %v6981_v38  ;;  %7576 = vmatmul.mubr.bf16.gmra.mrb[52].mxu0 %v6893_v14  ;;  %v8491_v38 = vld [vmem:[#allocation2 + $0xb0] sm:$0x1]  ;;  %v4211_v9 = vsel %vm9629_vm14, %v6968_v49, %v4210_v21  ;;  %v6895_v29 = vcombine.low %v2566_v41, %v2569_v1  ;;  %v2573_v6 = vsel %vm9629_vm14, %v6880_v43, %v2572_v28  ;;  %v6881_v32 = vrot.slane %v2436_v60, 9  ;;  %v4934_v14 = vld [vmem:[#allocation2 + $0x24] sm:$0xf] }
 0x28d   : > { %7723 = vmatprep.mubr.bf16.mxu1 %v6982_v35  ;;  %7579 = vmatprep.mubr.bf16.mxu0 %v6894_v63  ;;  %v2575_v57 = vrot.slane %v8491_v38, 5  ;;  %v6984_v44 = vcombine.low %v4211_v9, %v4214_v23  ;;  %v2582_v35 = vrot.slane %v8493_v20, 5  ;;  %v4980_v21 = vshrl.u32 %v4931_v34, 16  ;;  %v4935_v63 = vld [vmem:[#allocation2 + $0x28] sm:$0xf]  ;;  %v8405_v38 = vld [vmem:[#allocation8 + $0x1e8] sm:$0xff]  }
 0x28e   : > { %v2580_v16 = vsel %vm9629_vm14, %v6881_v32, %v2579_v37  ;;  %v4983_v62 = vshll.u32 %v4931_v34, 16  ;;  %v5004_v26 = vshrl.u32 %v4934_v14, 16  ;;  %v5007_v13 = vshll.u32 %v4934_v14, 16  ;;  %v9850_v49 = vld [vmem:[#allocation2 + $0x34] sm:$0xf]  ;;  %v8400_v32 = vld [vmem:[#allocation2 + $0x78] sm:$0xff]  }
 0x28f   : > { %v2576_v56 = vsel %vm9629_vm14, %v2574_v19, %v2575_v57  ;;  %v2583_v61 = vsel %vm9629_vm14, %v2581_v53, %v2582_v35  ;;  %v4982_v28 = vrot.slane %v4980_v21, 4  ;;  %v5013_v4 = vshll.u32 %v4935_v63, 16  ;;  %v9852_v43 = vld [vmem:[#allocation2 + $0x2c] sm:$0x1]  ;;  %v4940_v20 = vld [vmem:[#allocation2 + $0x3c] sm:$0xf] }
 0x290   : > { %v6896_v30 = vcombine.low %v2573_v6, %v2576_v56  ;;  %v6897_v52 = vcombine.low %v2580_v16, %v2583_v61  ;;  %v4985_v51 = vrot.slane %v4983_v62, 5  ;;  %v5017_v19 = vshrl.u32 %v4935_v63, 16  ;;  %v8398_v35 = vld [vmem:[#allocation2 + $0x6c] sm:$0xff]   ;;  %v4943_v14 = vld [vmem:[#allocation2 + $0x48] sm:$0xf] }
 0x291   : > { %v5006_v8 = vrot.slane %v5004_v26, 4  ;;  %v5009_v33 = vrot.slane %v5007_v13, 5  ;;  %v9847_v3 = vrot.slane %v5013_v4, 5  ;;  %v4999_v37 = vshll.u32 %v9844_v59, 16  ;;  %v9885_v13 = vld [vmem:[#allocation8 + $0x200] sm:$0xff]  }
 0x292   : > { %v4986_v55 = vor.u32 %v4985_v51, %v4982_v28  ;;  %v5019_v1 = vrot.slane %v5017_v19, 4  ;;  %v5028_v41 = vshrl.u32 %v4937_v36, 16  ;;  %v5031_v9 = vshll.u32 %v4937_v36, 16  ;;  %v9891_v19 = vld [vmem:[#allocation2 + $0x44] sm:$0x1] }
 0x293   : > { %v5010_v56 = vor.u32 %v5009_v33, %v5006_v8  ;;  %v5037_v53 = vshll.u32 %v9850_v49, 16  ;;  %v5041_v60 = vshrl.u32 %v9850_v49, 16  ;;  %v5001_v61 = vrot.slane %v4999_v37, 5  ;;  %v9898_v36 = vld [vmem:[#allocation2 + $0x64] sm:$0xf] }
 0x294   : > { %7724 = vmatmul.mubr.bf16.gmra.mrb[8].mxu1 %v6983_v45  ;;  %7580 = vmatmul.mubr.bf16.gmra.mrb[56].mxu0 %v6895_v29  ;;  %v4932_v45 = vld [vmem:[#allocation2 + $0x1c] sm:$0xf]  ;;  %v4987_v23 = vrot.slane %v4986_v55, 4  ;;  %v8408_v29 = vld [vmem:[#allocation8 + $0x1f0] sm:$0xff]   ;;  %v5023_v16 = vshll.u32 %v9852_v43, 16  ;;  %v5055_v62 = vshll.u32 %v4940_v20, 16 }
 0x295   : > { %7727 = vmatprep.mubr.bf16.mxu1 %v6984_v44  ;;  %7583 = vmatprep.mubr.bf16.mxu0 %v6896_v30  ;;  %v4989_v31 = vshll.u32 %v4932_v45, 16  ;;  %v4993_v0 = vshrl.u32 %v4932_v45, 16  ;;  %v5020_v44 = vor.u32 %v5019_v1, %v9847_v3  ;;  %v9855_v30 = vld [vmem:[#allocation2 + $0x38] sm:$0x1]  ;;  %v5043_v21 = vrot.slane %v5041_v60, 4  ;;  %v8403_v37 = vld [vmem:[#allocation2 + $0x84] sm:$0xff]  }
 0x296   : > { %v5047_v45 = vshll.u32 %v9855_v30, 16  ;;  %v5057_v55 = vrot.slane %v5055_v62, 5  ;;  %v5076_v33 = vshrl.u32 %v4943_v14, 16 }
 0x297   : > { %v9842_v11 = vrot.slane %v4989_v31, 5  ;;  %v4995_v24 = vrot.slane %v4993_v0, 4  ;;  %v5021_v34 = vrot.slane %v5020_v44, 4  ;;  %v5025_v31 = vrot.slane %v5023_v16, 5  ;;  %v4952_v16 = vld [vmem:[#allocation2 + $0x6c] sm:$0xf] }
 0x298   : > { %v9889_v4 = vrot.slane %v5047_v45, 5 }
 0x299   : > { %v4996_v57 = vor.u32 %v4995_v24, %v9842_v11 }
 0x29b   : > { %v4997_v6 = vrot.slane %v4996_v57, 4  ;;  %v5079_v57 = vshll.u32 %v4943_v14, 16 }
 0x29c   : > { %7728 = vmatmul.mubr.bf16.gmra.mrb[12].mxu1 %v6985_v25  ;;  %7584 = vmatmul.mubr.bf16.gmra.mrb[60].mxu0 %v6897_v52  ;;  %v8399_v25 = vld [vmem:[#allocation2 + $0x54] sm:$0xff]   ;;  %v9860_v52 = vld [vmem:[#allocation2 + $0x40] sm:$0xf] }
 0x29d   : > { %7747 = vmatprep.mubr.bf16.mxu1 %v8381_v46  ;;  %7603 = vmatprep.mubr.bf16.mxu0 %v8384_v5  ;;  %v8402_v46 = vld [vmem:[#allocation2 + $0x60] sm:$0xff]   ;;  %v4992_v5 = vsel %vm9037_vm7, %v4987_v23, %v9842_v11  ;;  %v5065_v0 = vshrl.u32 %v9860_v52, 16  ;;  %v5026_v11 = vsel %vm9037_vm7, %v5021_v34, %v5025_v31  ;;  %v5151_v31 = vshll.u32 %v4952_v16, 16 }
 0x2a4   : > { %7748 = vmatmul.mubr.bf16.vlgmr.msra.gmra.mrb[16].mxu1 %v8383_v10  ;;  %7604 = vmatmul.mubr.bf16.vlgmr.msra.gmra.mrb[32].mxu0 %v8387_v54  ;;  %v5011_v10 = vrot.slane %v5010_v56, 4  ;;  %v5033_v54 = vrot.slane %v5031_v9, 5 }
 0x2a5   : > { %7780 = vmatpush3.bf16.msra.mxu1 %v9784_v2  ;;  %7751 = vmatprep.mubr.bf16.mxu1 %v8385_v47  ;;  %v8394_v2 = vld [vmem:[#allocation2 + $0x3c] sm:$0xff]   ;;  %v9865_v47 = vld [vmem:[#allocation2 + $0x4c] sm:$0xf] }
 0x2a6   : > { %7781 = vmatprep.subr.bf16.mxu1 %v8386_v15  ;;  %7607 = vmatprep.mubr.bf16.mxu0 %v8389_v58  ;;  %v8411_v58 = vld [vmem:[#allocation8 + $0x1f8] sm:$0xff]   ;;  %v5089_v63 = vshrl.u32 %v9865_v47, 16  ;;  %v5016_v28 = vsel %vm9037_vm7, %v5011_v10, %v9847_v3 }
 0x2a7   : > { %v9909_v10 = vld [vmem:[#allocation2 + $0x50] sm:$0x1] }
 0x2a8   : > { %v5091_v1 = vrot.slane %v5089_v63, 4  ;;  %v5095_v14 = vshll.u32 %v9909_v10, 16 }
 0x2a9   : > { %7782 = vmatpush3.bf16.msra.mxu1 %v8386_v15  ;;  %v5030_v15 = vrot.slane %v5028_v41, 4 }
 0x2aa   : > { %7783 = vmatprep.subr.bf16.mxu1 %v8391_v7 }
 0x2ab   : > { %v5034_v24 = vor.u32 %v5033_v54, %v5030_v15  ;;  %v5078_v15 = vrot.slane %v5076_v33, 4  ;;  %v5081_v54 = vrot.slane %v5079_v57, 5  ;;  %v9925_v33 = vld [vmem:[#allocation2 + $0x70] sm:$0xf]  ;;  %v9927_v57 = vld [vmem:[#allocation2 + $0x68] sm:$0x1] }
 0x2ac   : > { %7752 = vmatmul.mubr.bf16.gmra.mrb[20].mxu1 %v8388_v50  ;;  %7608 = vmatmul.mubr.bf16.gmra.mrb[36].mxu0 %v8392_v40  ;;  %v5052_v50 = vshrl.u32 %v4940_v20, 16  ;;  %v9870_v40 = vld [vmem:[#allocation2 + $0x58] sm:$0xf] }
 0x2ad   : > { %7755 = vmatprep.mubr.bf16.mxu1 %v8390_v18  ;;  %7784 = vmatpush3.bf16.msra.mxu1 %v8391_v7  ;;  %v5002_v7 = vsel %vm9037_vm7, %v4997_v6, %v5001_v61  ;;  %v5061_v18 = vshll.u32 %v9860_v52, 16  ;;  %v5109_v51 = vshll.u32 %v9870_v40, 16  ;;  %v5113_v26 = vshrl.u32 %v9870_v40, 16 }
 0x2ae   : > { %7611 = vmatprep.mubr.bf16.mxu0 %v8394_v2  ;;  %7785 = vmatprep.subr.bf16.mxu1 %v8396_v48  ;;  %v5085_v2 = vshll.u32 %v9865_v47, 16  ;;  %v9903_v6 = vcombine.low %v5016_v28, %v5026_v11  ;;  %v5035_v44 = vrot.slane %v5034_v24, 4  ;;  %v5137_v61 = vshrl.u32 %v9898_v36, 16  ;;  %v8406_v24 = vld [vmem:[#allocation2 + $0x9c] sm:$0xff]  }
 0x2af   : > { %v9894_v8 = vrot.slane %v5061_v18, 5  ;;  %v9900_v41 = vrot.slane %v5109_v51, 5  ;;  %v5115_v9 = vrot.slane %v5113_v26, 4  ;;  %v5148_v18 = vshrl.u32 %v4952_v16, 16 }
 0x2b0   : > { %v9896_v3 = vrot.slane %v5085_v2, 5  ;;  %v5139_v63 = vrot.slane %v5137_v61, 4  ;;  %v5082_v26 = vor.u32 %v5081_v54, %v5078_v15 }
 0x2b1   : > { %7786 = vmatpush3.bf16.msra.mxu1 %v8396_v48  ;;  %v9872_v48 = vrot.slane %v5037_v53, 5 }
 0x2b2   : > { %7787 = vmatprep.subr.bf16.mxu1 %v8401_v42 }
 0x2b3   : > { %v5040_v28 = vsel %vm9037_vm7, %v5035_v44, %v9872_v48  ;;  %v4955_v44 = vld [vmem:[#allocation2 + $0x78] sm:$0xf] }
 0x2b4   : > { %7756 = vmatmul.mubr.bf16.gmra.mrb[24].mxu1 %v8393_v39  ;;  %7612 = vmatmul.mubr.bf16.gmra.mrb[40].mxu0 %v8397_v12  ;;  %v5054_v39 = vrot.slane %v5052_v50, 4  ;;  %v5044_v12 = vor.u32 %v5043_v21, %v9872_v48  ;;  %v5116_v50 = vor.u32 %v5115_v9, %v9900_v41  ;;  %v5150_v48 = vrot.slane %v5148_v18, 4 }
 0x2b5   : > { %7759 = vmatprep.mubr.bf16.mxu1 %v8395_v22  ;;  %7615 = vmatprep.mubr.bf16.mxu0 %v8399_v25  ;;  %v4946_v22 = vld [vmem:[#allocation2 + $0x54] sm:$0xf]  ;;  %v4949_v25 = vld [vmem:[#allocation2 + $0x60] sm:$0xf] }
 0x2b6   : > { %7788 = vmatpush3.bf16.msra.mxu1 %v8401_v42  ;;  %v9878_v42 = vcombine.low %v4992_v5, %v5002_v7  ;;  %v5100_v23 = vshrl.u32 %v4946_v22, 16  ;;  %v5103_v56 = vshll.u32 %v4946_v22, 16  ;;  %v5124_v53 = vshrl.u32 %v4949_v25, 16  ;;  %v9912_v7 = vld [vmem:[#allocation2 + $0x5c] sm:$0x1] }
 0x2b7   : > { %7789 = vmatprep.subr.bf16.mxu1 %v8405_v38  ;;  %v5127_v60 = vshll.u32 %v4949_v25, 16  ;;  %v5058_v20 = vor.u32 %v5057_v55, %v5054_v39  ;;  %v5119_v11 = vshll.u32 %v9912_v7, 16  ;;  %v8407_v25 = vld [vmem:[#allocation2 + $0xa8] sm:$0xff]  }
 0x2b8   : > { %v5102_v34 = vrot.slane %v5100_v23, 4  ;;  %v5105_v45 = vrot.slane %v5103_v56, 5  ;;  %v5126_v21 = vrot.slane %v5124_v53, 4  ;;  %v5097_v56 = vrot.slane %v5095_v14, 5  ;;  %v9961_v14 = vld [vmem:[#allocation2 + $0x80] sm:$0x1] }
 0x2b9   : > { %v5129_v62 = vrot.slane %v5127_v60, 5  ;;  %v5083_v53 = vrot.slane %v5082_v26, 4  ;;  %v5121_v60 = vrot.slane %v5119_v11, 5 }
 0x2ba   : > { %7790 = vmatpush3.bf16.msra.mxu1 %v8405_v38  ;;  %v5067_v38 = vrot.slane %v5065_v0, 4  ;;  %v5059_v0 = vrot.slane %v5058_v20, 4  ;;  %v5106_v55 = vor.u32 %v5105_v45, %v5102_v34  ;;  %v5157_v20 = vshll.u32 %v9925_v33, 16 }
 0x2bb   : > { %7791 = vmatprep.subr.bf16.mxu1 %v8408_v29  ;;  %v5172_v45 = vshrl.u32 %v4955_v44, 16  ;;  %v5088_v18 = vsel %vm9037_vm7, %v5083_v53, %v9896_v3  ;;  %v5692_v53 = vld [vmem:[#allocation2 + $0x6c] sm:$0xe] }
 0x2bc   : > { %7760 = vmatmul.mubr.bf16.gmra.mrb[28].mxu1 %v8398_v35  ;;  %7616 = vmatmul.mubr.bf16.gmra.mrb[44].mxu0 %v8402_v46  ;;  %v5071_v35 = vshll.u32 %v9891_v19, 16  ;;  %v5045_v46 = vrot.slane %v5044_v12, 4  ;;  %v5068_v5 = vor.u32 %v5067_v38, %v9894_v8  ;;  %v5117_v38 = vrot.slane %v5116_v50, 4 }
 0x2bd   : > { %7763 = vmatprep.mubr.bf16.mxu1 %v8400_v32  ;;  %v5133_v32 = vshll.u32 %v9898_v36, 16  ;;  %v5107_v16 = vrot.slane %v5106_v55, 4  ;;  %v5175_v50 = vshll.u32 %v4955_v44, 16 }
 0x2be   : > { %7792 = vmatpush3.bf16.msra.mxu1 %v8408_v29  ;;  %v8404_v29 = vld [vmem:[#allocation2 + $0x90] sm:$0xff]   ;;  %v5050_v51 = vsel %vm9037_vm7, %v5045_v46, %v9889_v4  ;;  %v5069_v39 = vrot.slane %v5068_v5, 4  ;;  %v5073_v22 = vrot.slane %v5071_v35, 5  ;;  %v5064_v4 = vsel %vm9037_vm7, %v5059_v0, %v9894_v8 }
 0x2bf   : > { %7793 = vmatprep.subr.bf16.mxu1 %v8411_v58  ;;  %v9916_v2 = vrot.slane %v5133_v32, 5  ;;  %v9929_v23 = vcombine.low %v5040_v28, %v5050_v51  ;;  %v5161_v35 = vshrl.u32 %v9925_v33, 16  ;;  %v9939_v32 = vld [vmem:[#allocation2 + $0x7c] sm:$0xf]  ;;  %v5143_v46 = vshll.u32 %v9927_v57, 16  ;;  %v8410_v28 = vld [vmem:[#allocation2 + $0xc0] sm:$0xff]  }
 0x2c0   : > { %v5074_v61 = vsel %vm9037_vm7, %v5069_v39, %v5073_v22  ;;  %v5122_v5 = vsel %vm9037_vm7, %v5117_v38, %v5121_v60  ;;  %v5112_v11 = vsel %vm9037_vm7, %v5107_v16, %v9900_v41  ;;  %v9975_v39 = vld [vmem:[#allocation2 + $0x90] sm:$0xf]  ;;  %v9987_v38 = vld [vmem:[#allocation2 + $0x88] sm:$0xf]  ;;  %v9989_v41 = vld [vmem:[#allocation2 + $0x94] sm:$0xf] }
 0x2c1   : > { %v5140_v9 = vor.u32 %v5139_v63, %v9916_v2  ;;  %v9959_v0 = vrot.slane %v5161_v35, 4  ;;  %v5185_v63 = vshrl.u32 %v9939_v32, 16  ;;  %v9964_v51 = vcombine.low %v5064_v4, %v5074_v61  ;;  %v10123_v61 = vld [vmem:[#allocation2 + $0xb8] sm:$0xf] }
 0x2c2   : > { %7794 = vmatpush3.bf16.msra.mxu1 %v8411_v58  ;;  %v5092_v58 = vor.u32 %v5091_v1, %v9896_v3  ;;  %v5130_v1 = vor.u32 %v5129_v62, %v5126_v21  ;;  %v5181_v21 = vshll.u32 %v9939_v32, 16  ;;  %v8409_v62 = vld [vmem:[#allocation2 + $0xb4] sm:$0xff]   ;;  %v9973_v3 = vld [vmem:[#allocation2 + $0x84] sm:$0xf]  ;;  %v9977_v22 = vcombine.low %v5112_v11, %v5122_v5  ;;  %v10102_v5 = vld [vmem:[#allocation2 + $0xb0] sm:$0x1] }
 0x2c3   : > { %7827 = vmatprep.subr.bf16.mxu1 %v9885_v13  ;;  %v9951_v34 = vrot.slane %v5140_v9, 4  ;;  %v10003_v44 = vrot.slane %v5185_v63, 4  ;;  %v5765_v60 = vrot.slane %v9850_v49, 5  ;;  %v5821_v49 = vrot.slane %v9989_v41, 5 }
 0x2c4   : > { %7764 = vmatmul.mubr.bf16.gmra.mrb[0].mxu1 %v8403_v37  ;;  %v5093_v12 = vrot.slane %v5092_v58, 4  ;;  %v5153_v37 = vrot.slane %v5151_v31, 5  ;;  %v9948_v15 = vrot.slane %v5130_v1, 4  ;;  %v9957_v31 = vrot.slane %v5157_v20, 5  ;;  %v5688_v20 = vld [vmem:[#allocation2 + $0x3c] sm:$0xe] }
 0x2c5   : > { %7767 = vmatprep.mubr.bf16.mxu1 %v8404_v29  ;;  %v9935_v29 = vld [vmem:[#allocation2 + $0x74] sm:$0x1]  ;;  %v9999_v4 = vrot.slane %v5181_v21, 5  ;;  %v5814_v1 = vrot.slane %v9987_v38, 5  ;;  %v5696_v21 = vld [vmem:[#allocation2 + $0x9c] sm:$0xe] }
 0x2c6   : > { %v5098_v8 = vsel %vm9037_vm7, %v5093_v12, %v5097_v56  ;;  %v5154_v54 = vor.u32 %v5153_v37, %v5150_v48  ;;  %v5167_v58 = vshll.u32 %v9935_v29, 16  ;;  %v9995_v48 = vrot.slane %v5172_v45, 4  ;;  %v5687_v56 = vld [vmem:[#allocation2 + $0x30] sm:$0xe] }
 0x2c7   : > { %v9966_v26 = vcombine.low %v5088_v18, %v5098_v8  ;;  %v9997_v37 = vrot.slane %v5175_v50, 5  ;;  %v5768_v45 = vrot.slane %v9855_v30, 5  ;;  %v8412_v50 = vld [vmem:[#allocation2 + $0xcc] sm:$0xff]   ;;  %v5772_v18 = vrot.slane %v9860_v52, 5  ;;  %v5690_v30 = vld [vmem:[#allocation2 + $0x54] sm:$0xe] }
 0x2c8   : > { %v9983_v55 = vrot.slane %v5154_v54, 4  ;;  %v7044_v54 = vrot.slane %v5687_v56, 9  ;;  %v5779_v56 = vrot.slane %v9865_v47, 5  ;;  %v5775_v12 = vrot.slane %v9891_v19, 5  ;;  %v10114_v8 = vld [vmem:[#allocation2 + $0xc4] sm:$0xf] }
 0x2c9   : > { %v5774_v52 = vrot.slane %v5772_v18, 4  ;;  %v5786_v47 = vrot.slane %v9870_v40, 5  ;;  %v5793_v19 = vrot.slane %v9898_v36, 5  ;;  %v5816_v16 = vrot.slane %v5814_v1, 4 }
 0x2ca   : > { %v10018_v63 = vsel %vm9629_vm14, %v7044_v54, %v5765_v60 }
 0x2cb   : > { %v5788_v40 = vrot.slane %v5786_v47, 4  ;;  %v5795_v36 = vrot.slane %v5793_v19, 4 }
 0x2cc   : > { %7768 = vmatmul.mubr.bf16.gmra.mrb[4].mxu1 %v8406_v24  ;;  %v9971_v24 = vrot.slane %v5143_v46, 5  ;;  %v5689_v46 = vld [vmem:[#allocation2 + $0x48] sm:$0xe] }
 0x2cd   : > { %7771 = vmatprep.mubr.bf16.mxu1 %v8407_v25  ;;  %v9985_v25 = vrot.slane %v5167_v58, 5  ;;  %v5767_v58 = vrot.slane %v5765_v60, 4  ;;  %v7046_v11 = vrot.slane %v5689_v46, 9  ;;  %v5691_v60 = vld [vmem:[#allocation2 + $0x60] sm:$0xe]  ;;  %v5782_v46 = vrot.slane %v9909_v10, 5 }
 0x2cf   : > { %v10034_v54 = vsel %vm9629_vm14, %v7046_v11, %v5779_v56  ;;  %v8414_v11 = vld [vmem:[#allocation8 + $0x208] sm:$0xff]  }
 0x2d4   : > { %7772 = vmatmul.mubr.bf16.gmra.mrb[8].mxu1 %v8409_v62  ;;  %v7045_v62 = vrot.slane %v5688_v20, 9 }
 0x2d5   : > { %7775 = vmatprep.mubr.bf16.mxu1 %v8410_v28  ;;  %v10022_v28 = vsel %vm9629_vm14, %v5767_v58, %v5768_v45  ;;  %v5781_v58 = vrot.slane %v5779_v56, 4  ;;  %v10040_v45 = vsel %vm9629_vm14, %v5774_v52, %v5775_v12  ;;  %v5693_v56 = vld [vmem:[#allocation2 + $0x78] sm:$0xe]  ;;  %v10076_v12 = vld [vmem:[#allocation2 + $0x98] sm:$0x1] }
 0x2d6   : > { %v10029_v20 = vsel %vm9629_vm14, %v7045_v62, %v5772_v18  ;;  %v7047_v62 = vrot.slane %v5690_v30, 9  ;;  %v5789_v18 = vrot.slane %v9912_v7, 5 }
 0x2d7   : > { %v10049_v10 = vsel %vm9629_vm14, %v5781_v58, %v5782_v46  ;;  %v5800_v58 = vrot.slane %v9925_v33, 5  ;;  %v10067_v46 = vld [vmem:[#allocation2 + $0x8c] sm:$0x1] }
 0x2d8   : > { %v10055_v7 = vsel %vm9629_vm14, %v7047_v62, %v5786_v47  ;;  %v10060_v30 = vsel %vm9629_vm14, %v5788_v40, %v5789_v18  ;;  %v5807_v18 = vrot.slane %v9939_v32, 5  ;;  %v5694_v40 = vld [vmem:[#allocation2 + $0x84] sm:$0xe]  ;;  %v5695_v47 = vld [vmem:[#allocation2 + $0x90] sm:$0xe] }
 0x2d9   : > { %v10706_v17 = vcombine.low %v10055_v7, %v10060_v30 }
 0x2dc   : > { %7776 = vmatmul.mubr.bf16.gmra.mrb[12].mxu1 %v8412_v50  ;;  %v7048_v50 = vrot.slane %v5691_v60, 9  ;;  %v7049_v60 = vrot.slane %v5692_v53, 9  ;;  %v5810_v53 = vrot.slane %v9961_v14, 5 }
 0x2dd   : > { %7795 = vmatprep.mubr.bf16.mxu1 %v9878_v42  ;;  %v5796_v42 = vrot.slane %v9927_v57, 5  ;;  %v7050_v57 = vrot.slane %v5693_v56, 9  ;;  %v10087_v56 = vld [vmem:[#allocation2 + $0xac] sm:$0xf] }
 0x2de   : > { %v10064_v52 = vsel %vm9629_vm14, %v7048_v50, %v5793_v19  ;;  %v10082_v33 = vsel %vm9629_vm14, %v7049_v60, %v5800_v58  ;;  %v5802_v19 = vrot.slane %v5800_v58, 4  ;;  %v5803_v50 = vrot.slane %v9935_v29, 5 }
 0x2df   : > { %v10073_v62 = vsel %vm9629_vm14, %v5795_v36, %v5796_v42  ;;  %10679 = vst [vmem:[#allocation17_spill] sm:$0xff] %v10082_v33  ;;  %v10085_v36 = vld [vmem:[#allocation2 + $0xa0] sm:$0xf]  ;;  %v10091_v32 = vsel %vm9629_vm14, %v7050_v57, %v5807_v18  ;;  %v5809_v42 = vrot.slane %v5807_v18, 4  ;;  %v7051_v29 = vrot.slane %v5694_v40, 9 }
 0x2e0   : > { %10678 = vst [vmem:[#allocation18_spill] sm:$0xff] %v10073_v62  ;;  %10680 = vst [vmem:[#allocation21_spill] sm:$0xff] %v10091_v32  ;;  %v10097_v60 = vsel %vm9629_vm14, %v5802_v19, %v5803_v50  ;;  %v5817_v58 = vrot.slane %v10067_v46, 5  ;;  %v7052_v19 = vrot.slane %v5695_v47, 9  ;;  %v5697_v50 = vld [vmem:[#allocation2 + $0xa8] sm:$0xe] }
 0x2e1   : > { %10681 = vst [vmem:[#allocation19_spill] sm:$0xff] %v10097_v60  ;;  %v10108_v18 = vsel %vm9629_vm14, %v5809_v42, %v5810_v53  ;;  %v10112_v40 = vld [vmem:[#allocation2 + $0xa4] sm:$0x1]  ;;  %v10120_v57 = vsel %vm9629_vm14, %v7051_v29, %v5814_v1  ;;  %v5823_v53 = vrot.slane %v5821_v49, 4  ;;  %v5824_v42 = vrot.slane %v10076_v12, 5  ;;  %v8415_v47 = vld [vmem:[#allocation8 + $0x210] sm:$0xff]  }
 0x2e2   : > { %10682 = vst [vmem:[#allocation20_spill] sm:$0xff] %v10108_v18  ;;  %10683 = vst [vmem:[#allocation23_spill] sm:$0xff] %v10120_v57  ;;  %v5828_v35 = vrot.slane %v10085_v36, 5  ;;  %v10134_v1 = vld [vmem:[#allocation2 + $0xbc] sm:$0x1]  ;;  %v7054_v18 = vrot.slane %v5697_v50, 9 }
 0x2e3   : > { %v10140_v9 = vsel %vm9629_vm14, %v5823_v53, %v5824_v42  ;;  %v5831_v32 = vrot.slane %v10112_v40, 5  ;;  %v5699_v60 = vld [vmem:[#allocation2 + $0xc0] sm:$0xe]  ;;  %v10150_v29 = vld [vmem:[#allocation2 + $0xc8] sm:$0x1]  ;;  %v5838_v42 = vrot.slane %v10102_v5, 5 }
 0x2e4   : > { %7796 = vmatmul.mubr.bf16.vlgmr.msra.gmra.mrb[16].mxu1 %v9903_v6  ;;  %v7053_v6 = vrot.slane %v5696_v21, 9  ;;  %10686 = vst [vmem:[#allocation25_spill] sm:$0xff] %v10140_v9  ;;  %v8416_v9 = vld [vmem:[#allocation8 + $0x218] sm:$0xff]   ;;  %v7056_v33 = vrot.slane %v5699_v60, 9 }
 0x2e5   : > { %7828 = vmatpush3.bf16.msra.mxu1 %v9885_v13  ;;  %7799 = vmatprep.mubr.bf16.mxu1 %v9929_v23  ;;  %v10127_v13 = vsel %vm9629_vm14, %v5816_v16, %v5817_v58  ;;  %v10131_v23 = vsel %vm9629_vm14, %v7052_v19, %v5821_v49  ;;  %v5835_v16 = vrot.slane %v10087_v56, 5  ;;  %v5698_v58 = vld [vmem:[#allocation2 + $0xb4] sm:$0xe]  ;;  %v5830_v19 = vrot.slane %v5828_v35, 4  ;;  %v10171_v62 = vld [vmem:[#allocation2 + $0xd0] sm:$0xf] }
 0x2e6   : > { %7829 = vmatprep.subr.bf16.mxu1 %v8414_v11  ;;  %10684 = vst [vmem:[#allocation22_spill] sm:$0xff] %v10127_v13  ;;  %10685 = vst [vmem:[#allocation24_spill] sm:$0xff] %v10131_v23  ;;  %v10147_v21 = vsel %vm9629_vm14, %v7053_v6, %v5828_v35  ;;  %v5842_v49 = vrot.slane %v10123_v61, 5  ;;  %v7055_v6 = vrot.slane %v5698_v58, 9  ;;  %v5849_v23 = vrot.slane %v10114_v8, 5  ;;  %v8417_v58 = vld [vmem:[#allocation8 + $0x220] sm:$0xff]  }
 0x2e7   : > { %v10154_v50 = vsel %vm9629_vm14, %v7054_v18, %v5835_v16  ;;  %v5837_v53 = vrot.slane %v5835_v16, 4  ;;  %v10160_v35 = vsel %vm9629_vm14, %v5830_v19, %v5831_v32  ;;  %v5700_v13 = vld [vmem:[#allocation2 + $0xcc] sm:$0xe]  ;;  %v10173_v32 = vld [vmem:[#allocation2 + $0xd4] sm:$0x1] }
 0x2e8   : > { %10687 = vst [vmem:[#allocation26_spill] sm:$0xff] %v10160_v35  ;;  %v5844_v57 = vrot.slane %v5842_v49, 4  ;;  %v10179_v19 = vsel %vm9629_vm14, %v7055_v6, %v5842_v49  ;;  %v5851_v18 = vrot.slane %v5849_v23, 4  ;;  %v5852_v35 = vrot.slane %v10150_v29, 5 }
 0x2e9   : > { %7830 = vmatpush3.bf16.msra.mxu1 %v8414_v11  ;;  %v5845_v11 = vrot.slane %v10134_v1, 5  ;;  %v10168_v16 = vsel %vm9629_vm14, %v5837_v53, %v5838_v42  ;;  %v7057_v60 = vrot.slane %v5700_v13, 9  ;;  %v5856_v53 = vrot.slane %v10171_v62, 5 }
 0x2ea   : > { %7831 = vmatprep.subr.bf16.mxu1 %v8415_v47  ;;  %10688 = vst [vmem:[#allocation27_spill] sm:$0xff] %v10168_v16  ;;  %v5859_v42 = vrot.slane %v10173_v32, 5  ;;  %v5233_v49 = vshrl.u32 %v9989_v41, 16  ;;  %v10692_v6 = vor.u32 %v9959_v0, %v9957_v31  ;;  %v10695_v13 = vshll.u32 %v9987_v38, 16 }
 0x2eb   : > { %v5858_v16 = vrot.slane %v5856_v53, 4  ;;  %v10697_v0 = vshrl.u32 %v9975_v39, 16 }
 0x2ec   : > { %7800 = vmatmul.mubr.bf16.gmra.mrb[20].mxu1 %v9964_v51  ;;  %v10185_v51 = vsel %vm9629_vm14, %v5844_v57, %v5845_v11  ;;  %v10198_v57 = vsel %vm9629_vm14, %v5851_v18, %v5852_v35  ;;  %v10206_v11 = vsel %vm9629_vm14, %v7057_v60, %v5856_v53  ;;  %v10693_v35 = vshrl.u32 %v9973_v3, 16 }
 0x2ed   : > { %7803 = vmatprep.mubr.bf16.mxu1 %v9966_v26  ;;  %7832 = vmatpush3.bf16.msra.mxu1 %v8415_v47  ;;  %10689 = vst [vmem:[#allocation28_spill] sm:$0xff] %v10185_v51  ;;  %v10194_v26 = vsel %vm9629_vm14, %v7056_v33, %v5849_v23  ;;  %10691 = vst [vmem:[#allocation30_spill] sm:$0xff] %v10198_v57  ;;  %v5178_v47 = vor.u32 %v9997_v37, %v9995_v48  ;;  %v5165_v33 = vrot.slane %v10692_v6, 4  ;;  %v4964_v51 = vld [vmem:[#allocation2 + $0x9c] sm:$0xf] }
 0x2ee   : > { %7833 = vmatprep.subr.bf16.mxu1 %v8416_v9  ;;  %10690 = vst [vmem:[#allocation29_spill] sm:$0xff] %v10194_v26  ;;  %v5188_v23 = vor.u32 %v10003_v44, %v9999_v4  ;;  %v5198_v18 = vrot.slane %v10693_v35, 4  ;;  %v10694_v48 = vshll.u32 %v9973_v3, 16  ;;  %v10219_v57 = vrot.slane %v10695_v13, 5  ;;  %v8418_v26 = vld [vmem:[#allocation8 + $0x228] sm:$0xff]  }
 0x2ef   : > { %v10696_v60 = vshrl.u32 %v9987_v38, 16  ;;  %v5222_v6 = vrot.slane %v10697_v0, 4  ;;  %v10227_v44 = vsel %vm9629_vm14, %v5858_v16, %v5859_v42  ;;  %v10698_v35 = vshll.u32 %v9975_v39, 16  ;;  %v10721_v30 = vld [vmem:[#allocation26_spill] sm:$0xff] }
 0x2f0   : > { %v5201_v37 = vrot.slane %v10694_v48, 5  ;;  %v5235_v13 = vrot.slane %v5233_v49, 4  ;;  %v7073_v38 = vcombine.low %v10206_v11, %v10227_v44  ;;  %v10700_v16 = vsel %vm9037_vm7, %v9951_v34, %v9971_v24 }
 0x2f1   : > { %7834 = vmatpush3.bf16.msra.mxu1 %v8416_v9  ;;  %v5211_v53 = vrot.slane %v10696_v60, 4  ;;  %v5225_v3 = vrot.slane %v10698_v35, 5  ;;  %v10699_v9 = vshll.u32 %v9989_v41, 16  ;;  %v10701_v39 = vsel %vm9037_vm7, %v9948_v15, %v9916_v2 }
 0x2f2   : > { %7835 = vmatprep.subr.bf16.mxu1 %v8417_v58  ;;  %v7024_v42 = vcombine.low %v10701_v39, %v10700_v16  ;;  %v5179_v41 = vrot.slane %v5178_v47, 4  ;;  %v5160_v49 = vsel %vm9037_vm7, %v9983_v55, %v9957_v31  ;;  %v5170_v60 = vsel %vm9037_vm7, %v5165_v33, %v9985_v25  ;;  %v8419_v55 = vld [vmem:[#allocation8 + $0x230] sm:$0xff]  }
 0x2f3   : > { %v10233_v48 = vrot.slane %v10699_v9, 5  ;;  %v5189_v0 = vrot.slane %v5188_v23, 4  ;;  %v5202_v34 = vor.u32 %v5201_v37, %v5198_v18  ;;  %v5212_v24 = vor.u32 %v5211_v53, %v10219_v57 }
 0x2f4   : > { %7804 = vmatmul.mubr.bf16.gmra.mrb[24].mxu1 %v9977_v22  ;;  %v5244_v2 = vshrl.u32 %v4964_v51, 16  ;;  %v5247_v15 = vshll.u32 %v4964_v51, 16  ;;  %v10702_v47 = vshll.u32 %v9961_v14, 16  ;;  %v5215_v35 = vshll.u32 %v10067_v46, 16  ;;  %v4967_v51 = vld [vmem:[#allocation2 + $0xa8] sm:$0xf] }
 0x2f5   : > { %7807 = vmatprep.mubr.bf16.mxu1 %v7024_v42  ;;  %7836 = vmatpush3.bf16.msra.mxu1 %v8417_v58  ;;  %v5226_v9 = vor.u32 %v5225_v3, %v5222_v6  ;;  %v5236_v31 = vor.u32 %v5235_v13, %v10233_v48  ;;  %v7025_v16 = vcombine.low %v5160_v49, %v5170_v60  ;;  %v5253_v33 = vshll.u32 %v10085_v36, 16 }
 0x2f6   : > { %v5193_v22 = vrot.slane %v10702_v47, 5  ;;  %7837 = vmatprep.subr.bf16.mxu1 %v8418_v26  ;;  %v5184_v25 = vsel %vm9037_vm7, %v5179_v41, %v9999_v4  ;;  %v5257_v58 = vshrl.u32 %v10085_v36, 16  ;;  %v5239_v46 = vshll.u32 %v10076_v12, 16  ;;  %v8420_v36 = vld [vmem:[#allocation8 + $0x238] sm:$0xff]  }
 0x2f7   : > { %v5277_v23 = vshll.u32 %v10087_v56, 16  ;;  %v5281_v18 = vshrl.u32 %v10087_v56, 16  ;;  %v5203_v37 = vrot.slane %v5202_v34, 4  ;;  %v5213_v53 = vrot.slane %v5212_v24, 4  ;;  %v4970_v34 = vld [vmem:[#allocation2 + $0xb4] sm:$0xf] }
 0x2f8   : > { %v5194_v14 = vsel %vm9037_vm7, %v5189_v0, %v5193_v22  ;;  %v5246_v6 = vrot.slane %v5244_v2, 4  ;;  %v5249_v3 = vrot.slane %v5247_v15, 5  ;;  %v5227_v4 = vrot.slane %v5226_v9, 4 }
 0x2f9   : > { %7838 = vmatpush3.bf16.msra.mxu1 %v8418_v26  ;;  %v5237_v13 = vrot.slane %v5236_v31, 4  ;;  %v5268_v39 = vshrl.u32 %v4967_v51, 16  ;;  %v5271_v42 = vshll.u32 %v4967_v51, 16  ;;  %v7026_v41 = vcombine.low %v5184_v25, %v5194_v14 }
 0x2fa   : > { %7839 = vmatprep.subr.bf16.mxu1 %v8419_v55  ;;  %v5217_v49 = vrot.slane %v5215_v35, 5  ;;  %v10270_v60 = vrot.slane %v5253_v33, 5  ;;  %v5259_v12 = vrot.slane %v5257_v58, 4  ;;  %v5241_v0 = vrot.slane %v5239_v46, 5  ;;  %v4973_v58 = vld [vmem:[#allocation2 + $0xc0] sm:$0xf] }
 0x2fb   : > { %v10272_v47 = vrot.slane %v5277_v23, 5  ;;  %v5283_v56 = vrot.slane %v5281_v18, 4  ;;  %v5208_v26 = vsel %vm9037_vm7, %v5203_v37, %v10219_v57  ;;  %v5250_v2 = vor.u32 %v5249_v3, %v5246_v6 }
 0x2fc   : > { %7808 = vmatmul.mubr.bf16.gmra.mrb[28].mxu1 %v7025_v16  ;;  %v5218_v24 = vsel %vm9037_vm7, %v5213_v53, %v5217_v49  ;;  %v5263_v15 = vshll.u32 %v10112_v40, 16  ;;  %v5232_v22 = vsel %vm9037_vm7, %v5227_v4, %v10233_v48  ;;  %v5242_v35 = vsel %vm9037_vm7, %v5237_v13, %v5241_v0  ;;  %v4976_v4 = vld [vmem:[#allocation2 + $0xcc] sm:$0xf] }
 0x2fd   : > { %7811 = vmatprep.mubr.bf16.mxu1 %v7026_v41  ;;  %7840 = vmatpush3.bf16.msra.mxu1 %v8419_v55  ;;  %v5270_v9 = vrot.slane %v5268_v39, 4  ;;  %v5273_v31 = vrot.slane %v5271_v42, 5  ;;  %v5260_v16 = vor.u32 %v5259_v12, %v10270_v60  ;;  %v5292_v57 = vshrl.u32 %v4970_v34, 16 }
 0x2fe   : > { %7841 = vmatprep.subr.bf16.mxu1 %v8420_v36  ;;  %v5301_v25 = vshll.u32 %v10123_v61, 16  ;;  %v5305_v33 = vshrl.u32 %v10123_v61, 16  ;;  %v5284_v40 = vor.u32 %v5283_v56, %v10272_v47  ;;  %v5295_v55 = vshll.u32 %v4970_v34, 16 }
 0x2ff   : > { %v5325_v51 = vshll.u32 %v10114_v8, 16  ;;  %v5329_v48 = vshrl.u32 %v10114_v8, 16  ;;  %v7027_v14 = vcombine.low %v5208_v26, %v5218_v24  ;;  %v7028_v46 = vcombine.low %v5232_v22, %v5242_v35 }
 0x300   : > { %v5251_v23 = vrot.slane %v5250_v2, 4  ;;  %v5265_v18 = vrot.slane %v5263_v15, 5  ;;  %v5274_v37 = vor.u32 %v5273_v31, %v5270_v9  ;;  %v5287_v53 = vshll.u32 %v10102_v5, 16 }
 0x301   : > { %7842 = vmatpush3.bf16.msra.mxu1 %v8420_v36  ;;  %v5316_v6 = vshrl.u32 %v4973_v58, 16  ;;  %v5319_v3 = vshll.u32 %v4973_v58, 16  ;;  %v5261_v61 = vrot.slane %v5260_v16, 4  ;;  %v5294_v13 = vrot.slane %v5292_v57, 4 }
 0x302   : > { %v5303_v39 = vrot.slane %v5301_v25, 5  ;;  %v5307_v42 = vrot.slane %v5305_v33, 4  ;;  %v5285_v41 = vrot.slane %v5284_v40, 4  ;;  %v5297_v49 = vrot.slane %v5295_v55, 5 }
 0x303   : > { %v5327_v12 = vrot.slane %v5325_v51, 5  ;;  %v5331_v8 = vrot.slane %v5329_v48, 4  ;;  %v5340_v0 = vshrl.u32 %v4976_v4, 16  ;;  %v5343_v56 = vshll.u32 %v4976_v4, 16 }
 0x304   : > { %7812 = vmatmul.mubr.bf16.gmra.mrb[0].mxu1 %v7027_v14  ;;  %v5349_v36 = vshll.u32 %v10171_v62, 16  ;;  %v5353_v34 = vshrl.u32 %v10171_v62, 16  ;;  %v5275_v5 = vrot.slane %v5274_v37, 4  ;;  %v5289_v26 = vrot.slane %v5287_v53, 5 }
 0x305   : > { %7815 = vmatprep.mubr.bf16.mxu1 %v7028_v46  ;;  %v5318_v24 = vrot.slane %v5316_v6, 4  ;;  %v5321_v2 = vrot.slane %v5319_v3, 5  ;;  %v5256_v15 = vsel %vm9037_vm7, %v5251_v23, %v10270_v60  ;;  %v5266_v22 = vsel %vm9037_vm7, %v5261_v61, %v5265_v18 }
 0x306   : > { %v5308_v35 = vor.u32 %v5307_v42, %v5303_v39  ;;  %v5290_v9 = vsel %vm9037_vm7, %v5285_v41, %v5289_v26  ;;  %v5298_v31 = vor.u32 %v5297_v49, %v5294_v13  ;;  %v5311_v16 = vshll.u32 %v10134_v1, 16  ;;  %v5685_v26 = vld [vmem:[#allocation2 + $0x18] sm:$0xe] }
 0x307   : > { %v5332_v57 = vor.u32 %v5331_v8, %v5327_v12  ;;  %v5342_v62 = vrot.slane %v5340_v0, 4  ;;  %v5345_v25 = vrot.slane %v5343_v56, 5  ;;  %v5351_v33 = vrot.slane %v5349_v36, 5  ;;  %v8421_v0 = vld [vmem:[#allocation9] sm:$0xff]   ;;  %v8422_v56 = vld [vmem:[#allocation9 + $0x8] sm:$0xff]  }
 0x308   : > { %v5355_v58 = vrot.slane %v5353_v34, 4  ;;  %v7029_v40 = vcombine.low %v5256_v15, %v5266_v22  ;;  %v5280_v60 = vsel %vm9037_vm7, %v5275_v5, %v10272_v47  ;;  %v5322_v55 = vor.u32 %v5321_v2, %v5318_v24  ;;  %7875 = vmatprep.subr.bf16.mxu0 %v8421_v0  ;;  %v8423_v2 = vld [vmem:[#allocation9 + $0x10] sm:$0xff]  }
 0x309   : > { %v5335_v51 = vshll.u32 %v10150_v29, 16  ;;  %v7030_v48 = vcombine.low %v5280_v60, %v5290_v9  ;;  %v5309_v14 = vrot.slane %v5308_v35, 4  ;;  %v5313_v46 = vrot.slane %v5311_v16, 5  ;;  %v8494_v29 = vld [vmem:[#allocation2 + $0x1c] sm:$0xf]  ;;  %7876 = vmatpush3.bf16.msra.mxu0 %v8421_v0 }
 0x30a   : > { %v5333_v23 = vrot.slane %v5332_v57, 4  ;;  %v5299_v1 = vrot.slane %v5298_v31, 4  ;;  %v5346_v18 = vor.u32 %v5345_v25, %v5342_v62  ;;  %v5356_v37 = vor.u32 %v5355_v58, %v5351_v33  ;;  %7877 = vmatprep.subr.bf16.mxu0 %v8422_v56  ;;  %v5686_v62 = vld [vmem:[#allocation2 + $0x24] sm:$0xe]  ;;  %v8425_v25 = vld [vmem:[#allocation9 + $0x20] sm:$0xff]  }
 0x30b   : > { %v5359_v53 = vshll.u32 %v10173_v32, 16  ;;  %v5323_v6 = vrot.slane %v5322_v55, 4  ;;  %v5337_v3 = vrot.slane %v5335_v51, 5  ;;  %v5314_v4 = vsel %vm9037_vm7, %v5309_v14, %v5313_v46  ;;  %v10709_v46 = vld [vmem:[#allocation17_spill] sm:$0xff] }
 0x30c   : > { %7816 = vmatmul.mubr.bf16.gmra.mrb[4].mxu1 %v7029_v40  ;;  %v5751_v61 = vrot.slane %v8494_v29, 5  ;;  %v5304_v13 = vsel %vm9037_vm7, %v5299_v1, %v5303_v39  ;;  %v5347_v42 = vrot.slane %v5346_v18, 4  ;;  %v5357_v41 = vrot.slane %v5356_v37, 4  ;;  %v10713_v1 = vld [vmem:[#allocation20_spill] sm:$0xff]  ;;  %v10716_v18 = vld [vmem:[#allocation22_spill] sm:$0xff]  ;;  %v10719_v37 = vld [vmem:[#allocation25_spill] sm:$0xff] }
 0x30d   : > { %7819 = vmatprep.mubr.bf16.mxu1 %v7030_v48  ;;  %v5338_v47 = vsel %vm9037_vm7, %v5333_v23, %v5337_v3  ;;  %v5361_v49 = vrot.slane %v5359_v53, 5  ;;  %v7031_v8 = vcombine.low %v5304_v13, %v5314_v4  ;;  %v5328_v32 = vsel %vm9037_vm7, %v5323_v6, %v5327_v12  ;;  %v8495_v12 = vld [vmem:[#allocation2 + $0x28] sm:$0xf]  ;;  %7878 = vmatpush3.bf16.msra.mxu0 %v8422_v56  ;;  %v10707_v48 = vld [vmem:[#allocation18_spill] sm:$0xff]  ;;  %v10712_v23 = vld [vmem:[#allocation21_spill] sm:$0xff] }
 0x30e   : > { %v7032_v36 = vcombine.low %v5328_v32, %v5338_v47  ;;  %v5753_v34 = vrot.slane %v5751_v61, 4  ;;  %v5352_v5 = vsel %vm9037_vm7, %v5347_v42, %v5351_v33  ;;  %v5754_v24 = vrot.slane %v9844_v59, 5  ;;  %7879 = vmatprep.subr.bf16.mxu0 %v8423_v2  ;;  %v10723_v53 = vld [vmem:[#allocation27_spill] sm:$0xff]  ;;  %v10725_v3 = vld [vmem:[#allocation28_spill] sm:$0xff]  ;;  %v10727_v47 = vld [vmem:[#allocation29_spill] sm:$0xff] }
 0x30f   : > { %v5362_v39 = vsel %vm9037_vm7, %v5357_v41, %v5361_v49  ;;  %v5758_v15 = vrot.slane %v8495_v12, 5  ;;  %v7042_v35 = vrot.slane %v5685_v26, 9  ;;  %v5761_v59 = vrot.slane %v9852_v43, 5  ;;  %v10728_v29 = vld [vmem:[#allocation30_spill] sm:$0xff] }
 0x310   : > { %v7033_v22 = vcombine.low %v5352_v5, %v5362_v39  ;;  %v5755_v9 = vsel %vm9629_vm14, %v5753_v34, %v5754_v24  ;;  %v7043_v33 = vrot.slane %v5686_v62, 9  ;;  %v10703_v55 = vcombine.low %v10018_v63, %v10022_v28  ;;  %v10710_v63 = vld [vmem:[#allocation19_spill] sm:$0xff] }
 0x311   : > { %v5752_v31 = vsel %vm9629_vm14, %v7042_v35, %v5751_v61  ;;  %v5760_v57 = vrot.slane %v5758_v15, 4  ;;  %7880 = vmatpush3.bf16.msra.mxu0 %v8423_v2  ;;  %v10704_v43 = vcombine.low %v10029_v20, %v10040_v45  ;;  %v10705_v51 = vcombine.low %v10034_v54, %v10049_v10  ;;  %v10715_v45 = vld [vmem:[#allocation23_spill] sm:$0xff]  ;;  %v10718_v10 = vld [vmem:[#allocation24_spill] sm:$0xff]  ;;  %v8426_v2 = vld [vmem:[#allocation9 + $0x28] sm:$0xff]  }
 0x312   : > { %v7058_v16 = vcombine.low %v5752_v31, %v5755_v9  ;;  %7881 = vmatprep.subr.bf16.mxu0 %v8424_v27  ;;  %v5759_v40 = vsel %vm9629_vm14, %v7043_v33, %v5758_v15  ;;  %v10708_v14 = vcombine.low %v10064_v52, %v10707_v48  ;;  %v10711_v28 = vcombine.low %v10709_v46, %v10710_v63  ;;  %v8428_v31 = vld [vmem:[#allocation9 + $0x38] sm:$0xff]  }
 0x313   : > { %v5762_v58 = vsel %vm9629_vm14, %v5760_v57, %v5761_v59  ;;  %v10714_v20 = vcombine.low %v10712_v23, %v10713_v1  ;;  %v10717_v54 = vcombine.low %v10715_v45, %v10716_v18  ;;  %v10720_v7 = vcombine.low %v10718_v10, %v10719_v37 }
 0x314   : > { %7820 = vmatmul.mubr.bf16.gmra.mrb[8].mxu1 %v7031_v8  ;;  %v7059_v60 = vcombine.low %v5759_v40, %v5762_v58  ;;  %v10722_v52 = vcombine.low %v10147_v21, %v10721_v30  ;;  %v10724_v6 = vcombine.low %v10154_v50, %v10723_v53  ;;  %v10726_v4 = vcombine.low %v10179_v19, %v10725_v3 }
 0x315   : > { %7823 = vmatprep.mubr.bf16.mxu1 %v7032_v36  ;;  %7882 = vmatpush3.bf16.msra.mxu0 %v8424_v27  ;;  %v10729_v61 = vcombine.low %v10727_v47, %v10728_v29 }
 0x316   : > { %7883 = vmatprep.subr.bf16.mxu0 %v8425_v25 }
 0x319   : > { %7884 = vmatpush3.bf16.msra.mxu0 %v8425_v25 }
 0x31a   : > { %7885 = vmatprep.subr.bf16.mxu0 %v8426_v2 }
 0x31c   : > { %7824 = vmatmul.mubr.bf16.gmra.mrb[12].mxu1 %v7033_v22  ;;  %v8427_v22 = vld [vmem:[#allocation9 + $0x30] sm:$0xff]  }
 0x31d   : > { %7843 = vmatprep.mubr.bf16.mxu1 %v7058_v16  ;;  %7886 = vmatpush3.bf16.msra.mxu0 %v8426_v2 }
 0x31e   : > { %7887 = vmatprep.subr.bf16.mxu0 %v8427_v22 }
 0x321   : > { %7888 = vmatpush3.bf16.msra.mxu0 %v8427_v22 }
 0x322   : > { %7889 = vmatprep.subr.bf16.mxu0 %v8428_v31 }
 0x324   : > { %7844 = vmatmul.mubr.bf16.vlgmr.msra.gmra.mrb[16].mxu1 %v7059_v60  ;;  %v10412_v60 = vld [vmem:[%s10608_s4] ss:$0 sm:$0xff] }
 0x325   : > { %7847 = vmatprep.mubr.bf16.mxu1 %v10703_v55  ;;  %7890 = vmatpush3.bf16.msra.mxu0 %v8428_v31 }
 0x32c   : > { %7848 = vmatmul.mubr.bf16.gmra.mrb[20].mxu1 %v10704_v43 }
 0x32d   : > { %7851 = vmatprep.mubr.bf16.mxu1 %v10705_v51 }
 0x334   : > { %7852 = vmatmul.mubr.bf16.gmra.mrb[24].mxu1 %v10706_v17 }
 0x335   : > { %7855 = vmatprep.mubr.bf16.mxu1 %v10708_v14 }
 0x33c   : > { %7856 = vmatmul.mubr.bf16.gmra.mrb[28].mxu1 %v10711_v28 }
 0x33d   : > { %7859 = vmatprep.mubr.bf16.mxu1 %v10714_v20 }
 0x344   : > { %7860 = vmatmul.mubr.bf16.gmra.mrb[0].mxu1 %v10717_v54 }
 0x345   : > { %7863 = vmatprep.mubr.bf16.mxu1 %v10720_v7 }
 0x34c   : > { %7864 = vmatmul.mubr.bf16.gmra.mrb[4].mxu1 %v10722_v52 }
 0x34d   : > { %7867 = vmatprep.mubr.bf16.mxu1 %v10724_v6 }
 0x354   : > { %7868 = vmatmul.mubr.bf16.gmra.mrb[8].mxu1 %v10726_v4 }
 0x355   : > { %7871 = vmatprep.mubr.bf16.mxu1 %v10729_v61 }
 0x357   : > { %v10368_v13 = vpop.f32.mrb[48].mxu0 }
 0x358   : > { %v10370_v42 = vpop.f32.mrb[49].mxu0 }
 0x359   : > { %v10372_v41 = vpop.f32.mrb[50].mxu0 }
 0x35a   : > { %v10374_v21 = vpop.f32.mrb[51].mxu0 }
 0x35c   : > { %7872 = vmatmul.mubr.bf16.gmra.mrb[12].mxu1 %v7073_v38 }
 0x35f   : > { %v10379_v50 = vpop.f32.mrb[52].mxu0 }
 0x360   : > { %v10381_v19 = vpop.f32.mrb[53].mxu0 }
 0x361   : > { %v10383_v49 = vpop.f32.mrb[54].mxu0 }
 0x362   : > { %v10385_v8 = vpop.f32.mrb[55].mxu0 }
 0x367   : > { %v10387_v32 = vpop.f32.mrb[56].mxu0 }
 0x368   : > { %v10389_v0 = vpop.f32.mrb[57].mxu0 }
 0x369   : > { %v10391_v56 = vpop.f32.mrb[58].mxu0 }
 0x36a   : > { %v10393_v36 = vpop.f32.mrb[59].mxu0 }
 0x36f   : > { %v10395_v34 = vpop.f32.mrb[60].mxu0 }
 0x370   : > { %v10397_v11 = vpop.f32.mrb[61].mxu0 }
 0x371   : > { %v10399_v44 = vpop.f32.mrb[62].mxu0 }
 0x372   : > { %v10401_v38 = vpop.f32.mrb[63].mxu0 }
 0x377   : > { %v7605_v5 = vpop.f32.mrb[32].mxu0 }
 0x378   : > { %v3133_v39 = vpop.f32.mrb[33].mxu0 }
 0x379   : > { %v7606_v26 = vpop.f32.mrb[34].mxu0 }
 0x37a   : > { %v3136_v24 = vpop.f32.mrb[35].mxu0 }
 0x37f   : > { %v7609_v12 = vpop.f32.mrb[36].mxu0 }
 0x380   : > { %v3149_v15 = vpop.f32.mrb[37].mxu0 }
 0x381   : > { %v7610_v35 = vpop.f32.mrb[38].mxu0 }
 0x382   : > { %v3152_v9 = vpop.f32.mrb[39].mxu0 }
 0x387   : > { %v7613_v27 = vpop.f32.mrb[40].mxu0 }
 0x388   : > { %v3165_v16 = vpop.f32.mrb[41].mxu0 }
 0x389   : > { %v7614_v57 = vpop.f32.mrb[42].mxu0 }
 0x38a   : > { %v3168_v62 = vpop.f32.mrb[43].mxu0 }
 0x38f   : > { %v7617_v59 = vpop.f32.mrb[44].mxu0 }
 0x390   : > { %v10403_v25 = vpop.f32.mrb[45].mxu0 }
 0x391   : > { %v10405_v33 = vpop.f32.mrb[46].mxu0 }
 0x392   : > { %v10407_v58 = vpop.f32.mrb[47].mxu0 }
 0x3f7   : > { %v7845_v40 = vpop.f32.mrb[16].mxu1 }
 0x3f8   : > { %v7939_v55 = vadd.f32 %v7845_v40, %v7605_v5  ;;  %v6024_v43 = vpop.f32.mrb[17].mxu1 }
 0x3f9   : > { %v7940_v51 = vadd.f32 %v6024_v43, %v3133_v39  ;;  %v7846_v17 = vpop.f32.mrb[18].mxu1 }
 0x3fa   : > { %v6192_v48 = vadd.f32 %v7939_v55, %v10412_v60  ;;  %v7941_v14 = vadd.f32 %v7846_v17, %v7606_v26  ;;  %v6027_v46 = vpop.f32.mrb[19].mxu1 }
 0x3fb   : > { %v6190_v63 = vadd.f32 %v7940_v51, %v10412_v60  ;;  %v7942_v28 = vadd.f32 %v6027_v46, %v3136_v24 }
 0x3fc   : > { %v6193_v23 = vadd.f32 %v7941_v14, %v10412_v60  ;;  %v6224_v20 = vmax.f32 %v6192_v48, 0.0 }
 0x3fd   : > { %v6191_v1 = vadd.f32 %v7942_v28, %v10412_v60  ;;  %v6222_v18 = vmax.f32 %v6190_v63, 0.0 }
 0x3fe   : > { %v6225_v45 = vmax.f32 %v6193_v23, 0.0 }
 0x3ff   : > { %v6223_v54 = vmax.f32 %v6191_v1, 0.0  ;;  %v7849_v10 = vpop.f32.mrb[20].mxu1 }
 0x400   : > { %v6255_v37 = vpack.c.bf16 %v6225_v45, %v6224_v20  ;;  %v7943_v7 = vadd.f32 %v7849_v10, %v7609_v12  ;;  %v6040_v30 = vpop.f32.mrb[21].mxu1 }
 0x401   : > { %v7944_v52 = vadd.f32 %v6040_v30, %v3149_v15  ;;  %v7850_v53 = vpop.f32.mrb[22].mxu1  ;;  %v6254_v6 = vpack.c.bf16 %v6223_v54, %v6222_v18 }
 0x402   : > { %v6196_v3 = vadd.f32 %v7943_v7, %v10412_v60  ;;  %v7945_v4 = vadd.f32 %v7850_v53, %v7610_v35  ;;  %v6043_v47 = vpop.f32.mrb[23].mxu1 }
 0x403   : > { %v6194_v29 = vadd.f32 %v7944_v52, %v10412_v60  ;;  %v7946_v61 = vadd.f32 %v6043_v47, %v3152_v9  ;;  %7891 = vmatprep.mubr.bf16.mxu0 %v6254_v6 }
 0x404   : > { %v6197_v5 = vadd.f32 %v7945_v4, %v10412_v60  ;;  %7892 = vmatmul.mubr.bf16.vlgmr.msra.gmra.mrb[64].mxu0 %v6255_v37  ;;  %v6228_v26 = vmax.f32 %v6196_v3, 0.0 }
 0x405   : > { %v6195_v39 = vadd.f32 %v7946_v61, %v10412_v60  ;;  %v6226_v2 = vmax.f32 %v6194_v29, 0.0 }
 0x406   : > { %v6229_v24 = vmax.f32 %v6197_v5, 0.0 }
 0x407   : > { %v6227_v12 = vmax.f32 %v6195_v39, 0.0  ;;  %v7853_v15 = vpop.f32.mrb[24].mxu1 }
 0x408   : > { %v7947_v22 = vadd.f32 %v7853_v15, %v7613_v27  ;;  %v6056_v31 = vpop.f32.mrb[25].mxu1  ;;  %v6257_v40 = vpack.c.bf16 %v6229_v24, %v6228_v26 }
 0x409   : > { %v7948_v55 = vadd.f32 %v6056_v31, %v3165_v16  ;;  %v7854_v35 = vpop.f32.mrb[26].mxu1  ;;  %v6256_v43 = vpack.c.bf16 %v6227_v12, %v6226_v2 }
 0x40a   : > { %v6200_v51 = vadd.f32 %v7947_v22, %v10412_v60  ;;  %v7949_v9 = vadd.f32 %v7854_v35, %v7614_v57  ;;  %v6059_v17 = vpop.f32.mrb[27].mxu1 }
 0x40b   : > { %v6198_v48 = vadd.f32 %v7948_v55, %v10412_v60  ;;  %v7950_v14 = vadd.f32 %v6059_v17, %v3168_v62  ;;  %7895 = vmatprep.mubr.bf16.mxu0 %v6256_v43 }
 0x40c   : > { %v6201_v46 = vadd.f32 %v7949_v9, %v10412_v60  ;;  %7896 = vmatmul.mubr.bf16.gmra.mrb[68].mxu0 %v6257_v40  ;;  %v6232_v28 = vmax.f32 %v6200_v51, 0.0 }
 0x40d   : > { %v6199_v63 = vadd.f32 %v7950_v14, %v10412_v60  ;;  %v6230_v23 = vmax.f32 %v6198_v48, 0.0 }
 0x40e   : > { %v6233_v27 = vmax.f32 %v6201_v46, 0.0 }
 0x40f   : > { %v6231_v1 = vmax.f32 %v6199_v63, 0.0  ;;  %v7857_v16 = vpop.f32.mrb[28].mxu1 }
 0x410   : > { %v7951_v20 = vadd.f32 %v7857_v16, %v7617_v59  ;;  %v6072_v45 = vpop.f32.mrb[29].mxu1  ;;  %v6259_v18 = vpack.c.bf16 %v6233_v27, %v6232_v28 }
 0x411   : > { %v7952_v57 = vadd.f32 %v6072_v45, %v10403_v25  ;;  %v7858_v54 = vpop.f32.mrb[30].mxu1  ;;  %v6258_v10 = vpack.c.bf16 %v6231_v1, %v6230_v23 }
 0x412   : > { %v6204_v62 = vadd.f32 %v7951_v20, %v10412_v60  ;;  %v7953_v37 = vadd.f32 %v7858_v54, %v10405_v33  ;;  %v6075_v7 = vpop.f32.mrb[31].mxu1 }
 0x413   : > { %v6202_v30 = vadd.f32 %v7952_v57, %v10412_v60  ;;  %v7954_v52 = vadd.f32 %v6075_v7, %v10407_v58  ;;  %7899 = vmatprep.mubr.bf16.mxu0 %v6258_v10 }
 0x414   : > { %v6205_v53 = vadd.f32 %v7953_v37, %v10412_v60  ;;  %7900 = vmatmul.mubr.bf16.gmra.mrb[72].mxu0 %v6259_v18  ;;  %v6236_v6 = vmax.f32 %v6204_v62, 0.0 }
 0x415   : > { %v6203_v59 = vadd.f32 %v7954_v52, %v10412_v60  ;;  %v6234_v25 = vmax.f32 %v6202_v30, 0.0 }
 0x416   : > { %v6237_v3 = vmax.f32 %v6205_v53, 0.0 }
 0x417   : > { %v6235_v4 = vmax.f32 %v6203_v59, 0.0  ;;  %v7861_v47 = vpop.f32.mrb[0].mxu1 }
 0x418   : > { %v7955_v29 = vadd.f32 %v7861_v47, %v10368_v13  ;;  %v6088_v61 = vpop.f32.mrb[1].mxu1  ;;  %v6261_v33 = vpack.c.bf16 %v6237_v3, %v6236_v6 }
 0x419   : > { %v7956_v5 = vadd.f32 %v6088_v61, %v10370_v42  ;;  %v7862_v39 = vpop.f32.mrb[2].mxu1  ;;  %v6260_v26 = vpack.c.bf16 %v6235_v4, %v6234_v25 }
 0x41a   : > { %v6208_v58 = vadd.f32 %v7955_v29, %v10412_v60  ;;  %v7957_v24 = vadd.f32 %v7862_v39, %v10372_v41  ;;  %v6091_v2 = vpop.f32.mrb[3].mxu1 }
 0x41b   : > { %v6206_v12 = vadd.f32 %v7956_v5, %v10412_v60  ;;  %v7958_v15 = vadd.f32 %v6091_v2, %v10374_v21  ;;  %7903 = vmatprep.mubr.bf16.mxu0 %v6260_v26 }
 0x41c   : > { %v6209_v22 = vadd.f32 %v7957_v24, %v10412_v60  ;;  %7904 = vmatmul.mubr.bf16.gmra.mrb[76].mxu0 %v6261_v33  ;;  %v6240_v31 = vmax.f32 %v6208_v58, 0.0 }
 0x41d   : > { %v6207_v13 = vadd.f32 %v7958_v15, %v10412_v60  ;;  %v6238_v42 = vmax.f32 %v6206_v12, 0.0 }
 0x41e   : > { %v6241_v40 = vmax.f32 %v6209_v22, 0.0  ;;  %v8496_v22 = vld [vmem:[%s8961_s20 + $0x8] sm:$0xff]  }
 0x41f   : > { %v6239_v55 = vmax.f32 %v6207_v13, 0.0  ;;  %v7865_v35 = vpop.f32.mrb[4].mxu1  ;;  %v6504_v13 = vunpack.c.l.bf16 %v8496_v22 }
 0x420   : > { %v7959_v43 = vadd.f32 %v7865_v35, %v10379_v50  ;;  %v6104_v51 = vpop.f32.mrb[5].mxu1  ;;  %v6263_v41 = vpack.c.bf16 %v6241_v40, %v6240_v31  ;;  %v8497_v31 = vld [vmem:[%s8961_s20] sm:$0xff]   ;;  %v6505_v35 = vunpack.c.h.bf16 %v8496_v22 }
 0x421   : > { %v7960_v9 = vadd.f32 %v6104_v51, %v10381_v19  ;;  %v7866_v17 = vpop.f32.mrb[6].mxu1  ;;  %v6262_v48 = vpack.c.bf16 %v6239_v55, %v6238_v42  ;;  %v6502_v40 = vunpack.c.l.bf16 %v8497_v31 }
 0x422   : > { %v6212_v21 = vadd.f32 %v7959_v43, %v10412_v60  ;;  %v7961_v14 = vadd.f32 %v7866_v17, %v10383_v49  ;;  %v6107_v46 = vpop.f32.mrb[7].mxu1  ;;  %v6503_v43 = vunpack.c.h.bf16 %v8497_v31  ;;  %v8502_v31 = vld [vmem:[%s8961_s20 + $0x38] sm:$0xff]  }
 0x423   : > { %v6210_v63 = vadd.f32 %v7960_v9, %v10412_v60  ;;  %v7962_v28 = vadd.f32 %v6107_v46, %v10385_v8  ;;  %7907 = vmatprep.mubr.bf16.mxu0 %v6262_v48 }
 0x424   : > { %v6213_v27 = vadd.f32 %v7961_v14, %v10412_v60  ;;  %7908 = vmatmul.mubr.bf16.gmra.mrb[80].mxu0 %v6263_v41  ;;  %v6244_v23 = vmax.f32 %v6212_v21, 0.0 }
 0x425   : > { %v6211_v50 = vadd.f32 %v7962_v28, %v10412_v60  ;;  %v6242_v19 = vmax.f32 %v6210_v63, 0.0 }
 0x426   : > { %v6245_v1 = vmax.f32 %v6213_v27, 0.0 }
 0x427   : > { %v6243_v16 = vmax.f32 %v6211_v50, 0.0  ;;  %v7869_v20 = vpop.f32.mrb[8].mxu1 }
 0x428   : > { %v7963_v45 = vadd.f32 %v7869_v20, %v10387_v32  ;;  %v6120_v18 = vpop.f32.mrb[9].mxu1  ;;  %v6265_v49 = vpack.c.bf16 %v6245_v1, %v6244_v23  ;;  %v8498_v23 = vld [vmem:[%s8961_s20 + $0x18] sm:$0xff]   ;;  %v8499_v20 = vld [vmem:[%s8961_s20 + $0x10] sm:$0xff]  }
 0x429   : > { %v7964_v57 = vadd.f32 %v6120_v18, %v10389_v0  ;;  %v7870_v54 = vpop.f32.mrb[10].mxu1  ;;  %v6264_v10 = vpack.c.bf16 %v6243_v16, %v6242_v19  ;;  %v6508_v1 = vunpack.c.l.bf16 %v8498_v23 }
 0x42a   : > { %v6216_v8 = vadd.f32 %v7963_v45, %v10412_v60  ;;  %v7965_v62 = vadd.f32 %v7870_v54, %v10391_v56  ;;  %v6123_v37 = vpop.f32.mrb[11].mxu1  ;;  %v6506_v45 = vunpack.c.l.bf16 %v8499_v20 }
 0x42b   : > { %v6214_v7 = vadd.f32 %v7964_v57, %v10412_v60  ;;  %v7966_v30 = vadd.f32 %v6123_v37, %v10393_v36  ;;  %7911 = vmatprep.mubr.bf16.mxu0 %v6264_v10  ;;  %v6509_v57 = vunpack.c.h.bf16 %v8498_v23 }
 0x42c   : > { %v6217_v52 = vadd.f32 %v7965_v62, %v10412_v60  ;;  %7912 = vmatmul.mubr.bf16.gmra.mrb[84].mxu0 %v6265_v49  ;;  %v6248_v53 = vmax.f32 %v6216_v8, 0.0  ;;  %v6507_v8 = vunpack.c.h.bf16 %v8499_v20 }
 0x42d   : > { %v6215_v32 = vadd.f32 %v7966_v30, %v10412_v60  ;;  %v6246_v0 = vmax.f32 %v6214_v7, 0.0 }
 0x42e   : > { %v6249_v59 = vmax.f32 %v6217_v52, 0.0 }
 0x42f   : > { %v6247_v6 = vmax.f32 %v6215_v32, 0.0  ;;  %v7873_v3 = vpop.f32.mrb[12].mxu1 }
 0x430   : > { %v7967_v25 = vadd.f32 %v7873_v3, %v10395_v34  ;;  %v6136_v4 = vpop.f32.mrb[13].mxu1  ;;  %v6267_v56 = vpack.c.bf16 %v6249_v59, %v6248_v53  ;;  %v8500_v3 = vld [vmem:[%s8961_s20 + $0x28] sm:$0xff]  }
 0x431   : > { %v7968_v47 = vadd.f32 %v6136_v4, %v10397_v11  ;;  %v7874_v29 = vpop.f32.mrb[14].mxu1  ;;  %v6266_v61 = vpack.c.bf16 %v6247_v6, %v6246_v0 }
 0x432   : > { %v6220_v36 = vadd.f32 %v7967_v25, %v10412_v60  ;;  %v7969_v33 = vadd.f32 %v7874_v29, %v10399_v44  ;;  %v6139_v5 = vpop.f32.mrb[15].mxu1  ;;  %v6512_v25 = vunpack.c.l.bf16 %v8500_v3 }
 0x433   : > { %v6218_v39 = vadd.f32 %v7968_v47, %v10412_v60  ;;  %v7970_v26 = vadd.f32 %v6139_v5, %v10401_v38  ;;  %7915 = vmatprep.mubr.bf16.mxu0 %v6266_v61  ;;  %v10468_v38 = vld [vmem:[%s10610_s6] ss:$0 sm:$0xff]  ;;  %v8501_v47 = vld [vmem:[%s8961_s20 + $0x20] sm:$0xff]  }
 0x434   : > { %v6221_v34 = vadd.f32 %v7969_v33, %v10412_v60  ;;  %7916 = vmatmul.mubr.bf16.gmra.mrb[88].mxu0 %v6267_v56  ;;  %v6252_v58 = vmax.f32 %v6220_v36, 0.0  ;;  %v6510_v29 = vunpack.c.l.bf16 %v8501_v47  ;;  %v6513_v33 = vunpack.c.h.bf16 %v8500_v3 }
 0x435   : > { %v6219_v11 = vadd.f32 %v7970_v26, %v10412_v60  ;;  %v6250_v2 = vmax.f32 %v6218_v39, 0.0  ;;  %v6511_v26 = vunpack.c.h.bf16 %v8501_v47 }
 0x436   : > { %v6253_v24 = vmax.f32 %v6221_v34, 0.0 }
 0x437   : > { %v6251_v12 = vmax.f32 %v6219_v11, 0.0 }
 0x438   : > { %v6269_v15 = vpack.c.bf16 %v6253_v24, %v6252_v58 }
 0x439   : > { %v6268_v44 = vpack.c.bf16 %v6251_v12, %v6250_v2 }
 0x43b   : > { %7919 = vmatprep.mubr.bf16.mxu0 %v6268_v44 }
 0x43c   : > { %7920 = vmatmul.mubr.bf16.gmra.mrb[92].mxu0 %v6269_v15 }
 0x4d7   : > { %v7893_v42 = vpop.f32.mrb[64].mxu0 }
 0x4d8   : > { %v6384_v60 = vadd.f32 %v7893_v42, %v10468_v38  ;;  %v6375_v55 = vpop.f32.mrb[65].mxu0 }
 0x4d9   : > { %v6376_v51 = vadd.f32 %v10468_v38, %v6375_v55  ;;  %v7894_v41 = vpop.f32.mrb[66].mxu0  ;;  %v8503_v55 = vld [vmem:[%s8961_s20 + $0x30] sm:$0xff]  }
 0x4da   : > { %v6536_v9 = vadd.f32 %v6504_v13, %v6384_v60  ;;  %v6387_v17 = vadd.f32 %v7894_v41, %v10468_v38  ;;  %v6378_v48 = vpop.f32.mrb[67].mxu0  ;;  %v6517_v41 = vunpack.c.h.bf16 %v8502_v31 }
 0x4db   : > { %v6534_v21 = vadd.f32 %v6502_v40, %v6376_v51  ;;  %v6379_v14 = vadd.f32 %v10468_v38, %v6378_v48  ;;  %v6516_v40 = vunpack.c.l.bf16 %v8502_v31  ;;  %v6515_v48 = vunpack.c.h.bf16 %v8503_v55 }
 0x4dc   : > { %v6568_v46 = vmax.f32 %v6536_v9, 0.0  ;;  %v6537_v63 = vadd.f32 %v6505_v35, %v6387_v17  ;;  %v6514_v35 = vunpack.c.l.bf16 %v8503_v55 }
 0x4dd   : > { %v6566_v28 = vmax.f32 %v6534_v21, 0.0  ;;  %v6535_v27 = vadd.f32 %v6503_v43, %v6379_v14 }
 0x4de   : > { %6600 = vst [vmem:[%s10477_s16 + $0x10] sm:$0xff] %v6568_v46  ;;  %v6569_v50 = vmax.f32 %v6537_v63, 0.0 }
 0x4df   : > { %6598 = vst [vmem:[%s10477_s16] sm:$0xff] %v6566_v28  ;;  %v6567_v19 = vmax.f32 %v6535_v27, 0.0  ;;  %v7897_v16 = vpop.f32.mrb[68].mxu0 }
 0x4e0   : > { %6601 = vst [vmem:[%s10477_s16 + $0x18] sm:$0xff] %v6569_v50  ;;  %v6400_v18 = vadd.f32 %v7897_v16, %v10468_v38  ;;  %v6391_v49 = vpop.f32.mrb[69].mxu0  ;;  %v8504_v16 = vld [vmem:[%s8961_s20 + $0x48] sm:$0xff]  }
 0x4e1   : > { %6599 = vst [vmem:[%s10477_s16 + $0x8] sm:$0xff] %v6567_v19  ;;  %v6392_v54 = vadd.f32 %v10468_v38, %v6391_v49  ;;  %v7898_v10 = vpop.f32.mrb[70].mxu0  ;;  %v6520_v20 = vunpack.c.l.bf16 %v8504_v16  ;;  %v8505_v49 = vld [vmem:[%s8961_s20 + $0x40] sm:$0xff]  }
 0x4e2   : > { %v6540_v62 = vadd.f32 %v6508_v1, %v6400_v18  ;;  %v6403_v37 = vadd.f32 %v7898_v10, %v10468_v38  ;;  %v6394_v7 = vpop.f32.mrb[71].mxu0 }
 0x4e3   : > { %v6538_v30 = vadd.f32 %v6506_v45, %v6392_v54  ;;  %v6395_v52 = vadd.f32 %v10468_v38, %v6394_v7  ;;  %v6519_v7 = vunpack.c.h.bf16 %v8505_v49 }
 0x4e4   : > { %v6572_v32 = vmax.f32 %v6540_v62, 0.0  ;;  %v6541_v53 = vadd.f32 %v6509_v57, %v6403_v37  ;;  %v6518_v57 = vunpack.c.l.bf16 %v8505_v49 }
 0x4e5   : > { %v6570_v59 = vmax.f32 %v6538_v30, 0.0  ;;  %v6539_v0 = vadd.f32 %v6507_v8, %v6395_v52  ;;  %v6521_v8 = vunpack.c.h.bf16 %v8504_v16 }
 0x4e6   : > { %6604 = vst [vmem:[%s10477_s16 + $0x30] sm:$0xff] %v6572_v32  ;;  %v6573_v6 = vmax.f32 %v6541_v53, 0.0 }
 0x4e7   : > { %6602 = vst [vmem:[%s10477_s16 + $0x20] sm:$0xff] %v6570_v59  ;;  %v6571_v4 = vmax.f32 %v6539_v0, 0.0  ;;  %v7901_v56 = vpop.f32.mrb[72].mxu0 }
 0x4e8   : > { %6605 = vst [vmem:[%s10477_s16 + $0x38] sm:$0xff] %v6573_v6  ;;  %v6416_v61 = vadd.f32 %v7901_v56, %v10468_v38  ;;  %v6407_v36 = vpop.f32.mrb[73].mxu0  ;;  %v8506_v56 = vld [vmem:[%s8961_s20 + $0x58] sm:$0xff]  }
 0x4e9   : > { %6603 = vst [vmem:[%s10477_s16 + $0x28] sm:$0xff] %v6571_v4  ;;  %v6408_v5 = vadd.f32 %v10468_v38, %v6407_v36  ;;  %v7902_v39 = vpop.f32.mrb[74].mxu0  ;;  %v6524_v47 = vunpack.c.l.bf16 %v8506_v56  ;;  %v8507_v36 = vld [vmem:[%s8961_s20 + $0x50] sm:$0xff]  }
 0x4ea   : > { %v6544_v34 = vadd.f32 %v6512_v25, %v6416_v61  ;;  %v6419_v11 = vadd.f32 %v7902_v39, %v10468_v38  ;;  %v6410_v58 = vpop.f32.mrb[75].mxu0 }
 0x4eb   : > { %v6542_v24 = vadd.f32 %v6510_v29, %v6408_v5  ;;  %v6411_v2 = vadd.f32 %v10468_v38, %v6410_v58  ;;  %v6523_v58 = vunpack.c.h.bf16 %v8507_v36 }
 0x4ec   : > { %v6576_v12 = vmax.f32 %v6544_v34, 0.0  ;;  %v6545_v15 = vadd.f32 %v6513_v33, %v6419_v11  ;;  %v6522_v33 = vunpack.c.l.bf16 %v8507_v36 }
 0x4ed   : > { %v6574_v44 = vmax.f32 %v6542_v24, 0.0  ;;  %v6543_v22 = vadd.f32 %v6511_v26, %v6411_v2  ;;  %v6525_v26 = vunpack.c.h.bf16 %v8506_v56 }
 0x4ee   : > { %6608 = vst [vmem:[%s10477_s16 + $0x50] sm:$0xff] %v6576_v12  ;;  %v6577_v13 = vmax.f32 %v6545_v15, 0.0 }
 0x4ef   : > { %6606 = vst [vmem:[%s10477_s16 + $0x40] sm:$0xff] %v6574_v44  ;;  %v6575_v42 = vmax.f32 %v6543_v22, 0.0  ;;  %v7905_v60 = vpop.f32.mrb[76].mxu0 }
 0x4f0   : > { %6609 = vst [vmem:[%s10477_s16 + $0x58] sm:$0xff] %v6577_v13  ;;  %v6432_v43 = vadd.f32 %v7905_v60, %v10468_v38  ;;  %v6423_v51 = vpop.f32.mrb[77].mxu0  ;;  %v8508_v60 = vld [vmem:[%s8961_s20 + $0x68] sm:$0xff]  }
 0x4f1   : > { %6607 = vst [vmem:[%s10477_s16 + $0x48] sm:$0xff] %v6575_v42  ;;  %v6424_v9 = vadd.f32 %v10468_v38, %v6423_v51  ;;  %v7906_v17 = vpop.f32.mrb[78].mxu0  ;;  %v6528_v55 = vunpack.c.l.bf16 %v8508_v60  ;;  %v8509_v51 = vld [vmem:[%s8961_s20 + $0x60] sm:$0xff]  }
 0x4f2   : > { %v6548_v21 = vadd.f32 %v6516_v40, %v6432_v43  ;;  %v6435_v14 = vadd.f32 %v7906_v17, %v10468_v38  ;;  %v6426_v46 = vpop.f32.mrb[79].mxu0 }
 0x4f3   : > { %v6546_v63 = vadd.f32 %v6514_v35, %v6424_v9  ;;  %v6427_v28 = vadd.f32 %v10468_v38, %v6426_v46  ;;  %v6527_v46 = vunpack.c.h.bf16 %v8509_v51 }
 0x4f4   : > { %v6580_v27 = vmax.f32 %v6548_v21, 0.0  ;;  %v6549_v50 = vadd.f32 %v6517_v41, %v6435_v14  ;;  %v6526_v41 = vunpack.c.l.bf16 %v8509_v51 }
 0x4f5   : > { %v6578_v23 = vmax.f32 %v6546_v63, 0.0  ;;  %v6547_v1 = vadd.f32 %v6515_v48, %v6427_v28  ;;  %v6529_v48 = vunpack.c.h.bf16 %v8508_v60 }
 0x4f6   : > { %6612 = vst [vmem:[%s10477_s16 + $0x70] sm:$0xff] %v6580_v27  ;;  %v6581_v19 = vmax.f32 %v6549_v50, 0.0 }
 0x4f7   : > { %6610 = vst [vmem:[%s10477_s16 + $0x60] sm:$0xff] %v6578_v23  ;;  %v6579_v45 = vmax.f32 %v6547_v1, 0.0  ;;  %v7909_v18 = vpop.f32.mrb[80].mxu0 }
 0x4f8   : > { %6613 = vst [vmem:[%s10477_s16 + $0x78] sm:$0xff] %v6581_v19  ;;  %v6448_v54 = vadd.f32 %v7909_v18, %v10468_v38  ;;  %v6439_v10 = vpop.f32.mrb[81].mxu0  ;;  %v8510_v18 = vld [vmem:[%s8961_s20 + $0x78] sm:$0xff]  }
 0x4f9   : > { %6611 = vst [vmem:[%s10477_s16 + $0x68] sm:$0xff] %v6579_v45  ;;  %v6440_v62 = vadd.f32 %v10468_v38, %v6439_v10  ;;  %v7910_v37 = vpop.f32.mrb[82].mxu0  ;;  %v6532_v49 = vunpack.c.l.bf16 %v8510_v18  ;;  %v8511_v10 = vld [vmem:[%s8961_s20 + $0x70] sm:$0xff]  }
 0x4fa   : > { %v6552_v30 = vadd.f32 %v6520_v20, %v6448_v54  ;;  %v6451_v52 = vadd.f32 %v7910_v37, %v10468_v38  ;;  %v6442_v32 = vpop.f32.mrb[83].mxu0 }
 0x4fb   : > { %v6550_v53 = vadd.f32 %v6518_v57, %v6440_v62  ;;  %v6443_v59 = vadd.f32 %v10468_v38, %v6442_v32  ;;  %v6531_v32 = vunpack.c.h.bf16 %v8511_v10 }
 0x4fc   : > { %v6584_v0 = vmax.f32 %v6552_v30, 0.0  ;;  %v6553_v6 = vadd.f32 %v6521_v8, %v6451_v52  ;;  %v6530_v8 = vunpack.c.l.bf16 %v8511_v10 }
 0x4fd   : > { %v6582_v3 = vmax.f32 %v6550_v53, 0.0  ;;  %v6551_v25 = vadd.f32 %v6519_v7, %v6443_v59  ;;  %v6533_v7 = vunpack.c.h.bf16 %v8510_v18 }
 0x4fe   : > { %6616 = vst [vmem:[%s10477_s16 + $0x90] sm:$0xff] %v6584_v0  ;;  %v6585_v4 = vmax.f32 %v6553_v6, 0.0 }
 0x4ff   : > { %6614 = vst [vmem:[%s10477_s16 + $0x80] sm:$0xff] %v6582_v3  ;;  %v6583_v29 = vmax.f32 %v6551_v25, 0.0  ;;  %v7913_v61 = vpop.f32.mrb[84].mxu0 }
 0x500   : > { %6617 = vst [vmem:[%s10477_s16 + $0x98] sm:$0xff] %v6585_v4  ;;  %v6464_v5 = vadd.f32 %v7913_v61, %v10468_v38  ;;  %v6455_v39 = vpop.f32.mrb[85].mxu0 }
 0x501   : > { %6615 = vst [vmem:[%s10477_s16 + $0x88] sm:$0xff] %v6583_v29  ;;  %v6456_v34 = vadd.f32 %v10468_v38, %v6455_v39  ;;  %v7914_v11 = vpop.f32.mrb[86].mxu0 }
 0x502   : > { %v6556_v24 = vadd.f32 %v6524_v47, %v6464_v5  ;;  %v6467_v2 = vadd.f32 %v7914_v11, %v10468_v38  ;;  %v6458_v12 = vpop.f32.mrb[87].mxu0 }
 0x503   : > { %v6554_v15 = vadd.f32 %v6522_v33, %v6456_v34  ;;  %v6459_v44 = vadd.f32 %v10468_v38, %v6458_v12 }
 0x504   : > { %v6588_v22 = vmax.f32 %v6556_v24, 0.0  ;;  %v6557_v13 = vadd.f32 %v6525_v26, %v6467_v2 }
 0x505   : > { %v6586_v31 = vmax.f32 %v6554_v15, 0.0  ;;  %v6555_v40 = vadd.f32 %v6523_v58, %v6459_v44 }
 0x506   : > { %6620 = vst [vmem:[%s10477_s16 + $0xb0] sm:$0xff] %v6588_v22  ;;  %v6589_v42 = vmax.f32 %v6557_v13, 0.0 }
 0x507   : > { %6618 = vst [vmem:[%s10477_s16 + $0xa0] sm:$0xff] %v6586_v31  ;;  %v6587_v35 = vmax.f32 %v6555_v40, 0.0  ;;  %v7917_v43 = vpop.f32.mrb[88].mxu0 }
 0x508   : > { %6621 = vst [vmem:[%s10477_s16 + $0xb8] sm:$0xff] %v6589_v42  ;;  %v6480_v9 = vadd.f32 %v7917_v43, %v10468_v38  ;;  %v6471_v17 = vpop.f32.mrb[89].mxu0 }
 0x509   : > { %6619 = vst [vmem:[%s10477_s16 + $0xa8] sm:$0xff] %v6587_v35  ;;  %v6472_v21 = vadd.f32 %v10468_v38, %v6471_v17  ;;  %v7918_v14 = vpop.f32.mrb[90].mxu0 }
 0x50a   : > { %v6560_v63 = vadd.f32 %v6528_v55, %v6480_v9  ;;  %v6483_v28 = vadd.f32 %v7918_v14, %v10468_v38  ;;  %v6474_v27 = vpop.f32.mrb[91].mxu0 }
 0x50b   : > { %v6558_v50 = vadd.f32 %v6526_v41, %v6472_v21  ;;  %v6475_v23 = vadd.f32 %v10468_v38, %v6474_v27 }
 0x50c   : > { %v6592_v1 = vmax.f32 %v6560_v63, 0.0  ;;  %v6561_v19 = vadd.f32 %v6529_v48, %v6483_v28 }
 0x50d   : > { %v6590_v16 = vmax.f32 %v6558_v50, 0.0  ;;  %v6559_v20 = vadd.f32 %v6527_v46, %v6475_v23 }
 0x50e   : > { %6624 = vst [vmem:[%s10477_s16 + $0xd0] sm:$0xff] %v6592_v1  ;;  %v6593_v45 = vmax.f32 %v6561_v19, 0.0 }
 0x50f   : > { %6622 = vst [vmem:[%s10477_s16 + $0xc0] sm:$0xff] %v6590_v16  ;;  %v6591_v57 = vmax.f32 %v6559_v20, 0.0  ;;  %v7921_v54 = vpop.f32.mrb[92].mxu0 }
 0x510   : > { %6625 = vst [vmem:[%s10477_s16 + $0xd8] sm:$0xff] %v6593_v45  ;;  %v6496_v62 = vadd.f32 %v7921_v54, %v10468_v38  ;;  %v6487_v37 = vpop.f32.mrb[93].mxu0 }
 0x511   : > { %6623 = vst [vmem:[%s10477_s16 + $0xc8] sm:$0xff] %v6591_v57  ;;  %v6488_v30 = vadd.f32 %v10468_v38, %v6487_v37  ;;  %v7922_v52 = vpop.f32.mrb[94].mxu0 }
 0x512   : > { %v6564_v53 = vadd.f32 %v6532_v49, %v6496_v62  ;;  %v6499_v59 = vadd.f32 %v7922_v52, %v10468_v38  ;;  %v6490_v0 = vpop.f32.mrb[95].mxu0 }
 0x513   : > { %v6562_v6 = vadd.f32 %v6530_v8, %v6488_v30  ;;  %v6491_v3 = vadd.f32 %v10468_v38, %v6490_v0 }
 0x514   : > { %v6596_v25 = vmax.f32 %v6564_v53, 0.0  ;;  %v6565_v4 = vadd.f32 %v6533_v7, %v6499_v59 }
 0x515   : > { %v6594_v56 = vmax.f32 %v6562_v6, 0.0  ;;  %v6563_v47 = vadd.f32 %v6531_v32, %v6491_v3 }
 0x516   : > { %6628 = vst [vmem:[%s10477_s16 + $0xf0] sm:$0xff] %v6596_v25  ;;  %v6597_v29 = vmax.f32 %v6565_v4, 0.0 }
 0x517   : > { %6626 = vst [vmem:[%s10477_s16 + $0xe0] sm:$0xff] %v6594_v56  ;;  %v6595_v38 = vmax.f32 %v6563_v47, 0.0 }
 0x518   : > { %6629 = vst [vmem:[%s10477_s16 + $0xf8] sm:$0xff] %v6597_v29 }
 0x519   : > { %6627 = vst [vmem:[%s10477_s16 + $0xe8] sm:$0xff] %v6595_v38 }
 0x51a   : > { %8639 = shalt.err (!%p8636_p4)
}
 0x51b   : > { %s8640_s14 = scalar_lea.hbm %s10555_s30, 4096  ;;  %s8644_s21 = scalar_lea.hbm %s10611_s7, 8192 }
 0x51c   : > { %p8641_p9 = scmp.ne.s32.totalorder %s10555_s30, %s8640_s14  ;;  %p8645_p8 = scmp.lt.u32.totalorder %s10555_s30, %s10611_s7 }
 0x51d   : > { %p8646_p13 = scmp.lt.u32.totalorder %s8644_s21, %s8640_s14  ;;  %p8648_p10 = scmp.lt.u32.totalorder %s8640_s14, %s10555_s30 }
 0x51e   : > { %p8642_p0 = pnand %p8641_p9, %p8906_p5 }
 0x51f   : > { %p8647_p6 = por %p8646_p13, %p8645_p8 }
 0x520   : > { %p8643_p11 = pneg %p8642_p0 }
 0x521   : > { %p8649_p3 = por %p8648_p10, %p8647_p6 }
 0x523   : > { %p8650_p7 = pnand %p8649_p3, %p8643_p11 }
 0x525   : > { %8653 = shalt.err (!%p8650_p7)
}
 0x526   : > { %s8710_s11 = smov 128   ;;  %s8711_s20 = smov 8  }
 0x527   : > { %8209 = dma.vmem_to_hbm [thread:$0]  (%p8906_p5), %s10557_s23, 4096, %s10555_s30, %s6631_s28, %s8710_s11, %s8710_s11, %s8711_s20  }
 0x528 PF: > { %s10730_s9 = sld [smem:[#allocation16_spill]]  ;;  %s6659_s13 = sand.u32 1, %s8688_s24  }
 0x529   : > { %p10732_p1 = scmp.ge.s32.totalorder %s8700_s27, 2  ;;  %s6660_s15 = scalar_lea.sflag [#allocation5], %s6659_s13 }
 0x52e   : > { %p10731_p12 = scmp.ne.s32.totalorder %s10730_s9, 0 }
 0x530   : > { %p8226_p2 = pnand %p10732_p1, %p10731_p12 }
 0x532   : > { %8683 = dma.done.wait (!%p8226_p2), %s6660_s15, 4096  }
 0x533   : > { %8685 = vsyncadd (!%p8226_p2), %s6660_s15, 4294963200  ;;  %p22_p4 = scmp.ge.s32.totalorder %s8892_s22, 4   ;;  %s10733_s24 = smov %s8692_s25 }
 0x534   : > { %s10734_s25 = smov %s8696_s26  ;;  %s10735_s26 = smov %s8902_s18 }
 0x535   : > { %s10736_s27 = smov %s8892_s22  ;;  %24 = sbr.rel (!%p22_p4) target bundleno = 7 (0x7), region = 116 }
 0x53c   :  { %6665 = vsyncpa [#allocation4], 1 }
 0x53d   :  { %6667 = vsyncpa [#allocation4 + $0x1], 1 }
 0x53e   :  { %6668 = vsyncpa [#allocation7], 1 }
 0x53f   :  { %6669 = vsyncpa [#allocation10], 1 }
 0x540   :  { %6670 = vsyncpa [#allocation5], 1 }
 0x541   :  { %6672 = vsyncpa [#allocation5 + $0x1], 1 }

</bundles_post_ra>
